<compile_context>
chip_gen: v7x
topology: tpu7x:2x2x1
jax: 0.10.0
libtpu: 0.0.40
codegen_flags: <defaults>
</compile_context>

<pallas_src>
import functools
import math

import jax
import jax.numpy as jnp
from jax.experimental import pallas as pl
from jax.experimental.pallas import tpu as pltpu

_LN_EPS = 1e-5  # torch.nn.LayerNorm default


# ----------------------------- in-kernel helpers -----------------------------

def _layernorm(x, g, b, eps=_LN_EPS):
    """LayerNorm over the last axis, f32 math."""
    xf = x.astype(jnp.float32)
    mu = jnp.mean(xf, axis=-1, keepdims=True)
    var = jnp.mean((xf - mu) ** 2, axis=-1, keepdims=True)
    return (xf - mu) * jax.lax.rsqrt(var + eps) * g + b


def _erf_f32(x):
    # Abramowitz & Stegun 7.1.26 rational approximation, |abs err| <= 1.5e-7
    # (float32-accurate).  Used instead of lax.erf, which has no guaranteed
    # Mosaic lowering, so exact-erf GELU semantics are kept to f32 level.
    a1, a2, a3, a4, a5 = 0.254829592, -0.284496736, 1.421413741, -1.453152027, 1.061405429
    pp = 0.3275911
    sgn = jnp.where(x >= 0.0, 1.0, -1.0)
    ax = sgn * x
    t = 1.0 / (1.0 + pp * ax)
    poly = ((((a5 * t + a4) * t + a3) * t + a2) * t + a1) * t
    return sgn * (1.0 - poly * jnp.exp(-ax * ax))


def _gelu_exact(x):
    # GELU(x) = 0.5 * x * (1 + erf(x / sqrt(2)))  == torch.nn.GELU()
    return 0.5 * x * (1.0 + _erf_f32(x * 0.7071067811865476))


# ----------------------------- fused transformer kernel -----------------------------

def _transformer_kernel(x_ref, aln_g_ref, aln_b_ref, wqkv_ref, wout_ref,
                        bout_ref, fln_g_ref, fln_b_ref, w1_ref, b1_ref,
                        w2_ref, b2_ref, ng_ref, nbias_ref, o_ref,
                        res_ref, qkv_ref, ctx_ref, *, batch, seq, heads,
                        dim_head):
    """One grid step == one transformer layer (attn + ff); residual in VMEM.

    x_ref / o_ref are the flattened (M, D) residual stream (M = batch*seq).
    Per-layer weights arrive depth-sliced via the BlockSpec index_map; the
    final-norm params are grid-resident and only used on the last step.
    """
    layer = pl.program_id(0)
    inner = heads * dim_head

    @pl.when(layer == 0)
    def _():
        res_ref[...] = x_ref[...]

    x = res_ref[...]                                              # (M, D) f32

    # ---- PreNorm + Attention + out-projection + residual ----
    xn = _layernorm(x, aln_g_ref[...], aln_b_ref[...]).astype(jnp.bfloat16)
    # One lane-dense QKV matmul for the whole slab (scale pre-folded into Wq).
    qkv_ref[...] = jnp.dot(xn, wqkv_ref[...],
                           preferred_element_type=jnp.float32)    # (M, 3*inner)

    for bi in range(batch):                    # small static unrolls; the score
        r0 = bi * seq                          # matrices are inherently (N, N)=(5,5)
        for h in range(heads):
            c0 = h * dim_head
            q = qkv_ref[r0:r0 + seq, c0:c0 + dim_head].astype(jnp.bfloat16)
            k = qkv_ref[r0:r0 + seq,
                        inner + c0:inner + c0 + dim_head].astype(jnp.bfloat16)
            v = qkv_ref[r0:r0 + seq,
                        2 * inner + c0:2 * inner + c0 + dim_head].astype(jnp.bfloat16)
            # q @ k^T without an explicit transpose: contract dim_head directly.
            s = jax.lax.dot_general(q, k, (((1,), (1,)), ((), ())),
                                    preferred_element_type=jnp.float32)   # (N, N)
            s = s - jnp.max(s, axis=-1, keepdims=True)
            p = jnp.exp(s)
            p = p * pl.reciprocal(jnp.sum(p, axis=-1, keepdims=True), approx=False)
            ctx_ref[r0:r0 + seq, c0:c0 + dim_head] = jnp.dot(
                p.astype(jnp.bfloat16), v, preferred_element_type=jnp.float32)

    # Single lane-dense output projection over all heads / all rows.
    attn = jnp.dot(ctx_ref[...].astype(jnp.bfloat16), wout_ref[...],
                   preferred_element_type=jnp.float32) + bout_ref[...]
    x = x + attn

    # ---- PreNorm + FeedForward + residual ----
    xn2 = _layernorm(x, fln_g_ref[...], fln_b_ref[...]).astype(jnp.bfloat16)
    h1 = jnp.dot(xn2, w1_ref[...], preferred_element_type=jnp.float32) + b1_ref[...]
    h1 = _gelu_exact(h1)
    y = jnp.dot(h1.astype(jnp.bfloat16), w2_ref[...],
                preferred_element_type=jnp.float32) + b2_ref[...]
    x = x + y

    res_ref[...] = x

    # Final LayerNorm + single dense slab store, only on the last layer.
    @pl.when(layer == pl.num_programs(0) - 1)
    def _():
        o_ref[...] = _layernorm(x, ng_ref[...], nbias_ref[...]).astype(o_ref.dtype)


def transformer(x, tp, heads, dim_head):
    """Whole Transformer (depth layers + final LayerNorm) as ONE pallas_call."""
    B, N, D = x.shape
    M = B * N
    depth = tp['w_qkv'].shape[0]
    inner = heads * dim_head
    mlp = tp['w1'].shape[-1]

    def per_layer(r, c):            # (depth, r, c) array -> layer-l (r, c) block
        return pl.BlockSpec((None, r, c), lambda l: (l, 0, 0))

    def resident(r, c):             # same block every grid step (stays in VMEM)
        return pl.BlockSpec((r, c), lambda l: (0, 0))

    kern = functools.partial(_transformer_kernel, batch=B, seq=N,
                             heads=heads, dim_head=dim_head)

    out = pl.pallas_call(
        kern,
        out_shape=jax.ShapeDtypeStruct((M, D), jnp.float32),
        grid=(depth,),
        in_specs=[
            resident(M, D),                        # x (flattened residual input)
            per_layer(1, D), per_layer(1, D),      # attn LN gamma / beta
            per_layer(D, 3 * inner),               # w_qkv (bf16, scale folded)
            per_layer(inner, D),                   # w_out (bf16)
            per_layer(1, D),                       # b_out
            per_layer(1, D), per_layer(1, D),      # ff LN gamma / beta
            per_layer(D, mlp), per_layer(1, mlp),  # w1 (bf16), b1
            per_layer(mlp, D), per_layer(1, D),    # w2 (bf16), b2
            resident(1, D), resident(1, D),        # final norm gamma / beta
        ],
        out_specs=resident(M, D),
        scratch_shapes=[pltpu.VMEM((M, D), jnp.float32),           # residual
                        pltpu.VMEM((M, 3 * inner), jnp.float32),   # qkv
                        pltpu.VMEM((M, inner), jnp.float32)],      # attn context
        compiler_params=pltpu.CompilerParams(
            dimension_semantics=("arbitrary",)),
    )(x.reshape(M, D), tp['attn_ln_g'], tp['attn_ln_b'], tp['w_qkv'],
      tp['w_out'], tp['b_out'], tp['ff_ln_g'], tp['ff_ln_b'],
      tp['w1'], tp['b1'], tp['w2'], tp['b2'], tp['norm_g'], tp['norm_b'])
    return out.reshape(B, N, D)


# ----------------------------- full model forward -----------------------------

def vivit_forward(params, x, cfg):
    b, t, c, H, W = x.shape
    ps, dim = cfg['patch_size'], cfg['dim']
    hh, ww = H // ps, W // ps
    n = hh * ww
    patch_dim = ps * ps * c

    # Rearrange 'b t c (h p1) (w p2) -> b t (h w) (p1 p2 c)'   (plain-JAX glue)
    xp = x.reshape(b, t, c, hh, ps, ww, ps)
    xp = xp.transpose(0, 1, 3, 5, 4, 6, 2)
    xp = xp.reshape(b, t, n, patch_dim)

    # Patch embedding Linear in plain XLA (tiny matmul, below pallas_call cost).
    x_emb = xp @ params['patch_w'] + params['patch_b']            # (b, t, n, dim)

    # space cls token + positional embedding
    cls_space = jnp.broadcast_to(params['space_token'].reshape(1, 1, 1, dim),
                                 (b, t, 1, dim))
    xcat = jnp.concatenate([cls_space, x_emb], axis=2)            # (b, t, n+1, dim)
    xcat = xcat + params['pos_emb'][:, :, :n + 1]
    # TODO(synk): emb_dropout=0 / dropout=0.1 treated as eval-mode identity.

    # space transformer over (b*t) sequences — one fused Pallas call
    xs = xcat.reshape(b * t, n + 1, dim)
    xs = transformer(xs, params['space_tf'], cfg['heads'], cfg['dim_head'])

    # temporal transformer over per-frame cls tokens — one fused Pallas call
    xt = xs[:, 0].reshape(b, t, dim)
    cls_temp = jnp.broadcast_to(params['temporal_token'].reshape(1, 1, dim),
                                (b, 1, dim))
    xt = jnp.concatenate([cls_temp, xt], axis=1)                  # (b, t+1, dim)
    xt = transformer(xt, params['temporal_tf'], cfg['heads'], cfg['dim_head'])

    pooled = xt.mean(axis=1) if cfg['pool'] == 'mean' else xt[:, 0]   # (b, dim)

    # mlp_head (LayerNorm + Linear(dim, 1)) in plain XLA: a lane-width-1 Pallas
    # output is pure masked-store overhead at this size.
    mu = jnp.mean(pooled, axis=-1, keepdims=True)
    var = jnp.mean((pooled - mu) ** 2, axis=-1, keepdims=True)
    hln = (pooled - mu) * jax.lax.rsqrt(var + _LN_EPS) * params['head_ln_g'] \
        + params['head_ln_b']
    head = hln @ params['head_w'] + params['head_b']              # (b, 1)
    return pooled, head


# ----------------------------- parameter init -----------------------------

def xavier(key, fan_in, fan_out):
    bound = math.sqrt(6.0 / (fan_in + fan_out))
    return jax.random.uniform(key, (fan_in, fan_out), jnp.float32, -bound, bound)


def init_transformer(nk, dim, depth, heads, dim_head, mlp_dim):
    """Params already in kernel layout: stacked per depth, bf16 weights,
    attention scale pre-folded into the Q columns of w_qkv."""
    inner = heads * dim_head
    scale = dim_head ** -0.5
    wqkv, wout, w1, w2 = [], [], [], []
    for _ in range(depth):
        w = xavier(nk(), dim, 3 * inner)                      # bias-free in torch
        w = jnp.concatenate([w[:, :inner] * scale, w[:, inner:]], axis=1)
        wqkv.append(w)
        wout.append(xavier(nk(), inner, dim))
        w1.append(xavier(nk(), dim, mlp_dim))
        w2.append(xavier(nk(), mlp_dim, dim))
    f32 = jnp.float32
    return {
        'attn_ln_g': jnp.ones((depth, 1, dim), f32),
        'attn_ln_b': jnp.zeros((depth, 1, dim), f32),
        'w_qkv': jnp.stack(wqkv).astype(jnp.bfloat16),        # (depth, D, 3*inner)
        'w_out': jnp.stack(wout).astype(jnp.bfloat16),        # (depth, inner, D)
        'b_out': jnp.zeros((depth, 1, dim), f32),
        'ff_ln_g': jnp.ones((depth, 1, dim), f32),
        'ff_ln_b': jnp.zeros((depth, 1, dim), f32),
        'w1': jnp.stack(w1).astype(jnp.bfloat16),             # (depth, D, mlp)
        'b1': jnp.zeros((depth, 1, mlp_dim), f32),
        'w2': jnp.stack(w2).astype(jnp.bfloat16),             # (depth, mlp, D)
        'b2': jnp.zeros((depth, 1, dim), f32),
        'norm_g': jnp.ones((1, dim), f32),
        'norm_b': jnp.zeros((1, dim), f32),
    }


def init_params(key, cfg):
    dim, ps = cfg['dim'], cfg['patch_size']
    num_patches = (cfg['image_size'] // ps) ** 2
    patch_dim = cfg['in_channels'] * ps * ps
    mlp_dim = dim * cfg['scale_dim']
    keys = iter(jax.random.split(key, 64))
    nk = lambda: next(keys)
    return {
        'patch_w': xavier(nk(), patch_dim, dim),
        'patch_b': jnp.zeros((dim,), jnp.float32),
        'pos_emb': jax.random.normal(nk(), (1, cfg['num_frames'], num_patches + 1, dim),
                                     jnp.float32),
        'space_token': jax.random.normal(nk(), (1, 1, dim), jnp.float32),
        'temporal_token': jax.random.normal(nk(), (1, 1, dim), jnp.float32),
        'space_tf': init_transformer(nk, dim, cfg['depth'], cfg['heads'],
                                     cfg['dim_head'], mlp_dim),
        'temporal_tf': init_transformer(nk, dim, cfg['depth'], cfg['heads'],
                                        cfg['dim_head'], mlp_dim),
        'head_ln_g': jnp.ones((dim,), jnp.float32),
        'head_ln_b': jnp.zeros((dim,), jnp.float32),
        'head_w': xavier(nk(), dim, 1),
        'head_b': jnp.zeros((1,), jnp.float32),
    }


# ----------------------------- main -----------------------------

if __name__ == "__main__":
    cfg = dict(image_size=16, patch_size=8, num_classes=1, num_frames=4,
               dim=32, depth=2, heads=2, dim_head=16, pool='cls',
               in_channels=1, scale_dim=2)

    key = jax.random.PRNGKey(0)
    pkey, xkey = jax.random.split(key)
    params = init_params(pkey, cfg)

    b = 2
    x = jax.random.normal(
        xkey, (b, cfg['num_frames'], cfg['in_channels'],
               cfg['image_size'], cfg['image_size']), jnp.float32)

    fwd = jax.jit(lambda p, xx: vivit_forward(p, xx, cfg))
    pooled, head = fwd(params, x)
    jax.block_until_ready((pooled, head))

    assert pooled.shape == (b, cfg['dim'])
    assert head.shape == (b, 1)
    assert jnp.all(jnp.isfinite(pooled)) and jnp.all(jnp.isfinite(head))
    print("KERNEL_OK")
</pallas_src>

<mosaic_0001>
module attributes {stable_mosaic.version = 11 : i64} {
  func.func @_transformer_kernel(%arg0: i32, %arg1: memref<10x32xf32, #tpu.memory_space<vmem>>, %arg2: memref<1x1x32xf32, #tpu.memory_space<vmem>>, %arg3: memref<1x1x32xf32, #tpu.memory_space<vmem>>, %arg4: memref<1x32x96xbf16, #tpu.memory_space<vmem>>, %arg5: memref<1x32x32xbf16, #tpu.memory_space<vmem>>, %arg6: memref<1x1x32xf32, #tpu.memory_space<vmem>>, %arg7: memref<1x1x32xf32, #tpu.memory_space<vmem>>, %arg8: memref<1x1x32xf32, #tpu.memory_space<vmem>>, %arg9: memref<1x32x64xbf16, #tpu.memory_space<vmem>>, %arg10: memref<1x1x64xf32, #tpu.memory_space<vmem>>, %arg11: memref<1x64x32xbf16, #tpu.memory_space<vmem>>, %arg12: memref<1x1x32xf32, #tpu.memory_space<vmem>>, %arg13: memref<1x32xf32, #tpu.memory_space<vmem>>, %arg14: memref<1x32xf32, #tpu.memory_space<vmem>>, %arg15: memref<10x32xf32, #tpu.memory_space<vmem>>, %arg16: memref<10x32xf32, #tpu.memory_space<vmem>>, %arg17: memref<10x96xf32, #tpu.memory_space<vmem>>, %arg18: memref<10x32xf32, #tpu.memory_space<vmem>>) attributes {dimension_semantics = [#tpu.dimension_semantics<arbitrary>], iteration_bounds = array<i64: 2>, scalar_prefetch = 0 : i64, scratch_operands = 3 : i64, tpu.core_type = #tpu.core_type<tc>, window_params = [{pipeline_mode = #tpu.pipeline_mode<synchronous>, transform_indices = @transform_0, window_bounds = array<i64: 10, 32>}, {transform_indices = @transform_1, window_bounds = array<i64: 1, 1, 32>}, {transform_indices = @transform_2, window_bounds = array<i64: 1, 1, 32>}, {transform_indices = @transform_3, window_bounds = array<i64: 1, 32, 96>}, {transform_indices = @transform_4, window_bounds = array<i64: 1, 32, 32>}, {transform_indices = @transform_5, window_bounds = array<i64: 1, 1, 32>}, {transform_indices = @transform_6, window_bounds = array<i64: 1, 1, 32>}, {transform_indices = @transform_7, window_bounds = array<i64: 1, 1, 32>}, {transform_indices = @transform_8, window_bounds = array<i64: 1, 32, 64>}, {transform_indices = @transform_9, window_bounds = array<i64: 1, 1, 64>}, {transform_indices = @transform_10, window_bounds = array<i64: 1, 64, 32>}, {transform_indices = @transform_11, window_bounds = array<i64: 1, 1, 32>}, {pipeline_mode = #tpu.pipeline_mode<synchronous>, transform_indices = @transform_12, window_bounds = array<i64: 1, 32>}, {pipeline_mode = #tpu.pipeline_mode<synchronous>, transform_indices = @transform_13, window_bounds = array<i64: 1, 32>}, {pipeline_mode = #tpu.pipeline_mode<synchronous>, transform_indices = @transform_14, window_bounds = array<i64: 10, 32>}]} {
    %c0_i32 = arith.constant 0 : i32
    %0 = arith.cmpi eq, %arg0, %c0_i32 : i32
    %1 = arith.extui %0 : i1 to i32
    %c0_i32_0 = arith.constant 0 : i32
    %2 = arith.cmpi ne, %1, %c0_i32_0 : i32
    scf.if %2 {
      %c0_113 = arith.constant 0 : index
      %c0_114 = arith.constant 0 : index
      %213 = vector.load %arg1[%c0_113, %c0_114] : memref<10x32xf32, #tpu.memory_space<vmem>>, vector<10x32xf32>
      %c0_115 = arith.constant 0 : index
      %c0_116 = arith.constant 0 : index
      %214 = vector.load %arg16[%c0_115, %c0_116] : memref<10x32xf32, #tpu.memory_space<vmem>>, vector<10x32xf32>
      tpu.vector_store %arg16[%c0_115, %c0_116], %213 {strides = array<i32>} : memref<10x32xf32, #tpu.memory_space<vmem>>, vector<10x32xf32>,
    } else {
    }
    %c0 = arith.constant 0 : index
    %c0_1 = arith.constant 0 : index
    %3 = vector.load %arg16[%c0, %c0_1] : memref<10x32xf32, #tpu.memory_space<vmem>>, vector<10x32xf32>
    %c0_2 = arith.constant 0 : index
    %c0_3 = arith.constant 0 : index
    %c0_4 = arith.constant 0 : index
    %4 = vector.load %arg2[%c0_2, %c0_3, %c0_4] : memref<1x1x32xf32, #tpu.memory_space<vmem>>, vector<1x1x32xf32>
    %5 = vector.shape_cast %4 : vector<1x1x32xf32> to vector<1x32xf32>
    %c0_5 = arith.constant 0 : index
    %c0_6 = arith.constant 0 : index
    %c0_7 = arith.constant 0 : index
    %6 = vector.load %arg3[%c0_5, %c0_6, %c0_7] : memref<1x1x32xf32, #tpu.memory_space<vmem>>, vector<1x1x32xf32>
    %7 = vector.shape_cast %6 : vector<1x1x32xf32> to vector<1x32xf32>
    %cst = arith.constant dense<0.000000e+00> : vector<10xf32>
    %8 = vector.multi_reduction <add>, %3, %cst [1] : vector<10x32xf32> to vector<10xf32>
    %9 = vector.shape_cast %8 : vector<10xf32> to vector<10x1xf32>
    %cst_8 = arith.constant 3.200000e+01 : f32
    %10 = vector.broadcast %cst_8 : f32 to vector<10x1xf32>
    %11 = arith.divf %9, %10 : vector<10x1xf32>
    %12 = vector.broadcast %11 : vector<10x1xf32> to vector<10x32xf32>
    %13 = arith.subf %3, %12 : vector<10x32xf32>
    %14 = arith.mulf %13, %13 : vector<10x32xf32>
    %cst_9 = arith.constant dense<0.000000e+00> : vector<10xf32>
    %15 = vector.multi_reduction <add>, %14, %cst_9 [1] : vector<10x32xf32> to vector<10xf32>
    %16 = vector.shape_cast %15 : vector<10xf32> to vector<10x1xf32>
    %cst_10 = arith.constant 3.200000e+01 : f32
    %17 = vector.broadcast %cst_10 : f32 to vector<10x1xf32>
    %18 = arith.divf %16, %17 : vector<10x1xf32>
    %19 = vector.broadcast %11 : vector<10x1xf32> to vector<10x32xf32>
    %20 = arith.subf %3, %19 : vector<10x32xf32>
    %cst_11 = arith.constant 9.99999974E-6 : f32
    %21 = vector.broadcast %cst_11 : f32 to vector<10x1xf32>
    %22 = arith.addf %18, %21 : vector<10x1xf32>
    %23 = math.rsqrt %22 : vector<10x1xf32>
    %24 = vector.broadcast %23 : vector<10x1xf32> to vector<10x32xf32>
    %25 = arith.mulf %20, %24 : vector<10x32xf32>
    %26 = vector.broadcast %5 : vector<1x32xf32> to vector<10x32xf32>
    %27 = arith.mulf %25, %26 : vector<10x32xf32>
    %28 = vector.broadcast %7 : vector<1x32xf32> to vector<10x32xf32>
    %29 = arith.addf %27, %28 : vector<10x32xf32>
    %30 = arith.truncf %29 : vector<10x32xf32> to vector<10x32xbf16>
    %c0_12 = arith.constant 0 : index
    %c0_13 = arith.constant 0 : index
    %c0_14 = arith.constant 0 : index
    %31 = vector.load %arg4[%c0_12, %c0_13, %c0_14] : memref<1x32x96xbf16, #tpu.memory_space<vmem>>, vector<1x32x96xbf16>
    %32 = vector.shape_cast %31 : vector<1x32x96xbf16> to vector<32x96xbf16>
    %cst_15 = arith.constant dense<0.000000e+00> : vector<10x96xf32>
    %33 = tpu.matmul %30, %32, %cst_15 {dimension_numbers = #tpu.dot_dimension_numbers<[1], [0], [0], [1], [0, 0, 1, 1], [], []>} : vector<10x32xbf16>, vector<32x96xbf16>, vector<10x96xf32> -> vector<10x96xf32>
    %c0_16 = arith.constant 0 : index
    %c0_17 = arith.constant 0 : index
    %34 = vector.load %arg17[%c0_16, %c0_17] : memref<10x96xf32, #tpu.memory_space<vmem>>, vector<10x96xf32>
    tpu.vector_store %arg17[%c0_16, %c0_17], %33 {strides = array<i32>} : memref<10x96xf32, #tpu.memory_space<vmem>>, vector<10x96xf32>,
    %c0_18 = arith.constant 0 : index
    %c0_19 = arith.constant 0 : index
    %35 = vector.load %arg17[%c0_18, %c0_19] : memref<10x96xf32, #tpu.memory_space<vmem>>, vector<5x16xf32>
    %36 = arith.truncf %35 : vector<5x16xf32> to vector<5x16xbf16>
    %c0_20 = arith.constant 0 : index
    %c32 = arith.constant 32 : index
    %37 = vector.load %arg17[%c0_20, %c32] : memref<10x96xf32, #tpu.memory_space<vmem>>, vector<5x16xf32>
    %38 = arith.truncf %37 : vector<5x16xf32> to vector<5x16xbf16>
    %c0_21 = arith.constant 0 : index
    %c64 = arith.constant 64 : index
    %39 = vector.load %arg17[%c0_21, %c64] : memref<10x96xf32, #tpu.memory_space<vmem>>, vector<5x16xf32>
    %40 = arith.truncf %39 : vector<5x16xf32> to vector<5x16xbf16>
    %cst_22 = arith.constant dense<0.000000e+00> : vector<5x5xf32>
    %41 = tpu.matmul %36, %38, %cst_22 {dimension_numbers = #tpu.dot_dimension_numbers<[1], [1], [0], [0], [0, 0, 1, 0], [], []>} : vector<5x16xbf16>, vector<5x16xbf16>, vector<5x5xf32> -> vector<5x5xf32>
    %cst_23 = arith.constant dense<0xFF800000> : vector<5xf32>
    %42 = vector.multi_reduction <maximumf>, %41, %cst_23 [1] : vector<5x5xf32> to vector<5xf32>
    %43 = vector.shape_cast %42 : vector<5xf32> to vector<5x1xf32>
    %44 = vector.broadcast %43 : vector<5x1xf32> to vector<5x5xf32>
    %45 = arith.subf %41, %44 : vector<5x5xf32>
    %46 = math.exp %45 : vector<5x5xf32>
    %cst_24 = arith.constant dense<0.000000e+00> : vector<5xf32>
    %47 = vector.multi_reduction <add>, %46, %cst_24 [1] : vector<5x5xf32> to vector<5xf32>
    %48 = vector.shape_cast %47 : vector<5xf32> to vector<5x1xf32>
    %49 = tpu.reciprocal %48 : vector<5x1xf32> -> vector<5x1xf32>
    %50 = vector.broadcast %49 : vector<5x1xf32> to vector<5x5xf32>
    %51 = arith.mulf %46, %50 : vector<5x5xf32>
    %52 = arith.truncf %51 : vector<5x5xf32> to vector<5x5xbf16>
    %cst_25 = arith.constant dense<0.000000e+00> : vector<5x16xf32>
    %53 = tpu.matmul %52, %40, %cst_25 {dimension_numbers = #tpu.dot_dimension_numbers<[1], [0], [0], [1], [0, 0, 1, 1], [], []>} : vector<5x5xbf16>, vector<5x16xbf16>, vector<5x16xf32> -> vector<5x16xf32>
    %c0_26 = arith.constant 0 : index
    %c0_27 = arith.constant 0 : index
    %54 = vector.load %arg18[%c0_26, %c0_27] : memref<10x32xf32, #tpu.memory_space<vmem>>, vector<5x16xf32>
    tpu.vector_store %arg18[%c0_26, %c0_27], %53 {strides = array<i32>} : memref<10x32xf32, #tpu.memory_space<vmem>>, vector<5x16xf32>,
    %c0_28 = arith.constant 0 : index
    %c16 = arith.constant 16 : index
    %55 = vector.load %arg17[%c0_28, %c16] : memref<10x96xf32, #tpu.memory_space<vmem>>, vector<5x16xf32>
    %56 = arith.truncf %55 : vector<5x16xf32> to vector<5x16xbf16>
    %c0_29 = arith.constant 0 : index
    %c48 = arith.constant 48 : index
    %57 = vector.load %arg17[%c0_29, %c48] : memref<10x96xf32, #tpu.memory_space<vmem>>, vector<5x16xf32>
    %58 = arith.truncf %57 : vector<5x16xf32> to vector<5x16xbf16>
    %c0_30 = arith.constant 0 : index
    %c80 = arith.constant 80 : index
    %59 = vector.load %arg17[%c0_30, %c80] : memref<10x96xf32, #tpu.memory_space<vmem>>, vector<5x16xf32>
    %60 = arith.truncf %59 : vector<5x16xf32> to vector<5x16xbf16>
    %cst_31 = arith.constant dense<0.000000e+00> : vector<5x5xf32>
    %61 = tpu.matmul %56, %58, %cst_31 {dimension_numbers = #tpu.dot_dimension_numbers<[1], [1], [0], [0], [0, 0, 1, 0], [], []>} : vector<5x16xbf16>, vector<5x16xbf16>, vector<5x5xf32> -> vector<5x5xf32>
    %cst_32 = arith.constant dense<0xFF800000> : vector<5xf32>
    %62 = vector.multi_reduction <maximumf>, %61, %cst_32 [1] : vector<5x5xf32> to vector<5xf32>
    %63 = vector.shape_cast %62 : vector<5xf32> to vector<5x1xf32>
    %64 = vector.broadcast %63 : vector<5x1xf32> to vector<5x5xf32>
    %65 = arith.subf %61, %64 : vector<5x5xf32>
    %66 = math.exp %65 : vector<5x5xf32>
    %cst_33 = arith.constant dense<0.000000e+00> : vector<5xf32>
    %67 = vector.multi_reduction <add>, %66, %cst_33 [1] : vector<5x5xf32> to vector<5xf32>
    %68 = vector.shape_cast %67 : vector<5xf32> to vector<5x1xf32>
    %69 = tpu.reciprocal %68 : vector<5x1xf32> -> vector<5x1xf32>
    %70 = vector.broadcast %69 : vector<5x1xf32> to vector<5x5xf32>
    %71 = arith.mulf %66, %70 : vector<5x5xf32>
    %72 = arith.truncf %71 : vector<5x5xf32> to vector<5x5xbf16>
    %cst_34 = arith.constant dense<0.000000e+00> : vector<5x16xf32>
    %73 = tpu.matmul %72, %60, %cst_34 {dimension_numbers = #tpu.dot_dimension_numbers<[1], [0], [0], [1], [0, 0, 1, 1], [], []>} : vector<5x5xbf16>, vector<5x16xbf16>, vector<5x16xf32> -> vector<5x16xf32>
    %c0_35 = arith.constant 0 : index
    %c16_36 = arith.constant 16 : index
    %74 = vector.load %arg18[%c0_35, %c16_36] : memref<10x32xf32, #tpu.memory_space<vmem>>, vector<5x16xf32>
    tpu.vector_store %arg18[%c0_35, %c16_36], %73 {strides = array<i32>} : memref<10x32xf32, #tpu.memory_space<vmem>>, vector<5x16xf32>,
    %c5 = arith.constant 5 : index
    %c0_37 = arith.constant 0 : index
    %75 = vector.load %arg17[%c5, %c0_37] : memref<10x96xf32, #tpu.memory_space<vmem>>, vector<5x16xf32>
    %76 = arith.truncf %75 : vector<5x16xf32> to vector<5x16xbf16>
    %c5_38 = arith.constant 5 : index
    %c32_39 = arith.constant 32 : index
    %77 = vector.load %arg17[%c5_38, %c32_39] : memref<10x96xf32, #tpu.memory_space<vmem>>, vector<5x16xf32>
    %78 = arith.truncf %77 : vector<5x16xf32> to vector<5x16xbf16>
    %c5_40 = arith.constant 5 : index
    %c64_41 = arith.constant 64 : index
    %79 = vector.load %arg17[%c5_40, %c64_41] : memref<10x96xf32, #tpu.memory_space<vmem>>, vector<5x16xf32>
    %80 = arith.truncf %79 : vector<5x16xf32> to vector<5x16xbf16>
    %cst_42 = arith.constant dense<0.000000e+00> : vector<5x5xf32>
    %81 = tpu.matmul %76, %78, %cst_42 {dimension_numbers = #tpu.dot_dimension_numbers<[1], [1], [0], [0], [0, 0, 1, 0], [], []>} : vector<5x16xbf16>, vector<5x16xbf16>, vector<5x5xf32> -> vector<5x5xf32>
    %cst_43 = arith.constant dense<0xFF800000> : vector<5xf32>
    %82 = vector.multi_reduction <maximumf>, %81, %cst_43 [1] : vector<5x5xf32> to vector<5xf32>
    %83 = vector.shape_cast %82 : vector<5xf32> to vector<5x1xf32>
    %84 = vector.broadcast %83 : vector<5x1xf32> to vector<5x5xf32>
    %85 = arith.subf %81, %84 : vector<5x5xf32>
    %86 = math.exp %85 : vector<5x5xf32>
    %cst_44 = arith.constant dense<0.000000e+00> : vector<5xf32>
    %87 = vector.multi_reduction <add>, %86, %cst_44 [1] : vector<5x5xf32> to vector<5xf32>
    %88 = vector.shape_cast %87 : vector<5xf32> to vector<5x1xf32>
    %89 = tpu.reciprocal %88 : vector<5x1xf32> -> vector<5x1xf32>
    %90 = vector.broadcast %89 : vector<5x1xf32> to vector<5x5xf32>
    %91 = arith.mulf %86, %90 : vector<5x5xf32>
    %92 = arith.truncf %91 : vector<5x5xf32> to vector<5x5xbf16>
    %cst_45 = arith.constant dense<0.000000e+00> : vector<5x16xf32>
    %93 = tpu.matmul %92, %80, %cst_45 {dimension_numbers = #tpu.dot_dimension_numbers<[1], [0], [0], [1], [0, 0, 1, 1], [], []>} : vector<5x5xbf16>, vector<5x16xbf16>, vector<5x16xf32> -> vector<5x16xf32>
    %c5_46 = arith.constant 5 : index
    %c0_47 = arith.constant 0 : index
    %94 = vector.load %arg18[%c5_46, %c0_47] : memref<10x32xf32, #tpu.memory_space<vmem>>, vector<5x16xf32>
    tpu.vector_store %arg18[%c5_46, %c0_47], %93 {strides = array<i32>} : memref<10x32xf32, #tpu.memory_space<vmem>>, vector<5x16xf32>,
    %c5_48 = arith.constant 5 : index
    %c16_49 = arith.constant 16 : index
    %95 = vector.load %arg17[%c5_48, %c16_49] : memref<10x96xf32, #tpu.memory_space<vmem>>, vector<5x16xf32>
    %96 = arith.truncf %95 : vector<5x16xf32> to vector<5x16xbf16>
    %c5_50 = arith.constant 5 : index
    %c48_51 = arith.constant 48 : index
    %97 = vector.load %arg17[%c5_50, %c48_51] : memref<10x96xf32, #tpu.memory_space<vmem>>, vector<5x16xf32>
    %98 = arith.truncf %97 : vector<5x16xf32> to vector<5x16xbf16>
    %c5_52 = arith.constant 5 : index
    %c80_53 = arith.constant 80 : index
    %99 = vector.load %arg17[%c5_52, %c80_53] : memref<10x96xf32, #tpu.memory_space<vmem>>, vector<5x16xf32>
    %100 = arith.truncf %99 : vector<5x16xf32> to vector<5x16xbf16>
    %cst_54 = arith.constant dense<0.000000e+00> : vector<5x5xf32>
    %101 = tpu.matmul %96, %98, %cst_54 {dimension_numbers = #tpu.dot_dimension_numbers<[1], [1], [0], [0], [0, 0, 1, 0], [], []>} : vector<5x16xbf16>, vector<5x16xbf16>, vector<5x5xf32> -> vector<5x5xf32>
    %cst_55 = arith.constant dense<0xFF800000> : vector<5xf32>
    %102 = vector.multi_reduction <maximumf>, %101, %cst_55 [1] : vector<5x5xf32> to vector<5xf32>
    %103 = vector.shape_cast %102 : vector<5xf32> to vector<5x1xf32>
    %104 = vector.broadcast %103 : vector<5x1xf32> to vector<5x5xf32>
    %105 = arith.subf %101, %104 : vector<5x5xf32>
    %106 = math.exp %105 : vector<5x5xf32>
    %cst_56 = arith.constant dense<0.000000e+00> : vector<5xf32>
    %107 = vector.multi_reduction <add>, %106, %cst_56 [1] : vector<5x5xf32> to vector<5xf32>
    %108 = vector.shape_cast %107 : vector<5xf32> to vector<5x1xf32>
    %109 = tpu.reciprocal %108 : vector<5x1xf32> -> vector<5x1xf32>
    %110 = vector.broadcast %109 : vector<5x1xf32> to vector<5x5xf32>
    %111 = arith.mulf %106, %110 : vector<5x5xf32>
    %112 = arith.truncf %111 : vector<5x5xf32> to vector<5x5xbf16>
    %cst_57 = arith.constant dense<0.000000e+00> : vector<5x16xf32>
    %113 = tpu.matmul %112, %100, %cst_57 {dimension_numbers = #tpu.dot_dimension_numbers<[1], [0], [0], [1], [0, 0, 1, 1], [], []>} : vector<5x5xbf16>, vector<5x16xbf16>, vector<5x16xf32> -> vector<5x16xf32>
    %c5_58 = arith.constant 5 : index
    %c16_59 = arith.constant 16 : index
    %114 = vector.load %arg18[%c5_58, %c16_59] : memref<10x32xf32, #tpu.memory_space<vmem>>, vector<5x16xf32>
    tpu.vector_store %arg18[%c5_58, %c16_59], %113 {strides = array<i32>} : memref<10x32xf32, #tpu.memory_space<vmem>>, vector<5x16xf32>,
    %c0_60 = arith.constant 0 : index
    %c0_61 = arith.constant 0 : index
    %115 = vector.load %arg18[%c0_60, %c0_61] : memref<10x32xf32, #tpu.memory_space<vmem>>, vector<10x32xf32>
    %116 = arith.truncf %115 : vector<10x32xf32> to vector<10x32xbf16>
    %c0_62 = arith.constant 0 : index
    %c0_63 = arith.constant 0 : index
    %c0_64 = arith.constant 0 : index
    %117 = vector.load %arg5[%c0_62, %c0_63, %c0_64] : memref<1x32x32xbf16, #tpu.memory_space<vmem>>, vector<1x32x32xbf16>
    %118 = vector.shape_cast %117 : vector<1x32x32xbf16> to vector<32x32xbf16>
    %cst_65 = arith.constant dense<0.000000e+00> : vector<10x32xf32>
    %119 = tpu.matmul %116, %118, %cst_65 {dimension_numbers = #tpu.dot_dimension_numbers<[1], [0], [0], [1], [0, 0, 1, 1], [], []>} : vector<10x32xbf16>, vector<32x32xbf16>, vector<10x32xf32> -> vector<10x32xf32>
    %c0_66 = arith.constant 0 : index
    %c0_67 = arith.constant 0 : index
    %c0_68 = arith.constant 0 : index
    %120 = vector.load %arg6[%c0_66, %c0_67, %c0_68] : memref<1x1x32xf32, #tpu.memory_space<vmem>>, vector<1x1x32xf32>
    %121 = vector.shape_cast %120 : vector<1x1x32xf32> to vector<1x32xf32>
    %122 = vector.broadcast %121 : vector<1x32xf32> to vector<10x32xf32>
    %123 = arith.addf %119, %122 : vector<10x32xf32>
    %124 = arith.addf %3, %123 : vector<10x32xf32>
    %c0_69 = arith.constant 0 : index
    %c0_70 = arith.constant 0 : index
    %c0_71 = arith.constant 0 : index
    %125 = vector.load %arg7[%c0_69, %c0_70, %c0_71] : memref<1x1x32xf32, #tpu.memory_space<vmem>>, vector<1x1x32xf32>
    %126 = vector.shape_cast %125 : vector<1x1x32xf32> to vector<1x32xf32>
    %c0_72 = arith.constant 0 : index
    %c0_73 = arith.constant 0 : index
    %c0_74 = arith.constant 0 : index
    %127 = vector.load %arg8[%c0_72, %c0_73, %c0_74] : memref<1x1x32xf32, #tpu.memory_space<vmem>>, vector<1x1x32xf32>
    %128 = vector.shape_cast %127 : vector<1x1x32xf32> to vector<1x32xf32>
    %cst_75 = arith.constant dense<0.000000e+00> : vector<10xf32>
    %129 = vector.multi_reduction <add>, %124, %cst_75 [1] : vector<10x32xf32> to vector<10xf32>
    %130 = vector.shape_cast %129 : vector<10xf32> to vector<10x1xf32>
    %cst_76 = arith.constant 3.200000e+01 : f32
    %131 = vector.broadcast %cst_76 : f32 to vector<10x1xf32>
    %132 = arith.divf %130, %131 : vector<10x1xf32>
    %133 = vector.broadcast %132 : vector<10x1xf32> to vector<10x32xf32>
    %134 = arith.subf %124, %133 : vector<10x32xf32>
    %135 = arith.mulf %134, %134 : vector<10x32xf32>
    %cst_77 = arith.constant dense<0.000000e+00> : vector<10xf32>
    %136 = vector.multi_reduction <add>, %135, %cst_77 [1] : vector<10x32xf32> to vector<10xf32>
    %137 = vector.shape_cast %136 : vector<10xf32> to vector<10x1xf32>
    %cst_78 = arith.constant 3.200000e+01 : f32
    %138 = vector.broadcast %cst_78 : f32 to vector<10x1xf32>
    %139 = arith.divf %137, %138 : vector<10x1xf32>
    %140 = vector.broadcast %132 : vector<10x1xf32> to vector<10x32xf32>
    %141 = arith.subf %124, %140 : vector<10x32xf32>
    %cst_79 = arith.constant 9.99999974E-6 : f32
    %142 = vector.broadcast %cst_79 : f32 to vector<10x1xf32>
    %143 = arith.addf %139, %142 : vector<10x1xf32>
    %144 = math.rsqrt %143 : vector<10x1xf32>
    %145 = vector.broadcast %144 : vector<10x1xf32> to vector<10x32xf32>
    %146 = arith.mulf %141, %145 : vector<10x32xf32>
    %147 = vector.broadcast %126 : vector<1x32xf32> to vector<10x32xf32>
    %148 = arith.mulf %146, %147 : vector<10x32xf32>
    %149 = vector.broadcast %128 : vector<1x32xf32> to vector<10x32xf32>
    %150 = arith.addf %148, %149 : vector<10x32xf32>
    %151 = arith.truncf %150 : vector<10x32xf32> to vector<10x32xbf16>
    %c0_80 = arith.constant 0 : index
    %c0_81 = arith.constant 0 : index
    %c0_82 = arith.constant 0 : index
    %152 = vector.load %arg9[%c0_80, %c0_81, %c0_82] : memref<1x32x64xbf16, #tpu.memory_space<vmem>>, vector<1x32x64xbf16>
    %153 = vector.shape_cast %152 : vector<1x32x64xbf16> to vector<32x64xbf16>
    %cst_83 = arith.constant dense<0.000000e+00> : vector<10x64xf32>
    %154 = tpu.matmul %151, %153, %cst_83 {dimension_numbers = #tpu.dot_dimension_numbers<[1], [0], [0], [1], [0, 0, 1, 1], [], []>} : vector<10x32xbf16>, vector<32x64xbf16>, vector<10x64xf32> -> vector<10x64xf32>
    %c0_84 = arith.constant 0 : index
    %c0_85 = arith.constant 0 : index
    %c0_86 = arith.constant 0 : index
    %155 = vector.load %arg10[%c0_84, %c0_85, %c0_86] : memref<1x1x64xf32, #tpu.memory_space<vmem>>, vector<1x1x64xf32>
    %156 = vector.shape_cast %155 : vector<1x1x64xf32> to vector<1x64xf32>
    %157 = vector.broadcast %156 : vector<1x64xf32> to vector<10x64xf32>
    %158 = arith.addf %154, %157 : vector<10x64xf32>
    %cst_87 = arith.constant 5.000000e-01 : f32
    %159 = vector.broadcast %cst_87 : f32 to vector<10x64xf32>
    %160 = arith.mulf %159, %158 : vector<10x64xf32>
    %cst_88 = arith.constant 0.707106769 : f32
    %161 = vector.broadcast %cst_88 : f32 to vector<10x64xf32>
    %162 = arith.mulf %158, %161 : vector<10x64xf32>
    %cst_89 = arith.constant 0.000000e+00 : f32
    %163 = vector.broadcast %cst_89 : f32 to vector<10x64xf32>
    %164 = arith.cmpf oge, %162, %163 : vector<10x64xf32>
    %cst_90 = arith.constant 1.000000e+00 : f32
    %cst_91 = arith.constant -1.000000e+00 : f32
    %165 = vector.broadcast %cst_90 : f32 to vector<10x64xf32>
    %166 = vector.broadcast %cst_91 : f32 to vector<10x64xf32>
    %167 = arith.select %164, %165, %166 : vector<10x64xi1>, vector<10x64xf32>
    %168 = arith.mulf %167, %162 : vector<10x64xf32>
    %cst_92 = arith.constant 0.327591091 : f32
    %169 = vector.broadcast %cst_92 : f32 to vector<10x64xf32>
    %170 = arith.mulf %169, %168 : vector<10x64xf32>
    %cst_93 = arith.constant 1.000000e+00 : f32
    %171 = vector.broadcast %cst_93 : f32 to vector<10x64xf32>
    %172 = arith.addf %171, %170 : vector<10x64xf32>
    %cst_94 = arith.constant 1.000000e+00 : f32
    %173 = vector.broadcast %cst_94 : f32 to vector<10x64xf32>
    %174 = arith.divf %173, %172 : vector<10x64xf32>
    %cst_95 = arith.constant 1.06140542 : f32
    %175 = vector.broadcast %cst_95 : f32 to vector<10x64xf32>
    %176 = arith.mulf %175, %174 : vector<10x64xf32>
    %cst_96 = arith.constant -1.45315206 : f32
    %177 = vector.broadcast %cst_96 : f32 to vector<10x64xf32>
    %178 = arith.addf %176, %177 : vector<10x64xf32>
    %179 = arith.mulf %178, %174 : vector<10x64xf32>
    %cst_97 = arith.constant 1.42141378 : f32
    %180 = vector.broadcast %cst_97 : f32 to vector<10x64xf32>
    %181 = arith.addf %179, %180 : vector<10x64xf32>
    %182 = arith.mulf %181, %174 : vector<10x64xf32>
    %cst_98 = arith.constant -0.284496725 : f32
    %183 = vector.broadcast %cst_98 : f32 to vector<10x64xf32>
    %184 = arith.addf %182, %183 : vector<10x64xf32>
    %185 = arith.mulf %184, %174 : vector<10x64xf32>
    %cst_99 = arith.constant 0.254829586 : f32
    %186 = vector.broadcast %cst_99 : f32 to vector<10x64xf32>
    %187 = arith.addf %185, %186 : vector<10x64xf32>
    %188 = arith.mulf %187, %174 : vector<10x64xf32>
    %cst_100 = arith.constant 0.000000e+00 : f32
    %189 = vector.broadcast %cst_100 : f32 to vector<10x64xf32>
    %190 = arith.subf %189, %168 : vector<10x64xf32>
    %191 = arith.mulf %190, %168 : vector<10x64xf32>
    %192 = math.exp %191 : vector<10x64xf32>
    %193 = arith.mulf %188, %192 : vector<10x64xf32>
    %cst_101 = arith.constant 1.000000e+00 : f32
    %194 = vector.broadcast %cst_101 : f32 to vector<10x64xf32>
    %195 = arith.subf %194, %193 : vector<10x64xf32>
    %196 = arith.mulf %167, %195 : vector<10x64xf32>
    %cst_102 = arith.constant 1.000000e+00 : f32
    %197 = vector.broadcast %cst_102 : f32 to vector<10x64xf32>
    %198 = arith.addf %197, %196 : vector<10x64xf32>
    %199 = arith.mulf %160, %198 : vector<10x64xf32>
    %200 = arith.truncf %199 : vector<10x64xf32> to vector<10x64xbf16>
    %c0_103 = arith.constant 0 : index
    %c0_104 = arith.constant 0 : index
    %c0_105 = arith.constant 0 : index
    %201 = vector.load %arg11[%c0_103, %c0_104, %c0_105] : memref<1x64x32xbf16, #tpu.memory_space<vmem>>, vector<1x64x32xbf16>
    %202 = vector.shape_cast %201 : vector<1x64x32xbf16> to vector<64x32xbf16>
    %cst_106 = arith.constant dense<0.000000e+00> : vector<10x32xf32>
    %203 = tpu.matmul %200, %202, %cst_106 {dimension_numbers = #tpu.dot_dimension_numbers<[1], [0], [0], [1], [0, 0, 1, 1], [], []>} : vector<10x64xbf16>, vector<64x32xbf16>, vector<10x32xf32> -> vector<10x32xf32>
    %c0_107 = arith.constant 0 : index
    %c0_108 = arith.constant 0 : index
    %c0_109 = arith.constant 0 : index
    %204 = vector.load %arg12[%c0_107, %c0_108, %c0_109] : memref<1x1x32xf32, #tpu.memory_space<vmem>>, vector<1x1x32xf32>
    %205 = vector.shape_cast %204 : vector<1x1x32xf32> to vector<1x32xf32>
    %206 = vector.broadcast %205 : vector<1x32xf32> to vector<10x32xf32>
    %207 = arith.addf %203, %206 : vector<10x32xf32>
    %208 = arith.addf %124, %207 : vector<10x32xf32>
    %c0_110 = arith.constant 0 : index
    %c0_111 = arith.constant 0 : index
    %209 = vector.load %arg16[%c0_110, %c0_111] : memref<10x32xf32, #tpu.memory_space<vmem>>, vector<10x32xf32>
    tpu.vector_store %arg16[%c0_110, %c0_111], %208 {strides = array<i32>} : memref<10x32xf32, #tpu.memory_space<vmem>>, vector<10x32xf32>,
    %c1_i32 = arith.constant 1 : i32
    %210 = arith.cmpi eq, %arg0, %c1_i32 : i32
    %211 = arith.extui %210 : i1 to i32
    %c0_i32_112 = arith.constant 0 : i32
    %212 = arith.cmpi ne, %211, %c0_i32_112 : i32
    scf.if %212 {
      %c0_113 = arith.constant 0 : index
      %c0_114 = arith.constant 0 : index
      %213 = vector.load %arg13[%c0_113, %c0_114] : memref<1x32xf32, #tpu.memory_space<vmem>>, vector<1x32xf32>
      %c0_115 = arith.constant 0 : index
      %c0_116 = arith.constant 0 : index
      %214 = vector.load %arg14[%c0_115, %c0_116] : memref<1x32xf32, #tpu.memory_space<vmem>>, vector<1x32xf32>
      %cst_117 = arith.constant dense<0.000000e+00> : vector<10xf32>
      %215 = vector.multi_reduction <add>, %208, %cst_117 [1] : vector<10x32xf32> to vector<10xf32>
      %216 = vector.shape_cast %215 : vector<10xf32> to vector<10x1xf32>
      %cst_118 = arith.constant 3.200000e+01 : f32
      %217 = vector.broadcast %cst_118 : f32 to vector<10x1xf32>
      %218 = arith.divf %216, %217 : vector<10x1xf32>
      %219 = vector.broadcast %218 : vector<10x1xf32> to vector<10x32xf32>
      %220 = arith.subf %208, %219 : vector<10x32xf32>
      %221 = arith.mulf %220, %220 : vector<10x32xf32>
      %cst_119 = arith.constant dense<0.000000e+00> : vector<10xf32>
      %222 = vector.multi_reduction <add>, %221, %cst_119 [1] : vector<10x32xf32> to vector<10xf32>
      %223 = vector.shape_cast %222 : vector<10xf32> to vector<10x1xf32>
      %cst_120 = arith.constant 3.200000e+01 : f32
      %224 = vector.broadcast %cst_120 : f32 to vector<10x1xf32>
      %225 = arith.divf %223, %224 : vector<10x1xf32>
      %226 = vector.broadcast %218 : vector<10x1xf32> to vector<10x32xf32>
      %227 = arith.subf %208, %226 : vector<10x32xf32>
      %cst_121 = arith.constant 9.99999974E-6 : f32
      %228 = vector.broadcast %cst_121 : f32 to vector<10x1xf32>
      %229 = arith.addf %225, %228 : vector<10x1xf32>
      %230 = math.rsqrt %229 : vector<10x1xf32>
      %231 = vector.broadcast %230 : vector<10x1xf32> to vector<10x32xf32>
      %232 = arith.mulf %227, %231 : vector<10x32xf32>
      %233 = vector.broadcast %213 : vector<1x32xf32> to vector<10x32xf32>
      %234 = arith.mulf %232, %233 : vector<10x32xf32>
      %235 = vector.broadcast %214 : vector<1x32xf32> to vector<10x32xf32>
      %236 = arith.addf %234, %235 : vector<10x32xf32>
      %c0_122 = arith.constant 0 : index
      %c0_123 = arith.constant 0 : index
      %237 = vector.load %arg15[%c0_122, %c0_123] : memref<10x32xf32, #tpu.memory_space<vmem>>, vector<10x32xf32>
      tpu.vector_store %arg15[%c0_122, %c0_123], %236 {strides = array<i32>} : memref<10x32xf32, #tpu.memory_space<vmem>>, vector<10x32xf32>,
    } else {
    }
    return
  }
  func.func @transform_0(%arg0: i32) -> (i32, i32) {
    %c0_i32 = arith.constant 0 : i32
    %c0_i32_0 = arith.constant 0 : i32
    %c0_i32_1 = arith.constant 0 : i32
    return %c0_i32, %c0_i32_0 : i32, i32
  }
  func.func @transform_1(%arg0: i32) -> (i32, i32, i32) {
    %c0_i32 = arith.constant 0 : i32
    %c0_i32_0 = arith.constant 0 : i32
    %c0_i32_1 = arith.constant 0 : i32
    return %arg0, %c0_i32, %c0_i32_0 : i32, i32, i32
  }
  func.func @transform_2(%arg0: i32) -> (i32, i32, i32) {
    %c0_i32 = arith.constant 0 : i32
    %c0_i32_0 = arith.constant 0 : i32
    %c0_i32_1 = arith.constant 0 : i32
    return %arg0, %c0_i32, %c0_i32_0 : i32, i32, i32
  }
  func.func @transform_3(%arg0: i32) -> (i32, i32, i32) {
    %c0_i32 = arith.constant 0 : i32
    %c0_i32_0 = arith.constant 0 : i32
    %c0_i32_1 = arith.constant 0 : i32
    return %arg0, %c0_i32, %c0_i32_0 : i32, i32, i32
  }
  func.func @transform_4(%arg0: i32) -> (i32, i32, i32) {
    %c0_i32 = arith.constant 0 : i32
    %c0_i32_0 = arith.constant 0 : i32
    %c0_i32_1 = arith.constant 0 : i32
    return %arg0, %c0_i32, %c0_i32_0 : i32, i32, i32
  }
  func.func @transform_5(%arg0: i32) -> (i32, i32, i32) {
    %c0_i32 = arith.constant 0 : i32
    %c0_i32_0 = arith.constant 0 : i32
    %c0_i32_1 = arith.constant 0 : i32
    return %arg0, %c0_i32, %c0_i32_0 : i32, i32, i32
  }
  func.func @transform_6(%arg0: i32) -> (i32, i32, i32) {
    %c0_i32 = arith.constant 0 : i32
    %c0_i32_0 = arith.constant 0 : i32
    %c0_i32_1 = arith.constant 0 : i32
    return %arg0, %c0_i32, %c0_i32_0 : i32, i32, i32
  }
  func.func @transform_7(%arg0: i32) -> (i32, i32, i32) {
    %c0_i32 = arith.constant 0 : i32
    %c0_i32_0 = arith.constant 0 : i32
    %c0_i32_1 = arith.constant 0 : i32
    return %arg0, %c0_i32, %c0_i32_0 : i32, i32, i32
  }
  func.func @transform_8(%arg0: i32) -> (i32, i32, i32) {
    %c0_i32 = arith.constant 0 : i32
    %c0_i32_0 = arith.constant 0 : i32
    %c0_i32_1 = arith.constant 0 : i32
    return %arg0, %c0_i32, %c0_i32_0 : i32, i32, i32
  }
  func.func @transform_9(%arg0: i32) -> (i32, i32, i32) {
    %c0_i32 = arith.constant 0 : i32
    %c0_i32_0 = arith.constant 0 : i32
    %c0_i32_1 = arith.constant 0 : i32
    return %arg0, %c0_i32, %c0_i32_0 : i32, i32, i32
  }
  func.func @transform_10(%arg0: i32) -> (i32, i32, i32) {
    %c0_i32 = arith.constant 0 : i32
    %c0_i32_0 = arith.constant 0 : i32
    %c0_i32_1 = arith.constant 0 : i32
    return %arg0, %c0_i32, %c0_i32_0 : i32, i32, i32
  }
  func.func @transform_11(%arg0: i32) -> (i32, i32, i32) {
    %c0_i32 = arith.constant 0 : i32
    %c0_i32_0 = arith.constant 0 : i32
    %c0_i32_1 = arith.constant 0 : i32
    return %arg0, %c0_i32, %c0_i32_0 : i32, i32, i32
  }
  func.func @transform_12(%arg0: i32) -> (i32, i32) {
    %c0_i32 = arith.constant 0 : i32
    %c0_i32_0 = arith.constant 0 : i32
    %c0_i32_1 = arith.constant 0 : i32
    return %c0_i32, %c0_i32_0 : i32, i32
  }
  func.func @transform_13(%arg0: i32) -> (i32, i32) {
    %c0_i32 = arith.constant 0 : i32
    %c0_i32_0 = arith.constant 0 : i32
    %c0_i32_1 = arith.constant 0 : i32
    return %c0_i32, %c0_i32_0 : i32, i32
  }
  func.func @transform_14(%arg0: i32) -> (i32, i32) {
    %c0_i32 = arith.constant 0 : i32
    %c0_i32_0 = arith.constant 0 : i32
    %c0_i32_1 = arith.constant 0 : i32
    return %c0_i32, %c0_i32_0 : i32, i32
  }
}

module attributes {stable_mosaic.version = 11 : i64} {
  func.func @_transformer_kernel(%arg0: i32, %arg1: memref<40x32xf32, #tpu.memory_space<vmem>>, %arg2: memref<1x1x32xf32, #tpu.memory_space<vmem>>, %arg3: memref<1x1x32xf32, #tpu.memory_space<vmem>>, %arg4: memref<1x32x96xbf16, #tpu.memory_space<vmem>>, %arg5: memref<1x32x32xbf16, #tpu.memory_space<vmem>>, %arg6: memref<1x1x32xf32, #tpu.memory_space<vmem>>, %arg7: memref<1x1x32xf32, #tpu.memory_space<vmem>>, %arg8: memref<1x1x32xf32, #tpu.memory_space<vmem>>, %arg9: memref<1x32x64xbf16, #tpu.memory_space<vmem>>, %arg10: memref<1x1x64xf32, #tpu.memory_space<vmem>>, %arg11: memref<1x64x32xbf16, #tpu.memory_space<vmem>>, %arg12: memref<1x1x32xf32, #tpu.memory_space<vmem>>, %arg13: memref<1x32xf32, #tpu.memory_space<vmem>>, %arg14: memref<1x32xf32, #tpu.memory_space<vmem>>, %arg15: memref<40x32xf32, #tpu.memory_space<vmem>>, %arg16: memref<40x32xf32, #tpu.memory_space<vmem>>, %arg17: memref<40x96xf32, #tpu.memory_space<vmem>>, %arg18: memref<40x32xf32, #tpu.memory_space<vmem>>) attributes {dimension_semantics = [#tpu.dimension_semantics<arbitrary>], iteration_bounds = array<i64: 2>, scalar_prefetch = 0 : i64, scratch_operands = 3 : i64, tpu.core_type = #tpu.core_type<tc>, window_params = [{pipeline_mode = #tpu.pipeline_mode<synchronous>, transform_indices = @transform_0, window_bounds = array<i64: 40, 32>}, {transform_indices = @transform_1, window_bounds = array<i64: 1, 1, 32>}, {transform_indices = @transform_2, window_bounds = array<i64: 1, 1, 32>}, {transform_indices = @transform_3, window_bounds = array<i64: 1, 32, 96>}, {transform_indices = @transform_4, window_bounds = array<i64: 1, 32, 32>}, {transform_indices = @transform_5, window_bounds = array<i64: 1, 1, 32>}, {transform_indices = @transform_6, window_bounds = array<i64: 1, 1, 32>}, {transform_indices = @transform_7, window_bounds = array<i64: 1, 1, 32>}, {transform_indices = @transform_8, window_bounds = array<i64: 1, 32, 64>}, {transform_indices = @transform_9, window_bounds = array<i64: 1, 1, 64>}, {transform_indices = @transform_10, window_bounds = array<i64: 1, 64, 32>}, {transform_indices = @transform_11, window_bounds = array<i64: 1, 1, 32>}, {pipeline_mode = #tpu.pipeline_mode<synchronous>, transform_indices = @transform_12, window_bounds = array<i64: 1, 32>}, {pipeline_mode = #tpu.pipeline_mode<synchronous>, transform_indices = @transform_13, window_bounds = array<i64: 1, 32>}, {pipeline_mode = #tpu.pipeline_mode<synchronous>, transform_indices = @transform_14, window_bounds = array<i64: 40, 32>}]} {
    %c0_i32 = arith.constant 0 : i32
    %0 = arith.cmpi eq, %arg0, %c0_i32 : i32
    %1 = arith.extui %0 : i1 to i32
    %c0_i32_0 = arith.constant 0 : i32
    %2 = arith.cmpi ne, %1, %c0_i32_0 : i32
    scf.if %2 {
      %c0_251 = arith.constant 0 : index
      %c0_252 = arith.constant 0 : index
      %453 = vector.load %arg1[%c0_251, %c0_252] : memref<40x32xf32, #tpu.memory_space<vmem>>, vector<40x32xf32>
      %c0_253 = arith.constant 0 : index
      %c0_254 = arith.constant 0 : index
      %454 = vector.load %arg16[%c0_253, %c0_254] : memref<40x32xf32, #tpu.memory_space<vmem>>, vector<40x32xf32>
      tpu.vector_store %arg16[%c0_253, %c0_254], %453 {strides = array<i32>} : memref<40x32xf32, #tpu.memory_space<vmem>>, vector<40x32xf32>,
    } else {
    }
    %c0 = arith.constant 0 : index
    %c0_1 = arith.constant 0 : index
    %3 = vector.load %arg16[%c0, %c0_1] : memref<40x32xf32, #tpu.memory_space<vmem>>, vector<40x32xf32>
    %c0_2 = arith.constant 0 : index
    %c0_3 = arith.constant 0 : index
    %c0_4 = arith.constant 0 : index
    %4 = vector.load %arg2[%c0_2, %c0_3, %c0_4] : memref<1x1x32xf32, #tpu.memory_space<vmem>>, vector<1x1x32xf32>
    %5 = vector.shape_cast %4 : vector<1x1x32xf32> to vector<1x32xf32>
    %c0_5 = arith.constant 0 : index
    %c0_6 = arith.constant 0 : index
    %c0_7 = arith.constant 0 : index
    %6 = vector.load %arg3[%c0_5, %c0_6, %c0_7] : memref<1x1x32xf32, #tpu.memory_space<vmem>>, vector<1x1x32xf32>
    %7 = vector.shape_cast %6 : vector<1x1x32xf32> to vector<1x32xf32>
    %cst = arith.constant dense<0.000000e+00> : vector<40xf32>
    %8 = vector.multi_reduction <add>, %3, %cst [1] : vector<40x32xf32> to vector<40xf32>
    %9 = vector.shape_cast %8 : vector<40xf32> to vector<40x1xf32>
    %cst_8 = arith.constant 3.200000e+01 : f32
    %10 = vector.broadcast %cst_8 : f32 to vector<40x1xf32>
    %11 = arith.divf %9, %10 : vector<40x1xf32>
    %12 = vector.broadcast %11 : vector<40x1xf32> to vector<40x32xf32>
    %13 = arith.subf %3, %12 : vector<40x32xf32>
    %14 = arith.mulf %13, %13 : vector<40x32xf32>
    %cst_9 = arith.constant dense<0.000000e+00> : vector<40xf32>
    %15 = vector.multi_reduction <add>, %14, %cst_9 [1] : vector<40x32xf32> to vector<40xf32>
    %16 = vector.shape_cast %15 : vector<40xf32> to vector<40x1xf32>
    %cst_10 = arith.constant 3.200000e+01 : f32
    %17 = vector.broadcast %cst_10 : f32 to vector<40x1xf32>
    %18 = arith.divf %16, %17 : vector<40x1xf32>
    %19 = vector.broadcast %11 : vector<40x1xf32> to vector<40x32xf32>
    %20 = arith.subf %3, %19 : vector<40x32xf32>
    %cst_11 = arith.constant 9.99999974E-6 : f32
    %21 = vector.broadcast %cst_11 : f32 to vector<40x1xf32>
    %22 = arith.addf %18, %21 : vector<40x1xf32>
    %23 = math.rsqrt %22 : vector<40x1xf32>
    %24 = vector.broadcast %23 : vector<40x1xf32> to vector<40x32xf32>
    %25 = arith.mulf %20, %24 : vector<40x32xf32>
    %26 = vector.broadcast %5 : vector<1x32xf32> to vector<40x32xf32>
    %27 = arith.mulf %25, %26 : vector<40x32xf32>
    %28 = vector.broadcast %7 : vector<1x32xf32> to vector<40x32xf32>
    %29 = arith.addf %27, %28 : vector<40x32xf32>
    %30 = arith.truncf %29 : vector<40x32xf32> to vector<40x32xbf16>
    %c0_12 = arith.constant 0 : index
    %c0_13 = arith.constant 0 : index
    %c0_14 = arith.constant 0 : index
    %31 = vector.load %arg4[%c0_12, %c0_13, %c0_14] : memref<1x32x96xbf16, #tpu.memory_space<vmem>>, vector<1x32x96xbf16>
    %32 = vector.shape_cast %31 : vector<1x32x96xbf16> to vector<32x96xbf16>
    %cst_15 = arith.constant dense<0.000000e+00> : vector<40x96xf32>
    %33 = tpu.matmul %30, %32, %cst_15 {dimension_numbers = #tpu.dot_dimension_numbers<[1], [0], [0], [1], [0, 0, 1, 1], [], []>} : vector<40x32xbf16>, vector<32x96xbf16>, vector<40x96xf32> -> vector<40x96xf32>
    %c0_16 = arith.constant 0 : index
    %c0_17 = arith.constant 0 : index
    %34 = vector.load %arg17[%c0_16, %c0_17] : memref<40x96xf32, #tpu.memory_space<vmem>>, vector<40x96xf32>
    tpu.vector_store %arg17[%c0_16, %c0_17], %33 {strides = array<i32>} : memref<40x96xf32, #tpu.memory_space<vmem>>, vector<40x96xf32>,
    %c0_18 = arith.constant 0 : index
    %c0_19 = arith.constant 0 : index
    %35 = vector.load %arg17[%c0_18, %c0_19] : memref<40x96xf32, #tpu.memory_space<vmem>>, vector<5x16xf32>
    %36 = arith.truncf %35 : vector<5x16xf32> to vector<5x16xbf16>
    %c0_20 = arith.constant 0 : index
    %c32 = arith.constant 32 : index
    %37 = vector.load %arg17[%c0_20, %c32] : memref<40x96xf32, #tpu.memory_space<vmem>>, vector<5x16xf32>
    %38 = arith.truncf %37 : vector<5x16xf32> to vector<5x16xbf16>
    %c0_21 = arith.constant 0 : index
    %c64 = arith.constant 64 : index
    %39 = vector.load %arg17[%c0_21, %c64] : memref<40x96xf32, #tpu.memory_space<vmem>>, vector<5x16xf32>
    %40 = arith.truncf %39 : vector<5x16xf32> to vector<5x16xbf16>
    %cst_22 = arith.constant dense<0.000000e+00> : vector<5x5xf32>
    %41 = tpu.matmul %36, %38, %cst_22 {dimension_numbers = #tpu.dot_dimension_numbers<[1], [1], [0], [0], [0, 0, 1, 0], [], []>} : vector<5x16xbf16>, vector<5x16xbf16>, vector<5x5xf32> -> vector<5x5xf32>
    %cst_23 = arith.constant dense<0xFF800000> : vector<5xf32>
    %42 = vector.multi_reduction <maximumf>, %41, %cst_23 [1] : vector<5x5xf32> to vector<5xf32>
    %43 = vector.shape_cast %42 : vector<5xf32> to vector<5x1xf32>
    %44 = vector.broadcast %43 : vector<5x1xf32> to vector<5x5xf32>
    %45 = arith.subf %41, %44 : vector<5x5xf32>
    %46 = math.exp %45 : vector<5x5xf32>
    %cst_24 = arith.constant dense<0.000000e+00> : vector<5xf32>
    %47 = vector.multi_reduction <add>, %46, %cst_24 [1] : vector<5x5xf32> to vector<5xf32>
    %48 = vector.shape_cast %47 : vector<5xf32> to vector<5x1xf32>
    %49 = tpu.reciprocal %48 : vector<5x1xf32> -> vector<5x1xf32>
    %50 = vector.broadcast %49 : vector<5x1xf32> to vector<5x5xf32>
    %51 = arith.mulf %46, %50 : vector<5x5xf32>
    %52 = arith.truncf %51 : vector<5x5xf32> to vector<5x5xbf16>
    %cst_25 = arith.constant dense<0.000000e+00> : vector<5x16xf32>
    %53 = tpu.matmul %52, %40, %cst_25 {dimension_numbers = #tpu.dot_dimension_numbers<[1], [0], [0], [1], [0, 0, 1, 1], [], []>} : vector<5x5xbf16>, vector<5x16xbf16>, vector<5x16xf32> -> vector<5x16xf32>
    %c0_26 = arith.constant 0 : index
    %c0_27 = arith.constant 0 : index
    %54 = vector.load %arg18[%c0_26, %c0_27] : memref<40x32xf32, #tpu.memory_space<vmem>>, vector<5x16xf32>
    tpu.vector_store %arg18[%c0_26, %c0_27], %53 {strides = array<i32>} : memref<40x32xf32, #tpu.memory_space<vmem>>, vector<5x16xf32>,
    %c0_28 = arith.constant 0 : index
    %c16 = arith.constant 16 : index
    %55 = vector.load %arg17[%c0_28, %c16] : memref<40x96xf32, #tpu.memory_space<vmem>>, vector<5x16xf32>
    %56 = arith.truncf %55 : vector<5x16xf32> to vector<5x16xbf16>
    %c0_29 = arith.constant 0 : index
    %c48 = arith.constant 48 : index
    %57 = vector.load %arg17[%c0_29, %c48] : memref<40x96xf32, #tpu.memory_space<vmem>>, vector<5x16xf32>
    %58 = arith.truncf %57 : vector<5x16xf32> to vector<5x16xbf16>
    %c0_30 = arith.constant 0 : index
    %c80 = arith.constant 80 : index
    %59 = vector.load %arg17[%c0_30, %c80] : memref<40x96xf32, #tpu.memory_space<vmem>>, vector<5x16xf32>
    %60 = arith.truncf %59 : vector<5x16xf32> to vector<5x16xbf16>
    %cst_31 = arith.constant dense<0.000000e+00> : vector<5x5xf32>
    %61 = tpu.matmul %56, %58, %cst_31 {dimension_numbers = #tpu.dot_dimension_numbers<[1], [1], [0], [0], [0, 0, 1, 0], [], []>} : vector<5x16xbf16>, vector<5x16xbf16>, vector<5x5xf32> -> vector<5x5xf32>
    %cst_32 = arith.constant dense<0xFF800000> : vector<5xf32>
    %62 = vector.multi_reduction <maximumf>, %61, %cst_32 [1] : vector<5x5xf32> to vector<5xf32>
    %63 = vector.shape_cast %62 : vector<5xf32> to vector<5x1xf32>
    %64 = vector.broadcast %63 : vector<5x1xf32> to vector<5x5xf32>
    %65 = arith.subf %61, %64 : vector<5x5xf32>
    %66 = math.exp %65 : vector<5x5xf32>
    %cst_33 = arith.constant dense<0.000000e+00> : vector<5xf32>
    %67 = vector.multi_reduction <add>, %66, %cst_33 [1] : vector<5x5xf32> to vector<5xf32>
    %68 = vector.shape_cast %67 : vector<5xf32> to vector<5x1xf32>
    %69 = tpu.reciprocal %68 : vector<5x1xf32> -> vector<5x1xf32>
    %70 = vector.broadcast %69 : vector<5x1xf32> to vector<5x5xf32>
    %71 = arith.mulf %66, %70 : vector<5x5xf32>
    %72 = arith.truncf %71 : vector<5x5xf32> to vector<5x5xbf16>
    %cst_34 = arith.constant dense<0.000000e+00> : vector<5x16xf32>
    %73 = tpu.matmul %72, %60, %cst_34 {dimension_numbers = #tpu.dot_dimension_numbers<[1], [0], [0], [1], [0, 0, 1, 1], [], []>} : vector<5x5xbf16>, vector<5x16xbf16>, vector<5x16xf32> -> vector<5x16xf32>
    %c0_35 = arith.constant 0 : index
    %c16_36 = arith.constant 16 : index
    %74 = vector.load %arg18[%c0_35, %c16_36] : memref<40x32xf32, #tpu.memory_space<vmem>>, vector<5x16xf32>
    tpu.vector_store %arg18[%c0_35, %c16_36], %73 {strides = array<i32>} : memref<40x32xf32, #tpu.memory_space<vmem>>, vector<5x16xf32>,
    %c5 = arith.constant 5 : index
    %c0_37 = arith.constant 0 : index
    %75 = vector.load %arg17[%c5, %c0_37] : memref<40x96xf32, #tpu.memory_space<vmem>>, vector<5x16xf32>
    %76 = arith.truncf %75 : vector<5x16xf32> to vector<5x16xbf16>
    %c5_38 = arith.constant 5 : index
    %c32_39 = arith.constant 32 : index
    %77 = vector.load %arg17[%c5_38, %c32_39] : memref<40x96xf32, #tpu.memory_space<vmem>>, vector<5x16xf32>
    %78 = arith.truncf %77 : vector<5x16xf32> to vector<5x16xbf16>
    %c5_40 = arith.constant 5 : index
    %c64_41 = arith.constant 64 : index
    %79 = vector.load %arg17[%c5_40, %c64_41] : memref<40x96xf32, #tpu.memory_space<vmem>>, vector<5x16xf32>
    %80 = arith.truncf %79 : vector<5x16xf32> to vector<5x16xbf16>
    %cst_42 = arith.constant dense<0.000000e+00> : vector<5x5xf32>
    %81 = tpu.matmul %76, %78, %cst_42 {dimension_numbers = #tpu.dot_dimension_numbers<[1], [1], [0], [0], [0, 0, 1, 0], [], []>} : vector<5x16xbf16>, vector<5x16xbf16>, vector<5x5xf32> -> vector<5x5xf32>
    %cst_43 = arith.constant dense<0xFF800000> : vector<5xf32>
    %82 = vector.multi_reduction <maximumf>, %81, %cst_43 [1] : vector<5x5xf32> to vector<5xf32>
    %83 = vector.shape_cast %82 : vector<5xf32> to vector<5x1xf32>
    %84 = vector.broadcast %83 : vector<5x1xf32> to vector<5x5xf32>
    %85 = arith.subf %81, %84 : vector<5x5xf32>
    %86 = math.exp %85 : vector<5x5xf32>
    %cst_44 = arith.constant dense<0.000000e+00> : vector<5xf32>
    %87 = vector.multi_reduction <add>, %86, %cst_44 [1] : vector<5x5xf32> to vector<5xf32>
    %88 = vector.shape_cast %87 : vector<5xf32> to vector<5x1xf32>
    %89 = tpu.reciprocal %88 : vector<5x1xf32> -> vector<5x1xf32>
    %90 = vector.broadcast %89 : vector<5x1xf32> to vector<5x5xf32>
    %91 = arith.mulf %86, %90 : vector<5x5xf32>
    %92 = arith.truncf %91 : vector<5x5xf32> to vector<5x5xbf16>
    %cst_45 = arith.constant dense<0.000000e+00> : vector<5x16xf32>
    %93 = tpu.matmul %92, %80, %cst_45 {dimension_numbers = #tpu.dot_dimension_numbers<[1], [0], [0], [1], [0, 0, 1, 1], [], []>} : vector<5x5xbf16>, vector<5x16xbf16>, vector<5x16xf32> -> vector<5x16xf32>
    %c5_46 = arith.constant 5 : index
    %c0_47 = arith.constant 0 : index
    %94 = vector.load %arg18[%c5_46, %c0_47] : memref<40x32xf32, #tpu.memory_space<vmem>>, vector<5x16xf32>
    tpu.vector_store %arg18[%c5_46, %c0_47], %93 {strides = array<i32>} : memref<40x32xf32, #tpu.memory_space<vmem>>, vector<5x16xf32>,
    %c5_48 = arith.constant 5 : index
    %c16_49 = arith.constant 16 : index
    %95 = vector.load %arg17[%c5_48, %c16_49] : memref<40x96xf32, #tpu.memory_space<vmem>>, vector<5x16xf32>
    %96 = arith.truncf %95 : vector<5x16xf32> to vector<5x16xbf16>
    %c5_50 = arith.constant 5 : index
    %c48_51 = arith.constant 48 : index
    %97 = vector.load %arg17[%c5_50, %c48_51] : memref<40x96xf32, #tpu.memory_space<vmem>>, vector<5x16xf32>
    %98 = arith.truncf %97 : vector<5x16xf32> to vector<5x16xbf16>
    %c5_52 = arith.constant 5 : index
    %c80_53 = arith.constant 80 : index
    %99 = vector.load %arg17[%c5_52, %c80_53] : memref<40x96xf32, #tpu.memory_space<vmem>>, vector<5x16xf32>
    %100 = arith.truncf %99 : vector<5x16xf32> to vector<5x16xbf16>
    %cst_54 = arith.constant dense<0.000000e+00> : vector<5x5xf32>
    %101 = tpu.matmul %96, %98, %cst_54 {dimension_numbers = #tpu.dot_dimension_numbers<[1], [1], [0], [0], [0, 0, 1, 0], [], []>} : vector<5x16xbf16>, vector<5x16xbf16>, vector<5x5xf32> -> vector<5x5xf32>
    %cst_55 = arith.constant dense<0xFF800000> : vector<5xf32>
    %102 = vector.multi_reduction <maximumf>, %101, %cst_55 [1] : vector<5x5xf32> to vector<5xf32>
    %103 = vector.shape_cast %102 : vector<5xf32> to vector<5x1xf32>
    %104 = vector.broadcast %103 : vector<5x1xf32> to vector<5x5xf32>
    %105 = arith.subf %101, %104 : vector<5x5xf32>
    %106 = math.exp %105 : vector<5x5xf32>
    %cst_56 = arith.constant dense<0.000000e+00> : vector<5xf32>
    %107 = vector.multi_reduction <add>, %106, %cst_56 [1] : vector<5x5xf32> to vector<5xf32>
    %108 = vector.shape_cast %107 : vector<5xf32> to vector<5x1xf32>
    %109 = tpu.reciprocal %108 : vector<5x1xf32> -> vector<5x1xf32>
    %110 = vector.broadcast %109 : vector<5x1xf32> to vector<5x5xf32>
    %111 = arith.mulf %106, %110 : vector<5x5xf32>
    %112 = arith.truncf %111 : vector<5x5xf32> to vector<5x5xbf16>
    %cst_57 = arith.constant dense<0.000000e+00> : vector<5x16xf32>
    %113 = tpu.matmul %112, %100, %cst_57 {dimension_numbers = #tpu.dot_dimension_numbers<[1], [0], [0], [1], [0, 0, 1, 1], [], []>} : vector<5x5xbf16>, vector<5x16xbf16>, vector<5x16xf32> -> vector<5x16xf32>
    %c5_58 = arith.constant 5 : index
    %c16_59 = arith.constant 16 : index
    %114 = vector.load %arg18[%c5_58, %c16_59] : memref<40x32xf32, #tpu.memory_space<vmem>>, vector<5x16xf32>
    tpu.vector_store %arg18[%c5_58, %c16_59], %113 {strides = array<i32>} : memref<40x32xf32, #tpu.memory_space<vmem>>, vector<5x16xf32>,
    %c10 = arith.constant 10 : index
    %c0_60 = arith.constant 0 : index
    %115 = vector.load %arg17[%c10, %c0_60] : memref<40x96xf32, #tpu.memory_space<vmem>>, vector<5x16xf32>
    %116 = arith.truncf %115 : vector<5x16xf32> to vector<5x16xbf16>
    %c10_61 = arith.constant 10 : index
    %c32_62 = arith.constant 32 : index
    %117 = vector.load %arg17[%c10_61, %c32_62] : memref<40x96xf32, #tpu.memory_space<vmem>>, vector<5x16xf32>
    %118 = arith.truncf %117 : vector<5x16xf32> to vector<5x16xbf16>
    %c10_63 = arith.constant 10 : index
    %c64_64 = arith.constant 64 : index
    %119 = vector.load %arg17[%c10_63, %c64_64] : memref<40x96xf32, #tpu.memory_space<vmem>>, vector<5x16xf32>
    %120 = arith.truncf %119 : vector<5x16xf32> to vector<5x16xbf16>
    %cst_65 = arith.constant dense<0.000000e+00> : vector<5x5xf32>
    %121 = tpu.matmul %116, %118, %cst_65 {dimension_numbers = #tpu.dot_dimension_numbers<[1], [1], [0], [0], [0, 0, 1, 0], [], []>} : vector<5x16xbf16>, vector<5x16xbf16>, vector<5x5xf32> -> vector<5x5xf32>
    %cst_66 = arith.constant dense<0xFF800000> : vector<5xf32>
    %122 = vector.multi_reduction <maximumf>, %121, %cst_66 [1] : vector<5x5xf32> to vector<5xf32>
    %123 = vector.shape_cast %122 : vector<5xf32> to vector<5x1xf32>
    %124 = vector.broadcast %123 : vector<5x1xf32> to vector<5x5xf32>
    %125 = arith.subf %121, %124 : vector<5x5xf32>
    %126 = math.exp %125 : vector<5x5xf32>
    %cst_67 = arith.constant dense<0.000000e+00> : vector<5xf32>
    %127 = vector.multi_reduction <add>, %126, %cst_67 [1] : vector<5x5xf32> to vector<5xf32>
    %128 = vector.shape_cast %127 : vector<5xf32> to vector<5x1xf32>
    %129 = tpu.reciprocal %128 : vector<5x1xf32> -> vector<5x1xf32>
    %130 = vector.broadcast %129 : vector<5x1xf32> to vector<5x5xf32>
    %131 = arith.mulf %126, %130 : vector<5x5xf32>
    %132 = arith.truncf %131 : vector<5x5xf32> to vector<5x5xbf16>
    %cst_68 = arith.constant dense<0.000000e+00> : vector<5x16xf32>
    %133 = tpu.matmul %132, %120, %cst_68 {dimension_numbers = #tpu.dot_dimension_numbers<[1], [0], [0], [1], [0, 0, 1, 1], [], []>} : vector<5x5xbf16>, vector<5x16xbf16>, vector<5x16xf32> -> vector<5x16xf32>
    %c10_69 = arith.constant 10 : index
    %c0_70 = arith.constant 0 : index
    %134 = vector.load %arg18[%c10_69, %c0_70] : memref<40x32xf32, #tpu.memory_space<vmem>>, vector<5x16xf32>
    tpu.vector_store %arg18[%c10_69, %c0_70], %133 {strides = array<i32>} : memref<40x32xf32, #tpu.memory_space<vmem>>, vector<5x16xf32>,
    %c10_71 = arith.constant 10 : index
    %c16_72 = arith.constant 16 : index
    %135 = vector.load %arg17[%c10_71, %c16_72] : memref<40x96xf32, #tpu.memory_space<vmem>>, vector<5x16xf32>
    %136 = arith.truncf %135 : vector<5x16xf32> to vector<5x16xbf16>
    %c10_73 = arith.constant 10 : index
    %c48_74 = arith.constant 48 : index
    %137 = vector.load %arg17[%c10_73, %c48_74] : memref<40x96xf32, #tpu.memory_space<vmem>>, vector<5x16xf32>
    %138 = arith.truncf %137 : vector<5x16xf32> to vector<5x16xbf16>
    %c10_75 = arith.constant 10 : index
    %c80_76 = arith.constant 80 : index
    %139 = vector.load %arg17[%c10_75, %c80_76] : memref<40x96xf32, #tpu.memory_space<vmem>>, vector<5x16xf32>
    %140 = arith.truncf %139 : vector<5x16xf32> to vector<5x16xbf16>
    %cst_77 = arith.constant dense<0.000000e+00> : vector<5x5xf32>
    %141 = tpu.matmul %136, %138, %cst_77 {dimension_numbers = #tpu.dot_dimension_numbers<[1], [1], [0], [0], [0, 0, 1, 0], [], []>} : vector<5x16xbf16>, vector<5x16xbf16>, vector<5x5xf32> -> vector<5x5xf32>
    %cst_78 = arith.constant dense<0xFF800000> : vector<5xf32>
    %142 = vector.multi_reduction <maximumf>, %141, %cst_78 [1] : vector<5x5xf32> to vector<5xf32>
    %143 = vector.shape_cast %142 : vector<5xf32> to vector<5x1xf32>
    %144 = vector.broadcast %143 : vector<5x1xf32> to vector<5x5xf32>
    %145 = arith.subf %141, %144 : vector<5x5xf32>
    %146 = math.exp %145 : vector<5x5xf32>
    %cst_79 = arith.constant dense<0.000000e+00> : vector<5xf32>
    %147 = vector.multi_reduction <add>, %146, %cst_79 [1] : vector<5x5xf32> to vector<5xf32>
    %148 = vector.shape_cast %147 : vector<5xf32> to vector<5x1xf32>
    %149 = tpu.reciprocal %148 : vector<5x1xf32> -> vector<5x1xf32>
    %150 = vector.broadcast %149 : vector<5x1xf32> to vector<5x5xf32>
    %151 = arith.mulf %146, %150 : vector<5x5xf32>
    %152 = arith.truncf %151 : vector<5x5xf32> to vector<5x5xbf16>
    %cst_80 = arith.constant dense<0.000000e+00> : vector<5x16xf32>
    %153 = tpu.matmul %152, %140, %cst_80 {dimension_numbers = #tpu.dot_dimension_numbers<[1], [0], [0], [1], [0, 0, 1, 1], [], []>} : vector<5x5xbf16>, vector<5x16xbf16>, vector<5x16xf32> -> vector<5x16xf32>
    %c10_81 = arith.constant 10 : index
    %c16_82 = arith.constant 16 : index
    %154 = vector.load %arg18[%c10_81, %c16_82] : memref<40x32xf32, #tpu.memory_space<vmem>>, vector<5x16xf32>
    tpu.vector_store %arg18[%c10_81, %c16_82], %153 {strides = array<i32>} : memref<40x32xf32, #tpu.memory_space<vmem>>, vector<5x16xf32>,
    %c15 = arith.constant 15 : index
    %c0_83 = arith.constant 0 : index
    %155 = vector.load %arg17[%c15, %c0_83] : memref<40x96xf32, #tpu.memory_space<vmem>>, vector<5x16xf32>
    %156 = arith.truncf %155 : vector<5x16xf32> to vector<5x16xbf16>
    %c15_84 = arith.constant 15 : index
    %c32_85 = arith.constant 32 : index
    %157 = vector.load %arg17[%c15_84, %c32_85] : memref<40x96xf32, #tpu.memory_space<vmem>>, vector<5x16xf32>
    %158 = arith.truncf %157 : vector<5x16xf32> to vector<5x16xbf16>
    %c15_86 = arith.constant 15 : index
    %c64_87 = arith.constant 64 : index
    %159 = vector.load %arg17[%c15_86, %c64_87] : memref<40x96xf32, #tpu.memory_space<vmem>>, vector<5x16xf32>
    %160 = arith.truncf %159 : vector<5x16xf32> to vector<5x16xbf16>
    %cst_88 = arith.constant dense<0.000000e+00> : vector<5x5xf32>
    %161 = tpu.matmul %156, %158, %cst_88 {dimension_numbers = #tpu.dot_dimension_numbers<[1], [1], [0], [0], [0, 0, 1, 0], [], []>} : vector<5x16xbf16>, vector<5x16xbf16>, vector<5x5xf32> -> vector<5x5xf32>
    %cst_89 = arith.constant dense<0xFF800000> : vector<5xf32>
    %162 = vector.multi_reduction <maximumf>, %161, %cst_89 [1] : vector<5x5xf32> to vector<5xf32>
    %163 = vector.shape_cast %162 : vector<5xf32> to vector<5x1xf32>
    %164 = vector.broadcast %163 : vector<5x1xf32> to vector<5x5xf32>
    %165 = arith.subf %161, %164 : vector<5x5xf32>
    %166 = math.exp %165 : vector<5x5xf32>
    %cst_90 = arith.constant dense<0.000000e+00> : vector<5xf32>
    %167 = vector.multi_reduction <add>, %166, %cst_90 [1] : vector<5x5xf32> to vector<5xf32>
    %168 = vector.shape_cast %167 : vector<5xf32> to vector<5x1xf32>
    %169 = tpu.reciprocal %168 : vector<5x1xf32> -> vector<5x1xf32>
    %170 = vector.broadcast %169 : vector<5x1xf32> to vector<5x5xf32>
    %171 = arith.mulf %166, %170 : vector<5x5xf32>
    %172 = arith.truncf %171 : vector<5x5xf32> to vector<5x5xbf16>
    %cst_91 = arith.constant dense<0.000000e+00> : vector<5x16xf32>
    %173 = tpu.matmul %172, %160, %cst_91 {dimension_numbers = #tpu.dot_dimension_numbers<[1], [0], [0], [1], [0, 0, 1, 1], [], []>} : vector<5x5xbf16>, vector<5x16xbf16>, vector<5x16xf32> -> vector<5x16xf32>
    %c15_92 = arith.constant 15 : index
    %c0_93 = arith.constant 0 : index
    %174 = vector.load %arg18[%c15_92, %c0_93] : memref<40x32xf32, #tpu.memory_space<vmem>>, vector<5x16xf32>
    tpu.vector_store %arg18[%c15_92, %c0_93], %173 {strides = array<i32>} : memref<40x32xf32, #tpu.memory_space<vmem>>, vector<5x16xf32>,
    %c15_94 = arith.constant 15 : index
    %c16_95 = arith.constant 16 : index
    %175 = vector.load %arg17[%c15_94, %c16_95] : memref<40x96xf32, #tpu.memory_space<vmem>>, vector<5x16xf32>
    %176 = arith.truncf %175 : vector<5x16xf32> to vector<5x16xbf16>
    %c15_96 = arith.constant 15 : index
    %c48_97 = arith.constant 48 : index
    %177 = vector.load %arg17[%c15_96, %c48_97] : memref<40x96xf32, #tpu.memory_space<vmem>>, vector<5x16xf32>
    %178 = arith.truncf %177 : vector<5x16xf32> to vector<5x16xbf16>
    %c15_98 = arith.constant 15 : index
    %c80_99 = arith.constant 80 : index
    %179 = vector.load %arg17[%c15_98, %c80_99] : memref<40x96xf32, #tpu.memory_space<vmem>>, vector<5x16xf32>
    %180 = arith.truncf %179 : vector<5x16xf32> to vector<5x16xbf16>
    %cst_100 = arith.constant dense<0.000000e+00> : vector<5x5xf32>
    %181 = tpu.matmul %176, %178, %cst_100 {dimension_numbers = #tpu.dot_dimension_numbers<[1], [1], [0], [0], [0, 0, 1, 0], [], []>} : vector<5x16xbf16>, vector<5x16xbf16>, vector<5x5xf32> -> vector<5x5xf32>
    %cst_101 = arith.constant dense<0xFF800000> : vector<5xf32>
    %182 = vector.multi_reduction <maximumf>, %181, %cst_101 [1] : vector<5x5xf32> to vector<5xf32>
    %183 = vector.shape_cast %182 : vector<5xf32> to vector<5x1xf32>
    %184 = vector.broadcast %183 : vector<5x1xf32> to vector<5x5xf32>
    %185 = arith.subf %181, %184 : vector<5x5xf32>
    %186 = math.exp %185 : vector<5x5xf32>
    %cst_102 = arith.constant dense<0.000000e+00> : vector<5xf32>
    %187 = vector.multi_reduction <add>, %186, %cst_102 [1] : vector<5x5xf32> to vector<5xf32>
    %188 = vector.shape_cast %187 : vector<5xf32> to vector<5x1xf32>
    %189 = tpu.reciprocal %188 : vector<5x1xf32> -> vector<5x1xf32>
    %190 = vector.broadcast %189 : vector<5x1xf32> to vector<5x5xf32>
    %191 = arith.mulf %186, %190 : vector<5x5xf32>
    %192 = arith.truncf %191 : vector<5x5xf32> to vector<5x5xbf16>
    %cst_103 = arith.constant dense<0.000000e+00> : vector<5x16xf32>
    %193 = tpu.matmul %192, %180, %cst_103 {dimension_numbers = #tpu.dot_dimension_numbers<[1], [0], [0], [1], [0, 0, 1, 1], [], []>} : vector<5x5xbf16>, vector<5x16xbf16>, vector<5x16xf32> -> vector<5x16xf32>
    %c15_104 = arith.constant 15 : index
    %c16_105 = arith.constant 16 : index
    %194 = vector.load %arg18[%c15_104, %c16_105] : memref<40x32xf32, #tpu.memory_space<vmem>>, vector<5x16xf32>
    tpu.vector_store %arg18[%c15_104, %c16_105], %193 {strides = array<i32>} : memref<40x32xf32, #tpu.memory_space<vmem>>, vector<5x16xf32>,
    %c20 = arith.constant 20 : index
    %c0_106 = arith.constant 0 : index
    %195 = vector.load %arg17[%c20, %c0_106] : memref<40x96xf32, #tpu.memory_space<vmem>>, vector<5x16xf32>
    %196 = arith.truncf %195 : vector<5x16xf32> to vector<5x16xbf16>
    %c20_107 = arith.constant 20 : index
    %c32_108 = arith.constant 32 : index
    %197 = vector.load %arg17[%c20_107, %c32_108] : memref<40x96xf32, #tpu.memory_space<vmem>>, vector<5x16xf32>
    %198 = arith.truncf %197 : vector<5x16xf32> to vector<5x16xbf16>
    %c20_109 = arith.constant 20 : index
    %c64_110 = arith.constant 64 : index
    %199 = vector.load %arg17[%c20_109, %c64_110] : memref<40x96xf32, #tpu.memory_space<vmem>>, vector<5x16xf32>
    %200 = arith.truncf %199 : vector<5x16xf32> to vector<5x16xbf16>
    %cst_111 = arith.constant dense<0.000000e+00> : vector<5x5xf32>
    %201 = tpu.matmul %196, %198, %cst_111 {dimension_numbers = #tpu.dot_dimension_numbers<[1], [1], [0], [0], [0, 0, 1, 0], [], []>} : vector<5x16xbf16>, vector<5x16xbf16>, vector<5x5xf32> -> vector<5x5xf32>
    %cst_112 = arith.constant dense<0xFF800000> : vector<5xf32>
    %202 = vector.multi_reduction <maximumf>, %201, %cst_112 [1] : vector<5x5xf32> to vector<5xf32>
    %203 = vector.shape_cast %202 : vector<5xf32> to vector<5x1xf32>
    %204 = vector.broadcast %203 : vector<5x1xf32> to vector<5x5xf32>
    %205 = arith.subf %201, %204 : vector<5x5xf32>
    %206 = math.exp %205 : vector<5x5xf32>
    %cst_113 = arith.constant dense<0.000000e+00> : vector<5xf32>
    %207 = vector.multi_reduction <add>, %206, %cst_113 [1] : vector<5x5xf32> to vector<5xf32>
    %208 = vector.shape_cast %207 : vector<5xf32> to vector<5x1xf32>
    %209 = tpu.reciprocal %208 : vector<5x1xf32> -> vector<5x1xf32>
    %210 = vector.broadcast %209 : vector<5x1xf32> to vector<5x5xf32>
    %211 = arith.mulf %206, %210 : vector<5x5xf32>
    %212 = arith.truncf %211 : vector<5x5xf32> to vector<5x5xbf16>
    %cst_114 = arith.constant dense<0.000000e+00> : vector<5x16xf32>
    %213 = tpu.matmul %212, %200, %cst_114 {dimension_numbers = #tpu.dot_dimension_numbers<[1], [0], [0], [1], [0, 0, 1, 1], [], []>} : vector<5x5xbf16>, vector<5x16xbf16>, vector<5x16xf32> -> vector<5x16xf32>
    %c20_115 = arith.constant 20 : index
    %c0_116 = arith.constant 0 : index
    %214 = vector.load %arg18[%c20_115, %c0_116] : memref<40x32xf32, #tpu.memory_space<vmem>>, vector<5x16xf32>
    tpu.vector_store %arg18[%c20_115, %c0_116], %213 {strides = array<i32>} : memref<40x32xf32, #tpu.memory_space<vmem>>, vector<5x16xf32>,
    %c20_117 = arith.constant 20 : index
    %c16_118 = arith.constant 16 : index
    %215 = vector.load %arg17[%c20_117, %c16_118] : memref<40x96xf32, #tpu.memory_space<vmem>>, vector<5x16xf32>
    %216 = arith.truncf %215 : vector<5x16xf32> to vector<5x16xbf16>
    %c20_119 = arith.constant 20 : index
    %c48_120 = arith.constant 48 : index
    %217 = vector.load %arg17[%c20_119, %c48_120] : memref<40x96xf32, #tpu.memory_space<vmem>>, vector<5x16xf32>
    %218 = arith.truncf %217 : vector<5x16xf32> to vector<5x16xbf16>
    %c20_121 = arith.constant 20 : index
    %c80_122 = arith.constant 80 : index
    %219 = vector.load %arg17[%c20_121, %c80_122] : memref<40x96xf32, #tpu.memory_space<vmem>>, vector<5x16xf32>
    %220 = arith.truncf %219 : vector<5x16xf32> to vector<5x16xbf16>
    %cst_123 = arith.constant dense<0.000000e+00> : vector<5x5xf32>
    %221 = tpu.matmul %216, %218, %cst_123 {dimension_numbers = #tpu.dot_dimension_numbers<[1], [1], [0], [0], [0, 0, 1, 0], [], []>} : vector<5x16xbf16>, vector<5x16xbf16>, vector<5x5xf32> -> vector<5x5xf32>
    %cst_124 = arith.constant dense<0xFF800000> : vector<5xf32>
    %222 = vector.multi_reduction <maximumf>, %221, %cst_124 [1] : vector<5x5xf32> to vector<5xf32>
    %223 = vector.shape_cast %222 : vector<5xf32> to vector<5x1xf32>
    %224 = vector.broadcast %223 : vector<5x1xf32> to vector<5x5xf32>
    %225 = arith.subf %221, %224 : vector<5x5xf32>
    %226 = math.exp %225 : vector<5x5xf32>
    %cst_125 = arith.constant dense<0.000000e+00> : vector<5xf32>
    %227 = vector.multi_reduction <add>, %226, %cst_125 [1] : vector<5x5xf32> to vector<5xf32>
    %228 = vector.shape_cast %227 : vector<5xf32> to vector<5x1xf32>
    %229 = tpu.reciprocal %228 : vector<5x1xf32> -> vector<5x1xf32>
    %230 = vector.broadcast %229 : vector<5x1xf32> to vector<5x5xf32>
    %231 = arith.mulf %226, %230 : vector<5x5xf32>
    %232 = arith.truncf %231 : vector<5x5xf32> to vector<5x5xbf16>
    %cst_126 = arith.constant dense<0.000000e+00> : vector<5x16xf32>
    %233 = tpu.matmul %232, %220, %cst_126 {dimension_numbers = #tpu.dot_dimension_numbers<[1], [0], [0], [1], [0, 0, 1, 1], [], []>} : vector<5x5xbf16>, vector<5x16xbf16>, vector<5x16xf32> -> vector<5x16xf32>
    %c20_127 = arith.constant 20 : index
    %c16_128 = arith.constant 16 : index
    %234 = vector.load %arg18[%c20_127, %c16_128] : memref<40x32xf32, #tpu.memory_space<vmem>>, vector<5x16xf32>
    tpu.vector_store %arg18[%c20_127, %c16_128], %233 {strides = array<i32>} : memref<40x32xf32, #tpu.memory_space<vmem>>, vector<5x16xf32>,
    %c25 = arith.constant 25 : index
    %c0_129 = arith.constant 0 : index
    %235 = vector.load %arg17[%c25, %c0_129] : memref<40x96xf32, #tpu.memory_space<vmem>>, vector<5x16xf32>
    %236 = arith.truncf %235 : vector<5x16xf32> to vector<5x16xbf16>
    %c25_130 = arith.constant 25 : index
    %c32_131 = arith.constant 32 : index
    %237 = vector.load %arg17[%c25_130, %c32_131] : memref<40x96xf32, #tpu.memory_space<vmem>>, vector<5x16xf32>
    %238 = arith.truncf %237 : vector<5x16xf32> to vector<5x16xbf16>
    %c25_132 = arith.constant 25 : index
    %c64_133 = arith.constant 64 : index
    %239 = vector.load %arg17[%c25_132, %c64_133] : memref<40x96xf32, #tpu.memory_space<vmem>>, vector<5x16xf32>
    %240 = arith.truncf %239 : vector<5x16xf32> to vector<5x16xbf16>
    %cst_134 = arith.constant dense<0.000000e+00> : vector<5x5xf32>
    %241 = tpu.matmul %236, %238, %cst_134 {dimension_numbers = #tpu.dot_dimension_numbers<[1], [1], [0], [0], [0, 0, 1, 0], [], []>} : vector<5x16xbf16>, vector<5x16xbf16>, vector<5x5xf32> -> vector<5x5xf32>
    %cst_135 = arith.constant dense<0xFF800000> : vector<5xf32>
    %242 = vector.multi_reduction <maximumf>, %241, %cst_135 [1] : vector<5x5xf32> to vector<5xf32>
    %243 = vector.shape_cast %242 : vector<5xf32> to vector<5x1xf32>
    %244 = vector.broadcast %243 : vector<5x1xf32> to vector<5x5xf32>
    %245 = arith.subf %241, %244 : vector<5x5xf32>
    %246 = math.exp %245 : vector<5x5xf32>
    %cst_136 = arith.constant dense<0.000000e+00> : vector<5xf32>
    %247 = vector.multi_reduction <add>, %246, %cst_136 [1] : vector<5x5xf32> to vector<5xf32>
    %248 = vector.shape_cast %247 : vector<5xf32> to vector<5x1xf32>
    %249 = tpu.reciprocal %248 : vector<5x1xf32> -> vector<5x1xf32>
    %250 = vector.broadcast %249 : vector<5x1xf32> to vector<5x5xf32>
    %251 = arith.mulf %246, %250 : vector<5x5xf32>
    %252 = arith.truncf %251 : vector<5x5xf32> to vector<5x5xbf16>
    %cst_137 = arith.constant dense<0.000000e+00> : vector<5x16xf32>
    %253 = tpu.matmul %252, %240, %cst_137 {dimension_numbers = #tpu.dot_dimension_numbers<[1], [0], [0], [1], [0, 0, 1, 1], [], []>} : vector<5x5xbf16>, vector<5x16xbf16>, vector<5x16xf32> -> vector<5x16xf32>
    %c25_138 = arith.constant 25 : index
    %c0_139 = arith.constant 0 : index
    %254 = vector.load %arg18[%c25_138, %c0_139] : memref<40x32xf32, #tpu.memory_space<vmem>>, vector<5x16xf32>
    tpu.vector_store %arg18[%c25_138, %c0_139], %253 {strides = array<i32>} : memref<40x32xf32, #tpu.memory_space<vmem>>, vector<5x16xf32>,
    %c25_140 = arith.constant 25 : index
    %c16_141 = arith.constant 16 : index
    %255 = vector.load %arg17[%c25_140, %c16_141] : memref<40x96xf32, #tpu.memory_space<vmem>>, vector<5x16xf32>
    %256 = arith.truncf %255 : vector<5x16xf32> to vector<5x16xbf16>
    %c25_142 = arith.constant 25 : index
    %c48_143 = arith.constant 48 : index
    %257 = vector.load %arg17[%c25_142, %c48_143] : memref<40x96xf32, #tpu.memory_space<vmem>>, vector<5x16xf32>
    %258 = arith.truncf %257 : vector<5x16xf32> to vector<5x16xbf16>
    %c25_144 = arith.constant 25 : index
    %c80_145 = arith.constant 80 : index
    %259 = vector.load %arg17[%c25_144, %c80_145] : memref<40x96xf32, #tpu.memory_space<vmem>>, vector<5x16xf32>
    %260 = arith.truncf %259 : vector<5x16xf32> to vector<5x16xbf16>
    %cst_146 = arith.constant dense<0.000000e+00> : vector<5x5xf32>
    %261 = tpu.matmul %256, %258, %cst_146 {dimension_numbers = #tpu.dot_dimension_numbers<[1], [1], [0], [0], [0, 0, 1, 0], [], []>} : vector<5x16xbf16>, vector<5x16xbf16>, vector<5x5xf32> -> vector<5x5xf32>
    %cst_147 = arith.constant dense<0xFF800000> : vector<5xf32>
    %262 = vector.multi_reduction <maximumf>, %261, %cst_147 [1] : vector<5x5xf32> to vector<5xf32>
    %263 = vector.shape_cast %262 : vector<5xf32> to vector<5x1xf32>
    %264 = vector.broadcast %263 : vector<5x1xf32> to vector<5x5xf32>
    %265 = arith.subf %261, %264 : vector<5x5xf32>
    %266 = math.exp %265 : vector<5x5xf32>
    %cst_148 = arith.constant dense<0.000000e+00> : vector<5xf32>
    %267 = vector.multi_reduction <add>, %266, %cst_148 [1] : vector<5x5xf32> to vector<5xf32>
    %268 = vector.shape_cast %267 : vector<5xf32> to vector<5x1xf32>
    %269 = tpu.reciprocal %268 : vector<5x1xf32> -> vector<5x1xf32>
    %270 = vector.broadcast %269 : vector<5x1xf32> to vector<5x5xf32>
    %271 = arith.mulf %266, %270 : vector<5x5xf32>
    %272 = arith.truncf %271 : vector<5x5xf32> to vector<5x5xbf16>
    %cst_149 = arith.constant dense<0.000000e+00> : vector<5x16xf32>
    %273 = tpu.matmul %272, %260, %cst_149 {dimension_numbers = #tpu.dot_dimension_numbers<[1], [0], [0], [1], [0, 0, 1, 1], [], []>} : vector<5x5xbf16>, vector<5x16xbf16>, vector<5x16xf32> -> vector<5x16xf32>
    %c25_150 = arith.constant 25 : index
    %c16_151 = arith.constant 16 : index
    %274 = vector.load %arg18[%c25_150, %c16_151] : memref<40x32xf32, #tpu.memory_space<vmem>>, vector<5x16xf32>
    tpu.vector_store %arg18[%c25_150, %c16_151], %273 {strides = array<i32>} : memref<40x32xf32, #tpu.memory_space<vmem>>, vector<5x16xf32>,
    %c30 = arith.constant 30 : index
    %c0_152 = arith.constant 0 : index
    %275 = vector.load %arg17[%c30, %c0_152] : memref<40x96xf32, #tpu.memory_space<vmem>>, vector<5x16xf32>
    %276 = arith.truncf %275 : vector<5x16xf32> to vector<5x16xbf16>
    %c30_153 = arith.constant 30 : index
    %c32_154 = arith.constant 32 : index
    %277 = vector.load %arg17[%c30_153, %c32_154] : memref<40x96xf32, #tpu.memory_space<vmem>>, vector<5x16xf32>
    %278 = arith.truncf %277 : vector<5x16xf32> to vector<5x16xbf16>
    %c30_155 = arith.constant 30 : index
    %c64_156 = arith.constant 64 : index
    %279 = vector.load %arg17[%c30_155, %c64_156] : memref<40x96xf32, #tpu.memory_space<vmem>>, vector<5x16xf32>
    %280 = arith.truncf %279 : vector<5x16xf32> to vector<5x16xbf16>
    %cst_157 = arith.constant dense<0.000000e+00> : vector<5x5xf32>
    %281 = tpu.matmul %276, %278, %cst_157 {dimension_numbers = #tpu.dot_dimension_numbers<[1], [1], [0], [0], [0, 0, 1, 0], [], []>} : vector<5x16xbf16>, vector<5x16xbf16>, vector<5x5xf32> -> vector<5x5xf32>
    %cst_158 = arith.constant dense<0xFF800000> : vector<5xf32>
    %282 = vector.multi_reduction <maximumf>, %281, %cst_158 [1] : vector<5x5xf32> to vector<5xf32>
    %283 = vector.shape_cast %282 : vector<5xf32> to vector<5x1xf32>
    %284 = vector.broadcast %283 : vector<5x1xf32> to vector<5x5xf32>
    %285 = arith.subf %281, %284 : vector<5x5xf32>
    %286 = math.exp %285 : vector<5x5xf32>
    %cst_159 = arith.constant dense<0.000000e+00> : vector<5xf32>
    %287 = vector.multi_reduction <add>, %286, %cst_159 [1] : vector<5x5xf32> to vector<5xf32>
    %288 = vector.shape_cast %287 : vector<5xf32> to vector<5x1xf32>
    %289 = tpu.reciprocal %288 : vector<5x1xf32> -> vector<5x1xf32>
    %290 = vector.broadcast %289 : vector<5x1xf32> to vector<5x5xf32>
    %291 = arith.mulf %286, %290 : vector<5x5xf32>
    %292 = arith.truncf %291 : vector<5x5xf32> to vector<5x5xbf16>
    %cst_160 = arith.constant dense<0.000000e+00> : vector<5x16xf32>
    %293 = tpu.matmul %292, %280, %cst_160 {dimension_numbers = #tpu.dot_dimension_numbers<[1], [0], [0], [1], [0, 0, 1, 1], [], []>} : vector<5x5xbf16>, vector<5x16xbf16>, vector<5x16xf32> -> vector<5x16xf32>
    %c30_161 = arith.constant 30 : index
    %c0_162 = arith.constant 0 : index
    %294 = vector.load %arg18[%c30_161, %c0_162] : memref<40x32xf32, #tpu.memory_space<vmem>>, vector<5x16xf32>
    tpu.vector_store %arg18[%c30_161, %c0_162], %293 {strides = array<i32>} : memref<40x32xf32, #tpu.memory_space<vmem>>, vector<5x16xf32>,
    %c30_163 = arith.constant 30 : index
    %c16_164 = arith.constant 16 : index
    %295 = vector.load %arg17[%c30_163, %c16_164] : memref<40x96xf32, #tpu.memory_space<vmem>>, vector<5x16xf32>
    %296 = arith.truncf %295 : vector<5x16xf32> to vector<5x16xbf16>
    %c30_165 = arith.constant 30 : index
    %c48_166 = arith.constant 48 : index
    %297 = vector.load %arg17[%c30_165, %c48_166] : memref<40x96xf32, #tpu.memory_space<vmem>>, vector<5x16xf32>
    %298 = arith.truncf %297 : vector<5x16xf32> to vector<5x16xbf16>
    %c30_167 = arith.constant 30 : index
    %c80_168 = arith.constant 80 : index
    %299 = vector.load %arg17[%c30_167, %c80_168] : memref<40x96xf32, #tpu.memory_space<vmem>>, vector<5x16xf32>
    %300 = arith.truncf %299 : vector<5x16xf32> to vector<5x16xbf16>
    %cst_169 = arith.constant dense<0.000000e+00> : vector<5x5xf32>
    %301 = tpu.matmul %296, %298, %cst_169 {dimension_numbers = #tpu.dot_dimension_numbers<[1], [1], [0], [0], [0, 0, 1, 0], [], []>} : vector<5x16xbf16>, vector<5x16xbf16>, vector<5x5xf32> -> vector<5x5xf32>
    %cst_170 = arith.constant dense<0xFF800000> : vector<5xf32>
    %302 = vector.multi_reduction <maximumf>, %301, %cst_170 [1] : vector<5x5xf32> to vector<5xf32>
    %303 = vector.shape_cast %302 : vector<5xf32> to vector<5x1xf32>
    %304 = vector.broadcast %303 : vector<5x1xf32> to vector<5x5xf32>
    %305 = arith.subf %301, %304 : vector<5x5xf32>
    %306 = math.exp %305 : vector<5x5xf32>
    %cst_171 = arith.constant dense<0.000000e+00> : vector<5xf32>
    %307 = vector.multi_reduction <add>, %306, %cst_171 [1] : vector<5x5xf32> to vector<5xf32>
    %308 = vector.shape_cast %307 : vector<5xf32> to vector<5x1xf32>
    %309 = tpu.reciprocal %308 : vector<5x1xf32> -> vector<5x1xf32>
    %310 = vector.broadcast %309 : vector<5x1xf32> to vector<5x5xf32>
    %311 = arith.mulf %306, %310 : vector<5x5xf32>
    %312 = arith.truncf %311 : vector<5x5xf32> to vector<5x5xbf16>
    %cst_172 = arith.constant dense<0.000000e+00> : vector<5x16xf32>
    %313 = tpu.matmul %312, %300, %cst_172 {dimension_numbers = #tpu.dot_dimension_numbers<[1], [0], [0], [1], [0, 0, 1, 1], [], []>} : vector<5x5xbf16>, vector<5x16xbf16>, vector<5x16xf32> -> vector<5x16xf32>
    %c30_173 = arith.constant 30 : index
    %c16_174 = arith.constant 16 : index
    %314 = vector.load %arg18[%c30_173, %c16_174] : memref<40x32xf32, #tpu.memory_space<vmem>>, vector<5x16xf32>
    tpu.vector_store %arg18[%c30_173, %c16_174], %313 {strides = array<i32>} : memref<40x32xf32, #tpu.memory_space<vmem>>, vector<5x16xf32>,
    %c35 = arith.constant 35 : index
    %c0_175 = arith.constant 0 : index
    %315 = vector.load %arg17[%c35, %c0_175] : memref<40x96xf32, #tpu.memory_space<vmem>>, vector<5x16xf32>
    %316 = arith.truncf %315 : vector<5x16xf32> to vector<5x16xbf16>
    %c35_176 = arith.constant 35 : index
    %c32_177 = arith.constant 32 : index
    %317 = vector.load %arg17[%c35_176, %c32_177] : memref<40x96xf32, #tpu.memory_space<vmem>>, vector<5x16xf32>
    %318 = arith.truncf %317 : vector<5x16xf32> to vector<5x16xbf16>
    %c35_178 = arith.constant 35 : index
    %c64_179 = arith.constant 64 : index
    %319 = vector.load %arg17[%c35_178, %c64_179] : memref<40x96xf32, #tpu.memory_space<vmem>>, vector<5x16xf32>
    %320 = arith.truncf %319 : vector<5x16xf32> to vector<5x16xbf16>
    %cst_180 = arith.constant dense<0.000000e+00> : vector<5x5xf32>
    %321 = tpu.matmul %316, %318, %cst_180 {dimension_numbers = #tpu.dot_dimension_numbers<[1], [1], [0], [0], [0, 0, 1, 0], [], []>} : vector<5x16xbf16>, vector<5x16xbf16>, vector<5x5xf32> -> vector<5x5xf32>
    %cst_181 = arith.constant dense<0xFF800000> : vector<5xf32>
    %322 = vector.multi_reduction <maximumf>, %321, %cst_181 [1] : vector<5x5xf32> to vector<5xf32>
    %323 = vector.shape_cast %322 : vector<5xf32> to vector<5x1xf32>
    %324 = vector.broadcast %323 : vector<5x1xf32> to vector<5x5xf32>
    %325 = arith.subf %321, %324 : vector<5x5xf32>
    %326 = math.exp %325 : vector<5x5xf32>
    %cst_182 = arith.constant dense<0.000000e+00> : vector<5xf32>
    %327 = vector.multi_reduction <add>, %326, %cst_182 [1] : vector<5x5xf32> to vector<5xf32>
    %328 = vector.shape_cast %327 : vector<5xf32> to vector<5x1xf32>
    %329 = tpu.reciprocal %328 : vector<5x1xf32> -> vector<5x1xf32>
    %330 = vector.broadcast %329 : vector<5x1xf32> to vector<5x5xf32>
    %331 = arith.mulf %326, %330 : vector<5x5xf32>
    %332 = arith.truncf %331 : vector<5x5xf32> to vector<5x5xbf16>
    %cst_183 = arith.constant dense<0.000000e+00> : vector<5x16xf32>
    %333 = tpu.matmul %332, %320, %cst_183 {dimension_numbers = #tpu.dot_dimension_numbers<[1], [0], [0], [1], [0, 0, 1, 1], [], []>} : vector<5x5xbf16>, vector<5x16xbf16>, vector<5x16xf32> -> vector<5x16xf32>
    %c35_184 = arith.constant 35 : index
    %c0_185 = arith.constant 0 : index
    %334 = vector.load %arg18[%c35_184, %c0_185] : memref<40x32xf32, #tpu.memory_space<vmem>>, vector<5x16xf32>
    tpu.vector_store %arg18[%c35_184, %c0_185], %333 {strides = array<i32>} : memref<40x32xf32, #tpu.memory_space<vmem>>, vector<5x16xf32>,
    %c35_186 = arith.constant 35 : index
    %c16_187 = arith.constant 16 : index
    %335 = vector.load %arg17[%c35_186, %c16_187] : memref<40x96xf32, #tpu.memory_space<vmem>>, vector<5x16xf32>
    %336 = arith.truncf %335 : vector<5x16xf32> to vector<5x16xbf16>
    %c35_188 = arith.constant 35 : index
    %c48_189 = arith.constant 48 : index
    %337 = vector.load %arg17[%c35_188, %c48_189] : memref<40x96xf32, #tpu.memory_space<vmem>>, vector<5x16xf32>
    %338 = arith.truncf %337 : vector<5x16xf32> to vector<5x16xbf16>
    %c35_190 = arith.constant 35 : index
    %c80_191 = arith.constant 80 : index
    %339 = vector.load %arg17[%c35_190, %c80_191] : memref<40x96xf32, #tpu.memory_space<vmem>>, vector<5x16xf32>
    %340 = arith.truncf %339 : vector<5x16xf32> to vector<5x16xbf16>
    %cst_192 = arith.constant dense<0.000000e+00> : vector<5x5xf32>
    %341 = tpu.matmul %336, %338, %cst_192 {dimension_numbers = #tpu.dot_dimension_numbers<[1], [1], [0], [0], [0, 0, 1, 0], [], []>} : vector<5x16xbf16>, vector<5x16xbf16>, vector<5x5xf32> -> vector<5x5xf32>
    %cst_193 = arith.constant dense<0xFF800000> : vector<5xf32>
    %342 = vector.multi_reduction <maximumf>, %341, %cst_193 [1] : vector<5x5xf32> to vector<5xf32>
    %343 = vector.shape_cast %342 : vector<5xf32> to vector<5x1xf32>
    %344 = vector.broadcast %343 : vector<5x1xf32> to vector<5x5xf32>
    %345 = arith.subf %341, %344 : vector<5x5xf32>
    %346 = math.exp %345 : vector<5x5xf32>
    %cst_194 = arith.constant dense<0.000000e+00> : vector<5xf32>
    %347 = vector.multi_reduction <add>, %346, %cst_194 [1] : vector<5x5xf32> to vector<5xf32>
    %348 = vector.shape_cast %347 : vector<5xf32> to vector<5x1xf32>
    %349 = tpu.reciprocal %348 : vector<5x1xf32> -> vector<5x1xf32>
    %350 = vector.broadcast %349 : vector<5x1xf32> to vector<5x5xf32>
    %351 = arith.mulf %346, %350 : vector<5x5xf32>
    %352 = arith.truncf %351 : vector<5x5xf32> to vector<5x5xbf16>
    %cst_195 = arith.constant dense<0.000000e+00> : vector<5x16xf32>
    %353 = tpu.matmul %352, %340, %cst_195 {dimension_numbers = #tpu.dot_dimension_numbers<[1], [0], [0], [1], [0, 0, 1, 1], [], []>} : vector<5x5xbf16>, vector<5x16xbf16>, vector<5x16xf32> -> vector<5x16xf32>
    %c35_196 = arith.constant 35 : index
    %c16_197 = arith.constant 16 : index
    %354 = vector.load %arg18[%c35_196, %c16_197] : memref<40x32xf32, #tpu.memory_space<vmem>>, vector<5x16xf32>
    tpu.vector_store %arg18[%c35_196, %c16_197], %353 {strides = array<i32>} : memref<40x32xf32, #tpu.memory_space<vmem>>, vector<5x16xf32>,
    %c0_198 = arith.constant 0 : index
    %c0_199 = arith.constant 0 : index
    %355 = vector.load %arg18[%c0_198, %c0_199] : memref<40x32xf32, #tpu.memory_space<vmem>>, vector<40x32xf32>
    %356 = arith.truncf %355 : vector<40x32xf32> to vector<40x32xbf16>
    %c0_200 = arith.constant 0 : index
    %c0_201 = arith.constant 0 : index
    %c0_202 = arith.constant 0 : index
    %357 = vector.load %arg5[%c0_200, %c0_201, %c0_202] : memref<1x32x32xbf16, #tpu.memory_space<vmem>>, vector<1x32x32xbf16>
    %358 = vector.shape_cast %357 : vector<1x32x32xbf16> to vector<32x32xbf16>
    %cst_203 = arith.constant dense<0.000000e+00> : vector<40x32xf32>
    %359 = tpu.matmul %356, %358, %cst_203 {dimension_numbers = #tpu.dot_dimension_numbers<[1], [0], [0], [1], [0, 0, 1, 1], [], []>} : vector<40x32xbf16>, vector<32x32xbf16>, vector<40x32xf32> -> vector<40x32xf32>
    %c0_204 = arith.constant 0 : index
    %c0_205 = arith.constant 0 : index
    %c0_206 = arith.constant 0 : index
    %360 = vector.load %arg6[%c0_204, %c0_205, %c0_206] : memref<1x1x32xf32, #tpu.memory_space<vmem>>, vector<1x1x32xf32>
    %361 = vector.shape_cast %360 : vector<1x1x32xf32> to vector<1x32xf32>
    %362 = vector.broadcast %361 : vector<1x32xf32> to vector<40x32xf32>
    %363 = arith.addf %359, %362 : vector<40x32xf32>
    %364 = arith.addf %3, %363 : vector<40x32xf32>
    %c0_207 = arith.constant 0 : index
    %c0_208 = arith.constant 0 : index
    %c0_209 = arith.constant 0 : index
    %365 = vector.load %arg7[%c0_207, %c0_208, %c0_209] : memref<1x1x32xf32, #tpu.memory_space<vmem>>, vector<1x1x32xf32>
    %366 = vector.shape_cast %365 : vector<1x1x32xf32> to vector<1x32xf32>
    %c0_210 = arith.constant 0 : index
    %c0_211 = arith.constant 0 : index
    %c0_212 = arith.constant 0 : index
    %367 = vector.load %arg8[%c0_210, %c0_211, %c0_212] : memref<1x1x32xf32, #tpu.memory_space<vmem>>, vector<1x1x32xf32>
    %368 = vector.shape_cast %367 : vector<1x1x32xf32> to vector<1x32xf32>
    %cst_213 = arith.constant dense<0.000000e+00> : vector<40xf32>
    %369 = vector.multi_reduction <add>, %364, %cst_213 [1] : vector<40x32xf32> to vector<40xf32>
    %370 = vector.shape_cast %369 : vector<40xf32> to vector<40x1xf32>
    %cst_214 = arith.constant 3.200000e+01 : f32
    %371 = vector.broadcast %cst_214 : f32 to vector<40x1xf32>
    %372 = arith.divf %370, %371 : vector<40x1xf32>
    %373 = vector.broadcast %372 : vector<40x1xf32> to vector<40x32xf32>
    %374 = arith.subf %364, %373 : vector<40x32xf32>
    %375 = arith.mulf %374, %374 : vector<40x32xf32>
    %cst_215 = arith.constant dense<0.000000e+00> : vector<40xf32>
    %376 = vector.multi_reduction <add>, %375, %cst_215 [1] : vector<40x32xf32> to vector<40xf32>
    %377 = vector.shape_cast %376 : vector<40xf32> to vector<40x1xf32>
    %cst_216 = arith.constant 3.200000e+01 : f32
    %378 = vector.broadcast %cst_216 : f32 to vector<40x1xf32>
    %379 = arith.divf %377, %378 : vector<40x1xf32>
    %380 = vector.broadcast %372 : vector<40x1xf32> to vector<40x32xf32>
    %381 = arith.subf %364, %380 : vector<40x32xf32>
    %cst_217 = arith.constant 9.99999974E-6 : f32
    %382 = vector.broadcast %cst_217 : f32 to vector<40x1xf32>
    %383 = arith.addf %379, %382 : vector<40x1xf32>
    %384 = math.rsqrt %383 : vector<40x1xf32>
    %385 = vector.broadcast %384 : vector<40x1xf32> to vector<40x32xf32>
    %386 = arith.mulf %381, %385 : vector<40x32xf32>
    %387 = vector.broadcast %366 : vector<1x32xf32> to vector<40x32xf32>
    %388 = arith.mulf %386, %387 : vector<40x32xf32>
    %389 = vector.broadcast %368 : vector<1x32xf32> to vector<40x32xf32>
    %390 = arith.addf %388, %389 : vector<40x32xf32>
    %391 = arith.truncf %390 : vector<40x32xf32> to vector<40x32xbf16>
    %c0_218 = arith.constant 0 : index
    %c0_219 = arith.constant 0 : index
    %c0_220 = arith.constant 0 : index
    %392 = vector.load %arg9[%c0_218, %c0_219, %c0_220] : memref<1x32x64xbf16, #tpu.memory_space<vmem>>, vector<1x32x64xbf16>
    %393 = vector.shape_cast %392 : vector<1x32x64xbf16> to vector<32x64xbf16>
    %cst_221 = arith.constant dense<0.000000e+00> : vector<40x64xf32>
    %394 = tpu.matmul %391, %393, %cst_221 {dimension_numbers = #tpu.dot_dimension_numbers<[1], [0], [0], [1], [0, 0, 1, 1], [], []>} : vector<40x32xbf16>, vector<32x64xbf16>, vector<40x64xf32> -> vector<40x64xf32>
    %c0_222 = arith.constant 0 : index
    %c0_223 = arith.constant 0 : index
    %c0_224 = arith.constant 0 : index
    %395 = vector.load %arg10[%c0_222, %c0_223, %c0_224] : memref<1x1x64xf32, #tpu.memory_space<vmem>>, vector<1x1x64xf32>
    %396 = vector.shape_cast %395 : vector<1x1x64xf32> to vector<1x64xf32>
    %397 = vector.broadcast %396 : vector<1x64xf32> to vector<40x64xf32>
    %398 = arith.addf %394, %397 : vector<40x64xf32>
    %cst_225 = arith.constant 5.000000e-01 : f32
    %399 = vector.broadcast %cst_225 : f32 to vector<40x64xf32>
    %400 = arith.mulf %399, %398 : vector<40x64xf32>
    %cst_226 = arith.constant 0.707106769 : f32
    %401 = vector.broadcast %cst_226 : f32 to vector<40x64xf32>
    %402 = arith.mulf %398, %401 : vector<40x64xf32>
    %cst_227 = arith.constant 0.000000e+00 : f32
    %403 = vector.broadcast %cst_227 : f32 to vector<40x64xf32>
    %404 = arith.cmpf oge, %402, %403 : vector<40x64xf32>
    %cst_228 = arith.constant 1.000000e+00 : f32
    %cst_229 = arith.constant -1.000000e+00 : f32
    %405 = vector.broadcast %cst_228 : f32 to vector<40x64xf32>
    %406 = vector.broadcast %cst_229 : f32 to vector<40x64xf32>
    %407 = arith.select %404, %405, %406 : vector<40x64xi1>, vector<40x64xf32>
    %408 = arith.mulf %407, %402 : vector<40x64xf32>
    %cst_230 = arith.constant 0.327591091 : f32
    %409 = vector.broadcast %cst_230 : f32 to vector<40x64xf32>
    %410 = arith.mulf %409, %408 : vector<40x64xf32>
    %cst_231 = arith.constant 1.000000e+00 : f32
    %411 = vector.broadcast %cst_231 : f32 to vector<40x64xf32>
    %412 = arith.addf %411, %410 : vector<40x64xf32>
    %cst_232 = arith.constant 1.000000e+00 : f32
    %413 = vector.broadcast %cst_232 : f32 to vector<40x64xf32>
    %414 = arith.divf %413, %412 : vector<40x64xf32>
    %cst_233 = arith.constant 1.06140542 : f32
    %415 = vector.broadcast %cst_233 : f32 to vector<40x64xf32>
    %416 = arith.mulf %415, %414 : vector<40x64xf32>
    %cst_234 = arith.constant -1.45315206 : f32
    %417 = vector.broadcast %cst_234 : f32 to vector<40x64xf32>
    %418 = arith.addf %416, %417 : vector<40x64xf32>
    %419 = arith.mulf %418, %414 : vector<40x64xf32>
    %cst_235 = arith.constant 1.42141378 : f32
    %420 = vector.broadcast %cst_235 : f32 to vector<40x64xf32>
    %421 = arith.addf %419, %420 : vector<40x64xf32>
    %422 = arith.mulf %421, %414 : vector<40x64xf32>
    %cst_236 = arith.constant -0.284496725 : f32
    %423 = vector.broadcast %cst_236 : f32 to vector<40x64xf32>
    %424 = arith.addf %422, %423 : vector<40x64xf32>
    %425 = arith.mulf %424, %414 : vector<40x64xf32>
    %cst_237 = arith.constant 0.254829586 : f32
    %426 = vector.broadcast %cst_237 : f32 to vector<40x64xf32>
    %427 = arith.addf %425, %426 : vector<40x64xf32>
    %428 = arith.mulf %427, %414 : vector<40x64xf32>
    %cst_238 = arith.constant 0.000000e+00 : f32
    %429 = vector.broadcast %cst_238 : f32 to vector<40x64xf32>
    %430 = arith.subf %429, %408 : vector<40x64xf32>
    %431 = arith.mulf %430, %408 : vector<40x64xf32>
    %432 = math.exp %431 : vector<40x64xf32>
    %433 = arith.mulf %428, %432 : vector<40x64xf32>
    %cst_239 = arith.constant 1.000000e+00 : f32
    %434 = vector.broadcast %cst_239 : f32 to vector<40x64xf32>
    %435 = arith.subf %434, %433 : vector<40x64xf32>
    %436 = arith.mulf %407, %435 : vector<40x64xf32>
    %cst_240 = arith.constant 1.000000e+00 : f32
    %437 = vector.broadcast %cst_240 : f32 to vector<40x64xf32>
    %438 = arith.addf %437, %436 : vector<40x64xf32>
    %439 = arith.mulf %400, %438 : vector<40x64xf32>
    %440 = arith.truncf %439 : vector<40x64xf32> to vector<40x64xbf16>
    %c0_241 = arith.constant 0 : index
    %c0_242 = arith.constant 0 : index
    %c0_243 = arith.constant 0 : index
    %441 = vector.load %arg11[%c0_241, %c0_242, %c0_243] : memref<1x64x32xbf16, #tpu.memory_space<vmem>>, vector<1x64x32xbf16>
    %442 = vector.shape_cast %441 : vector<1x64x32xbf16> to vector<64x32xbf16>
    %cst_244 = arith.constant dense<0.000000e+00> : vector<40x32xf32>
    %443 = tpu.matmul %440, %442, %cst_244 {dimension_numbers = #tpu.dot_dimension_numbers<[1], [0], [0], [1], [0, 0, 1, 1], [], []>} : vector<40x64xbf16>, vector<64x32xbf16>, vector<40x32xf32> -> vector<40x32xf32>
    %c0_245 = arith.constant 0 : index
    %c0_246 = arith.constant 0 : index
    %c0_247 = arith.constant 0 : index
    %444 = vector.load %arg12[%c0_245, %c0_246, %c0_247] : memref<1x1x32xf32, #tpu.memory_space<vmem>>, vector<1x1x32xf32>
    %445 = vector.shape_cast %444 : vector<1x1x32xf32> to vector<1x32xf32>
    %446 = vector.broadcast %445 : vector<1x32xf32> to vector<40x32xf32>
    %447 = arith.addf %443, %446 : vector<40x32xf32>
    %448 = arith.addf %364, %447 : vector<40x32xf32>
    %c0_248 = arith.constant 0 : index
    %c0_249 = arith.constant 0 : index
    %449 = vector.load %arg16[%c0_248, %c0_249] : memref<40x32xf32, #tpu.memory_space<vmem>>, vector<40x32xf32>
    tpu.vector_store %arg16[%c0_248, %c0_249], %448 {strides = array<i32>} : memref<40x32xf32, #tpu.memory_space<vmem>>, vector<40x32xf32>,
    %c1_i32 = arith.constant 1 : i32
    %450 = arith.cmpi eq, %arg0, %c1_i32 : i32
    %451 = arith.extui %450 : i1 to i32
    %c0_i32_250 = arith.constant 0 : i32
    %452 = arith.cmpi ne, %451, %c0_i32_250 : i32
    scf.if %452 {
      %c0_251 = arith.constant 0 : index
      %c0_252 = arith.constant 0 : index
      %453 = vector.load %arg13[%c0_251, %c0_252] : memref<1x32xf32, #tpu.memory_space<vmem>>, vector<1x32xf32>
      %c0_253 = arith.constant 0 : index
      %c0_254 = arith.constant 0 : index
      %454 = vector.load %arg14[%c0_253, %c0_254] : memref<1x32xf32, #tpu.memory_space<vmem>>, vector<1x32xf32>
      %cst_255 = arith.constant dense<0.000000e+00> : vector<40xf32>
      %455 = vector.multi_reduction <add>, %448, %cst_255 [1] : vector<40x32xf32> to vector<40xf32>
      %456 = vector.shape_cast %455 : vector<40xf32> to vector<40x1xf32>
      %cst_256 = arith.constant 3.200000e+01 : f32
      %457 = vector.broadcast %cst_256 : f32 to vector<40x1xf32>
      %458 = arith.divf %456, %457 : vector<40x1xf32>
      %459 = vector.broadcast %458 : vector<40x1xf32> to vector<40x32xf32>
      %460 = arith.subf %448, %459 : vector<40x32xf32>
      %461 = arith.mulf %460, %460 : vector<40x32xf32>
      %cst_257 = arith.constant dense<0.000000e+00> : vector<40xf32>
      %462 = vector.multi_reduction <add>, %461, %cst_257 [1] : vector<40x32xf32> to vector<40xf32>
      %463 = vector.shape_cast %462 : vector<40xf32> to vector<40x1xf32>
      %cst_258 = arith.constant 3.200000e+01 : f32
      %464 = vector.broadcast %cst_258 : f32 to vector<40x1xf32>
      %465 = arith.divf %463, %464 : vector<40x1xf32>
      %466 = vector.broadcast %458 : vector<40x1xf32> to vector<40x32xf32>
      %467 = arith.subf %448, %466 : vector<40x32xf32>
      %cst_259 = arith.constant 9.99999974E-6 : f32
      %468 = vector.broadcast %cst_259 : f32 to vector<40x1xf32>
      %469 = arith.addf %465, %468 : vector<40x1xf32>
      %470 = math.rsqrt %469 : vector<40x1xf32>
      %471 = vector.broadcast %470 : vector<40x1xf32> to vector<40x32xf32>
      %472 = arith.mulf %467, %471 : vector<40x32xf32>
      %473 = vector.broadcast %453 : vector<1x32xf32> to vector<40x32xf32>
      %474 = arith.mulf %472, %473 : vector<40x32xf32>
      %475 = vector.broadcast %454 : vector<1x32xf32> to vector<40x32xf32>
      %476 = arith.addf %474, %475 : vector<40x32xf32>
      %c0_260 = arith.constant 0 : index
      %c0_261 = arith.constant 0 : index
      %477 = vector.load %arg15[%c0_260, %c0_261] : memref<40x32xf32, #tpu.memory_space<vmem>>, vector<40x32xf32>
      tpu.vector_store %arg15[%c0_260, %c0_261], %476 {strides = array<i32>} : memref<40x32xf32, #tpu.memory_space<vmem>>, vector<40x32xf32>,
    } else {
    }
    return
  }
  func.func @transform_0(%arg0: i32) -> (i32, i32) {
    %c0_i32 = arith.constant 0 : i32
    %c0_i32_0 = arith.constant 0 : i32
    %c0_i32_1 = arith.constant 0 : i32
    return %c0_i32, %c0_i32_0 : i32, i32
  }
  func.func @transform_1(%arg0: i32) -> (i32, i32, i32) {
    %c0_i32 = arith.constant 0 : i32
    %c0_i32_0 = arith.constant 0 : i32
    %c0_i32_1 = arith.constant 0 : i32
    return %arg0, %c0_i32, %c0_i32_0 : i32, i32, i32
  }
  func.func @transform_2(%arg0: i32) -> (i32, i32, i32) {
    %c0_i32 = arith.constant 0 : i32
    %c0_i32_0 = arith.constant 0 : i32
    %c0_i32_1 = arith.constant 0 : i32
    return %arg0, %c0_i32, %c0_i32_0 : i32, i32, i32
  }
  func.func @transform_3(%arg0: i32) -> (i32, i32, i32) {
    %c0_i32 = arith.constant 0 : i32
    %c0_i32_0 = arith.constant 0 : i32
    %c0_i32_1 = arith.constant 0 : i32
    return %arg0, %c0_i32, %c0_i32_0 : i32, i32, i32
  }
  func.func @transform_4(%arg0: i32) -> (i32, i32, i32) {
    %c0_i32 = arith.constant 0 : i32
    %c0_i32_0 = arith.constant 0 : i32
    %c0_i32_1 = arith.constant 0 : i32
    return %arg0, %c0_i32, %c0_i32_0 : i32, i32, i32
  }
  func.func @transform_5(%arg0: i32) -> (i32, i32, i32) {
    %c0_i32 = arith.constant 0 : i32
    %c0_i32_0 = arith.constant 0 : i32
    %c0_i32_1 = arith.constant 0 : i32
    return %arg0, %c0_i32, %c0_i32_0 : i32, i32, i32
  }
  func.func @transform_6(%arg0: i32) -> (i32, i32, i32) {
    %c0_i32 = arith.constant 0 : i32
    %c0_i32_0 = arith.constant 0 : i32
    %c0_i32_1 = arith.constant 0 : i32
    return %arg0, %c0_i32, %c0_i32_0 : i32, i32, i32
  }
  func.func @transform_7(%arg0: i32) -> (i32, i32, i32) {
    %c0_i32 = arith.constant 0 : i32
    %c0_i32_0 = arith.constant 0 : i32
    %c0_i32_1 = arith.constant 0 : i32
    return %arg0, %c0_i32, %c0_i32_0 : i32, i32, i32
  }
  func.func @transform_8(%arg0: i32) -> (i32, i32, i32) {
    %c0_i32 = arith.constant 0 : i32
    %c0_i32_0 = arith.constant 0 : i32
    %c0_i32_1 = arith.constant 0 : i32
    return %arg0, %c0_i32, %c0_i32_0 : i32, i32, i32
  }
  func.func @transform_9(%arg0: i32) -> (i32, i32, i32) {
    %c0_i32 = arith.constant 0 : i32
    %c0_i32_0 = arith.constant 0 : i32
    %c0_i32_1 = arith.constant 0 : i32
    return %arg0, %c0_i32, %c0_i32_0 : i32, i32, i32
  }
  func.func @transform_10(%arg0: i32) -> (i32, i32, i32) {
    %c0_i32 = arith.constant 0 : i32
    %c0_i32_0 = arith.constant 0 : i32
    %c0_i32_1 = arith.constant 0 : i32
    return %arg0, %c0_i32, %c0_i32_0 : i32, i32, i32
  }
  func.func @transform_11(%arg0: i32) -> (i32, i32, i32) {
    %c0_i32 = arith.constant 0 : i32
    %c0_i32_0 = arith.constant 0 : i32
    %c0_i32_1 = arith.constant 0 : i32
    return %arg0, %c0_i32, %c0_i32_0 : i32, i32, i32
  }
  func.func @transform_12(%arg0: i32) -> (i32, i32) {
    %c0_i32 = arith.constant 0 : i32
    %c0_i32_0 = arith.constant 0 : i32
    %c0_i32_1 = arith.constant 0 : i32
    return %c0_i32, %c0_i32_0 : i32, i32
  }
  func.func @transform_13(%arg0: i32) -> (i32, i32) {
    %c0_i32 = arith.constant 0 : i32
    %c0_i32_0 = arith.constant 0 : i32
    %c0_i32_1 = arith.constant 0 : i32
    return %c0_i32, %c0_i32_0 : i32, i32
  }
  func.func @transform_14(%arg0: i32) -> (i32, i32) {
    %c0_i32 = arith.constant 0 : i32
    %c0_i32_0 = arith.constant 0 : i32
    %c0_i32_1 = arith.constant 0 : i32
    return %c0_i32, %c0_i32_0 : i32, i32
  }
}

</mosaic_0001>

<bundles_post_ra>
// kernel: _lambda_.3
= control target key start
LH: loop header
LB: loop body
LE: loop exit
PB: predicated region body
PF: predicated region fallthrough
CT: control target
= control target key end

     0   :  { %s2031_s29 = smov 0   ;;  %s2294_s0 = inlined_call_operand.vmem [shape: f32[10,32], index: 0, kind: input, shape index: {}]   ;;  %s2295_s1 = inlined_call_operand.vmem [shape: f32[2,1,32], index: 1, kind: input, shape index: {}]   ;;  %s2296_s2 = inlined_call_operand.vmem [shape: f32[2,1,32], index: 2, kind: input, shape index: {}]   ;;  %s2297_s3 = inlined_call_operand.vmem [shape: bf16[2,32,96], index: 3, kind: input, shape index: {}]   ;;  %s2298_s4 = inlined_call_operand.vmem [shape: bf16[2,32,32], index: 4, kind: input, shape index: {}]   ;;  %s2299_s5 = inlined_call_operand.vmem [shape: f32[2,1,32], index: 5, kind: input, shape index: {}]   ;;  %s2300_s6 = inlined_call_operand.vmem [shape: f32[2,1,32], index: 6, kind: input, shape index: {}]   ;;  %s2301_s7 = inlined_call_operand.vmem [shape: f32[2,1,32], index: 7, kind: input, shape index: {}]   ;;  %s2302_s8 = inlined_call_operand.vmem [shape: bf16[2,32,64], index: 8, kind: input, shape index: {}]   ;;  %s2303_s9 = inlined_call_operand.vmem [shape: f32[2,1,64], index: 9, kind: input, shape index: {}]   ;;  %s2304_s10 = inlined_call_operand.vmem [shape: bf16[2,64,32], index: 10, kind: input, shape index: {}]   ;;  %s2305_s11 = inlined_call_operand.vmem [shape: f32[2,1,32], index: 11, kind: input, shape index: {}]   ;;  %s2306_s12 = inlined_call_operand.vmem [shape: f32[1,32], index: 12, kind: input, shape index: {}]   ;;  %s2307_s13 = inlined_call_operand.vmem [shape: f32[1,32], index: 13, kind: input, shape index: {}]   ;;  %s2308_s14 = inlined_call_operand.vmem [shape: f32[10,32], index: 14, kind: output, shape index: {}]  }
   0x1   :  { %2311 = sst [smem:[#allocation6_spill]] %s2297_s3 }
   0x2   :  { %2312 = sst [smem:[#allocation7_spill]] %s2298_s4 }
   0x3   :  { %2313 = sst [smem:[#allocation8_spill]] %s2306_s12 }
   0x4   :  { %2314 = sst [smem:[#allocation9_spill]] %s2307_s13 }
   0x5   :  { %2315 = sst [smem:[#allocation10_spill]] %s2308_s14 }
   0x6 LB: > { %2316 = sst [smem:[#allocation5_spill]] %s1944_s29  ;;  %s2037_s30 = sadd.s32 4294967295, %s1944_s29   ;;  %s1944_s29 = sphi %s2031_s29, %s24_s29  }
   0x7   : > { %p1712_p0 = scmp.ge.s32.totalorder %s1944_s29, 1  ;;  %p493_p1 = scmp.lt.s32.totalorder %s1944_s29, 3 }
   0x9   : > { %p494_p2 = pnand %p1712_p0, %p493_p1 }
   0xa   : > { %p570_p3 = scmp.lt.s32.totalorder (!%p494_p2), %s2037_s30, 1  ;;  %s2317_s3 = sld [smem:[#allocation6_spill]] (!%p494_p2) }
   0xb   : > { %497 = sbr.rel (%p494_p2) target bundleno = 2928 (0xb70), region = 76  ;;  %s2318_s4 = sld [smem:[#allocation7_spill]] (!%p494_p2) }
   0xc   : > { %p1721_p4 = scmp.ne.s32.totalorder (!%p494_p2), %s2037_s30, 0 }
  0x12   : > { %s2043_s15 = scalar_select %p570_p3, %s2037_s30, 1 }
  0x13   : > { %615 = sbr.rel (%p1721_p4) target bundleno = 26 (0x1a), region = 80  ;;  %v616_v0 = vld [vmem:[%s2294_s0] sm:$0xff] (!%p1721_p4)  ;;  %vm618_vm0 = vcmask (!%p1721_p4), 261120   ;;  %v617_v1 = vld [vmem:[%s2294_s0 + $0x8] sm:$0x3] (!%p1721_p4)  ;;  %vm620_vm1 = vcmask (!%p1721_p4), 254976  }
  0x14   : > { %s1756_s22 = sshll.u32 %s2043_s15, 4  ;;  %s594_s13 = scalar_lea.vmem %s2301_s7, %s2043_s15  ;;  %619 = vst.msk [vmem:[#allocation2] sm:$0xff] (!%p1721_p4), %vm618_vm0, %v616_v0 }
  0x15   : > { %s2061_s28 = scalar_lea.vmem %s2317_s3, %s1756_s22  ;;  %s2066_s29 = scalar_lea.vmem %s2318_s4, %s1756_s22  ;;  %621 = vst.msk [vmem:[#allocation2 + $0x8] sm:$0x3] (!%p1721_p4), %vm620_vm1, %v617_v1 }
  0x16   : > { %s2079_s25 = scalar_lea.vmem %s2302_s8, %s1756_s22  ;;  %s602_s3 = scalar_lea.vmem %s2303_s9, %s2043_s15 }
  0x17   : > { %s1759_s16 = sshll.u32 %s2043_s15, 5  ;;  %s610_s12 = scalar_lea.vmem %s2305_s11, %s2043_s15 }
  0x18   : > { %s2093_s19 = scalar_lea.vmem %s2304_s10, %s1759_s16 }
  0x1a PF: > { %vm626_vm2 = vcmask 261120   ;;  %vm630_vm3 = vcmask 254976   ;;  %v1892_v16 = vld [vmem:[%s2061_s28] sm:$0xff]   ;;  %v1946_v17 = vmov 0.0   ;;  %v1893_v18 = vld [vmem:[%s2061_s28 + $0x8] sm:$0xff]   ;;  %vm1947_vm4 = vmmov 0   ;;  %s2319_s24 = scalar_lea.vmem %s2295_s1, %s2043_s15  ;;  %s2320_s16 = scalar_lea.vmem %s2296_s2, %s2043_s15 }
  0x1b   : > { %v2102_v2 = vld [vmem:[#allocation2] sm:$0xff]  ;;  %1790 = vmatprep.subr.bf16.mxu0 %v1946_v17  ;;  %1798 = vmatprep.subr.bf16.mxu1 %v1946_v17  ;;  %vm732_vm5 = vcmask 785408   ;;  %vm734_vm6 = vcmask 779264   ;;  %s1948_s17 = smov 80   ;;  %s1949_s14 = smov 96   ;;  %vm741_vm7 = vcmask 130048  }
  0x1c   : > { %v2104_v3 = vld [vmem:[#allocation2 + $0x8] sm:$0x3]  ;;  %v627_v4 = vsel %vm626_vm2, %v2102_v2, 0.0  ;;  %1791 = vmatpush3.bf16.msra.mxu0 %v1892_v16  ;;  %1794 = vmatprep.mubr.msk.bf16.mxu0 %vm1947_vm4, %v1946_v17  ;;  %v1722_v27 = vld [vmem:[%s2319_s24] ss:$0 sm:$0xff]  ;;  %s1950_s18 = smov 112   ;;  %s2321_s4 = scalar_lea.vmem %s2299_s5, %s2043_s15 }
  0x1d   : > { %v631_v5 = vsel %vm630_vm3, %v2104_v3, 0.0  ;;  %628 = vadd.xlane.f32.xlu0 %v627_v4  ;;  %1792 = vmatprep.subr.bf16.mxu0 %v1946_v17  ;;  %v1723_v31 = vld [vmem:[%s2320_s16] ss:$0 sm:$0xff]  ;;  %vm788_vm8 = vcmask 36864   ;;  %s1951_s21 = smov 64   ;;  %vm807_vm9 = vcmask 1041408  }
  0x1e   : > { %1800 = vmatprep.mubr.msk.bf16.mxu1 %vm1947_vm4, %v1946_v17  ;;  %vm808_vm10 = vcmask 1042432   ;;  %s1953_s22 = smov 48   ;;  %vm803_vm11 = vcmask 39936   ;;  %vm854_vm12 = vcmask 126976   ;;  %s1954_s20 = smov 16   ;;  %vm973_vm13 = vcmask 258176  }
  0x1f   : > { %vm1483_vm0 = vcmask 523264   ;;  %p1751_p5 = scmp.ne.s32.totalorder %s2037_s30, 1 }
  0x20   : > { %1793 = vmatpush3.bf16.msra.mxu0 %v1893_v18 }
  0x21   : > { %632 = vadd.xlane.f32.xlu0 %v631_v5  ;;  %1804 = vmatprep.subr.bf16.mxu0 %v1946_v17 }
  0xaa   : > { %v629_v6 = vpop.xlane.xlu0 %628 }
  0xab   : > { %v635_v7 = vmul.f32 0.03125, %v629_v6 }
  0xad   : > { %v637_v8 = vsub.f32 %v2102_v2, %v635_v7 }
  0xae   : > { %v633_v9 = vpop.xlane.xlu0 %632 }
  0xaf   : > { %v636_v10 = vmul.f32 0.03125, %v633_v9  ;;  %v639_v11 = vmul.f32 %v637_v8, %v637_v8 }
  0xb1   : > { %v638_v12 = vsub.f32 %v2104_v3, %v636_v10  ;;  %v641_v13 = vsel %vm626_vm2, %v639_v11, 0.0 }
  0xb2   : > { %642 = vadd.xlane.f32.xlu1 %v641_v13 }
  0xb3   : > { %v640_v14 = vmul.f32 %v638_v12, %v638_v12 }
  0xb5   : > { %v644_v15 = vsel %vm630_vm3, %v640_v14, 0.0 }
  0xb6   : > { %645 = vadd.xlane.f32.xlu1 %v644_v15 }
 0x13f   : > { %v643_v19 = vpop.xlane.xlu1 %642 }
 0x140   : > { %v647_v20 = vmul.f32 0.03125, %v643_v19 }
 0x142   : > { %v649_v21 = vadd.f32 1e-05, %v647_v20  ;;  %v1952_v20 = vmov 65535  }
 0x143   : > { %v646_v22 = vpop.xlane.xlu1 %645 }
 0x144   : > { %1902 = vrsqrt.f32 %v649_v21  ;;  %v648_v23 = vmul.f32 0.03125, %v646_v22  ;;  %v809_v21 = vsel %vm807_vm9, 4294967295, %v1952_v20 }
 0x146   : > { %v650_v24 = vadd.f32 1e-05, %v648_v23 }
 0x148   : > { %1904 = vrsqrt.f32 %v650_v24  ;;  %v2179_v24 = vsel %vm808_vm10, %v809_v21, 0 }
 0x14e   : > { %v1903_v25 = vpop.eup %1902 }
 0x14f   : > { %v653_v26 = vmul.f32 %v1903_v25, %v637_v8 }
 0x151   : > { %v661_v30 = vmul.f32 %v1722_v27, %v653_v26 }
 0x152   : > { %v1905_v28 = vpop.eup %1904 }
 0x153   : > { %v654_v29 = vmul.f32 %v1905_v28, %v638_v12  ;;  %v669_v33 = vadd.f32 %v1723_v31, %v661_v30 }
 0x155   : > { %v662_v32 = vmul.f32 %v1722_v27, %v654_v29 }
 0x157   : > { %v670_v34 = vadd.f32 %v1723_v31, %v662_v32 }
 0x159   : > { %v671_v35 = vpack.c.bf16 %v670_v34, %v669_v33 }
 0x15b   : > { %1795 = vmatmul.mubr.msk.bf16.vlgmr.msra.gmra.mrb[0].mxu0 %vm626_vm2, %v671_v35 }
 0x15c   : > { %1806 = vmatprep.mubr.msk.bf16.mxu0 %vm1947_vm4, %v1946_v17 }
 0x22e   : > { %v725_v36 = vpop.f32.mrb[0].mxu0 }
 0x22f   : > { %733 = vst.msk [vmem:[#allocation3] sm:$0xff] %vm732_vm5, %v725_v36  ;;  %v1796_v37 = vpop.f32.mrb[1].mxu0 }
 0x230   : > { %v728_v38 = vpop.f32.mrb[2].mxu0 }
 0x231   : > { %735 = vst.msk [vmem:[#allocation3 + $0x8] sm:$0x3] %vm734_vm6, %v728_v38  ;;  %v1797_v39 = vpop.f32.mrb[3].mxu0 }
 0x236   : > { %v856_v40 = vld [vmem:[#allocation3] sm:$0x1f] }
 0x237   : > { %v736_v41 = vld [vmem:[#allocation3] sm:$0x1f]  ;;  %v2137_v42 = vpack.c.bf16 %v856_v40, %v856_v40 }
 0x238   : > { %v2139_v43 = vpack.c.bf16 %v736_v41, %v736_v41  ;;  %v1087_v44 = vld [vmem:[#allocation3 + $0x5] sm:$0x1f] }
 0x239   : > { %861 = vrot.lane.b32.xlu1 %v2137_v42, %s1948_s17  ;;  %v2143_v45 = vpack.c.bf16 %v1087_v44, %v1087_v44  ;;  %v975_v46 = vld [vmem:[#allocation3 + $0x5] sm:$0x1f] }
 0x23a   : > { %739 = vrot.lane.b32.xlu0 %v2139_v43, %s1949_s14  ;;  %v2147_v47 = vpack.c.bf16 %v975_v46, %v975_v46 }
 0x23d   : > { %859 = vrot.lane.b32.xlu1 %v2137_v42, %s1950_s18 }
 0x23e   : > { %1092 = vrot.lane.b32.xlu0 %v2143_v45, %s1948_s17 }
 0x241   : > { %978 = vrot.lane.b32.xlu1 %v2147_v47, %s1949_s14 }
 0x245   : > { %1090 = vrot.lane.b32.xlu1 %v2143_v45, %s1950_s18  ;;  %s2324_s18 = sld [smem:[#allocation9_spill]] (!%p1751_p5) }
 0x2ab   : > { %v862_v50 = vpop.permute.xlu1 %861 }
 0x2ac   : > { %v740_v48 = vpop.permute.xlu0 %739  ;;  %v867_v52 = vsel %vm741_vm7, %v862_v50, 0 }
 0x2ad   : > { %v746_v49 = vsel %vm741_vm7, %v740_v48, 0 }
 0x2ae   : > { %1799 = vmatpush3.bf16.xpose.msra.mxu1 %v746_v49 }
 0x2af   : > { %1810 = vmatprep.subr.bf16.mxu1 %v1946_v17  ;;  %v860_v51 = vpop.permute.xlu1 %859 }
 0x2b0   : > { %v1093_v55 = vpop.permute.xlu0 %1092 }
 0x2b1   : > { %v1098_v56 = vsel %vm741_vm7, %v1093_v55, 0 }
 0x2b3   : > { %v979_v53 = vpop.permute.xlu1 %978 }
 0x2b4   : > { %v984_v54 = vsel %vm741_vm7, %v979_v53, 0 }
 0x2b5   : > { %1801 = vmatmul.mubr.msk.bf16.vlgmr.msra.gmra.mrb[0].mxu1 %vm741_vm7, %v2139_v43 }
 0x2b6   : > { %1811 = vmatpush3.bf16.xpose.msra.mxu1 %v867_v52  ;;  %1812 = vmatprep.mubr.msk.bf16.mxu1 %vm1947_vm4, %v1946_v17 }
 0x2b7   : > { %1822 = vmatprep.subr.bf16.mxu1 %v1946_v17  ;;  %v1091_v57 = vpop.permute.xlu1 %1090 }
 0x2bd   : > { %1813 = vmatmul.mubr.msk.bf16.vlgmr.msra.gmra.mrb[4].mxu1 %vm741_vm7, %v860_v51 }
 0x2be   : > { %1823 = vmatpush3.bf16.xpose.msra.mxu1 %v984_v54  ;;  %1824 = vmatprep.mubr.msk.bf16.mxu1 %vm1947_vm4, %v1946_v17 }
 0x2bf   : > { %1834 = vmatprep.subr.bf16.mxu1 %v1946_v17 }
 0x2c5   : > { %1825 = vmatmul.mubr.msk.bf16.vlgmr.msra.gmra.mrb[8].mxu1 %vm741_vm7, %v2147_v47 }
 0x2c6   : > { %1835 = vmatpush3.bf16.xpose.msra.mxu1 %v1098_v56  ;;  %1836 = vmatprep.mubr.msk.bf16.mxu1 %vm1947_vm4, %v1946_v17 }
 0x2c7   : > { %1846 = vmatprep.subr.bf16.mxu1 %v1946_v17 }
 0x2cd   : > { %1837 = vmatmul.mubr.msk.bf16.vlgmr.msra.gmra.mrb[12].mxu1 %vm741_vm7, %v1091_v57 }
 0x2ce   : > { %1850 = vmatprep.mubr.msk.bf16.mxu1 %vm1947_vm4, %v1946_v17 }
 0x388   : > { %v782_v58 = vpop.f32.mrb[0].mxu1 }
 0x389   : > { %v1802_v59 = vpop.f32.mrb[1].mxu1  ;;  %v789_v60 = vsel %vm788_vm8, %v782_v58, -inf }
 0x38a   : > { %v785_v61 = vpop.f32.mrb[2].mxu1  ;;  %790 = vmax.xlane.f32.xlu0 %v789_v60 }
 0x38b   : > { %v1803_v62 = vpop.f32.mrb[3].mxu1 }
 0x390   : > { %v903_v63 = vpop.f32.mrb[4].mxu1 }
 0x391   : > { %v1814_v0 = vpop.f32.mrb[5].mxu1  ;;  %v909_v1 = vsel %vm788_vm8, %v903_v63, -inf }
 0x392   : > { %v906_v4 = vpop.f32.mrb[6].mxu1  ;;  %910 = vmax.xlane.f32.xlu1 %v909_v1 }
 0x393   : > { %v1815_v5 = vpop.f32.mrb[7].mxu1 }
 0x398   : > { %v1020_v6 = vpop.f32.mrb[8].mxu1 }
 0x399   : > { %v1826_v7 = vpop.f32.mrb[9].mxu1  ;;  %v1026_v8 = vsel %vm788_vm8, %v1020_v6, -inf }
 0x39a   : > { %1027 = vmax.xlane.f32.xlu0 %v1026_v8  ;;  %v1023_v9 = vpop.f32.mrb[10].mxu1 }
 0x39b   : > { %v1827_v10 = vpop.f32.mrb[11].mxu1 }
 0x39c   : > { %v1894_v10 = vld [vmem:[%s2066_s29] sm:$0xff]  }
 0x39d   : > { %1847 = vmatpush3.bf16.msra.mxu1 %v1894_v10 }
 0x39e   : > { %1848 = vmatprep.subr.bf16.mxu1 %v1946_v17 }
 0x3a0   : > { %v1134_v11 = vpop.f32.mrb[12].mxu1 }
 0x3a1   : > { %v1838_v12 = vpop.f32.mrb[13].mxu1  ;;  %v1140_v13 = vsel %vm788_vm8, %v1134_v11, -inf }
 0x3a2   : > { %1141 = vmax.xlane.f32.xlu0 %v1140_v13  ;;  %v1137_v14 = vpop.f32.mrb[14].mxu1 }
 0x3a3   : > { %801 = vrot.lane.b32.xlu1 %v2139_v43, %s1951_s21  ;;  %v1839_v15 = vpop.f32.mrb[15].mxu1 }
 0x417   : > { %v791_v16 = vpop.xlane.xlu0 %790 }
 0x418   : > { %v792_v18 = vsub.f32 %v782_v58, %v791_v16 }
 0x41a   : > { %v793_v19 = vmul.f32 1.442695, %v792_v18 }
 0x41c   : > { %1906 = vpow2.f32 %v793_v19 }
 0x41f   : > { %v911_v22 = vpop.xlane.xlu1 %910 }
 0x420   : > { %v912_v23 = vsub.f32 %v903_v63, %v911_v22 }
 0x422   : > { %v913_v25 = vmul.f32 1.442695, %v912_v23 }
 0x423   : > { %v802_v26 = vpop.permute.xlu1 %801 }
 0x424   : > { %1908 = vpow2.f32 %v913_v25  ;;  %v812_v27 = vand.u32 %v2179_v24, %v802_v26  ;;  %v1735_v26 = vld [vmem:[%s2321_s4] ss:$0 sm:$0xff] }
 0x426   : > { %v1907_v28 = vpop.eup %1906  ;;  %1805 = vmatpush3.bf16.msra.mxu0 %v812_v27 }
 0x427   : > { %v1028_v29 = vpop.xlane.xlu0 %1027  ;;  %v795_v30 = vsel %vm788_vm8, %v1907_v28, 0.0  ;;  %1816 = vmatprep.subr.bf16.mxu0 %v1946_v17 }
 0x428   : > { %v1029_v31 = vsub.f32 %v1020_v6, %v1028_v29  ;;  %796 = vadd.xlane.f32.xlu0 %v795_v30 }
 0x42a   : > { %v1030_v32 = vmul.f32 1.442695, %v1029_v31 }
 0x42c   : > { %1910 = vpow2.f32 %v1030_v32 }
 0x42e   : > { %v1909_v33 = vpop.eup %1908 }
 0x42f   : > { %v1142_v34 = vpop.xlane.xlu0 %1141  ;;  %v915_v35 = vsel %vm788_vm8, %v1909_v33, 0.0 }
 0x430   : > { %v1143_v36 = vsub.f32 %v1134_v11, %v1142_v34  ;;  %916 = vadd.xlane.f32.xlu1 %v915_v35  ;;  %v1895_v11 = vld [vmem:[%s2066_s29 + $0x8] sm:$0xff]  }
 0x431   : > { %1849 = vmatpush3.bf16.msra.mxu1 %v1895_v11 }
 0x432   : > { %v1144_v37 = vmul.f32 1.442695, %v1143_v36  ;;  %1862 = vmatprep.subr.bf16.mxu1 %v1946_v17 }
 0x434   : > { %1912 = vpow2.f32 %v1144_v37 }
 0x436   : > { %v1911_v38 = vpop.eup %1910 }
 0x437   : > { %v1032_v39 = vsel %vm788_vm8, %v1911_v38, 0.0 }
 0x438   : > { %1033 = vadd.xlane.f32.xlu0 %v1032_v39 }
 0x43e   : > { %v1913_v40 = vpop.eup %1912 }
 0x43f   : > { %v1146_v41 = vsel %vm788_vm8, %v1913_v40, 0.0 }
 0x440   : > { %1147 = vadd.xlane.f32.xlu0 %v1146_v41 }
 0x441   : > { %1038 = vrot.lane.b32.xlu1 %v2147_v47, %s1951_s21 }
 0x445   : > { %1152 = vrot.lane.b32.xlu1 %v2143_v45, %s1953_s22 }
 0x456   : > { %921 = vrot.lane.b32.xlu0 %v2137_v42, %s1953_s22 }
 0x4b5   : > { %v797_v43 = vpop.xlane.xlu0 %796 }
 0x4b6   : > { %1914 = vrcp.f32 %v797_v43 }
 0x4bd   : > { %v917_v48 = vpop.xlane.xlu1 %916 }
 0x4be   : > { %1916 = vrcp.f32 %v917_v48  ;;  %v1896_v48 = vld [vmem:[%s2079_s25] sm:$0xff]  }
 0x4c0   : > { %v1915_v44 = vpop.eup %1914 }
 0x4c1   : > { %v799_v46 = vmul.f32 %v1915_v44, %v1907_v28  ;;  %v1039_v53 = vpop.permute.xlu1 %1038 }
 0x4c2   : > { %v1044_v56 = vand.u32 %v1039_v53, %v2179_v24 }
 0x4c3   : > { %v800_v49 = vpack.c.bf16 %v799_v46, %v799_v46 }
 0x4c5   : > { %1807 = vmatmul.mubr.msk.bf16.vlgmr.msra.gmra.mrb[4].mxu0 %vm803_vm11, %v800_v49  ;;  %v1034_v50 = vpop.xlane.xlu0 %1033  ;;  %v1153_v58 = vpop.permute.xlu1 %1152  ;;  %v1897_v49 = vld [vmem:[%s2079_s25 + $0x8] sm:$0xff]   ;;  %s2322_s25 = scalar_lea.vmem %s2300_s6, %s2043_s15  ;;  %s2323_s15 = sld [smem:[#allocation8_spill]] (!%p1751_p5) }
 0x4c6   : > { %1818 = vmatprep.mubr.msk.bf16.mxu0 %vm1947_vm4, %v1946_v17  ;;  %1918 = vrcp.f32 %v1034_v50  ;;  %v1158_v61 = vand.u32 %v1153_v58, %v2179_v24 }
 0x4c8   : > { %v1917_v51 = vpop.eup %1916 }
 0x4c9   : > { %v919_v45 = vmul.f32 %v1917_v51, %v1909_v33 }
 0x4cb   : > { %v920_v54 = vpack.c.bf16 %v919_v45, %v919_v45 }
 0x4cd   : > { %v1148_v47 = vpop.xlane.xlu0 %1147 }
 0x4ce   : > { %1920 = vrcp.f32 %v1148_v47 }
 0x4d0   : > { %v1919_v55 = vpop.eup %1918 }
 0x4d1   : > { %v922_v52 = vpop.permute.xlu0 %921  ;;  %v1036_v57 = vmul.f32 %v1919_v55, %v1911_v38  ;;  %v1739_v55 = vld [vmem:[%s2322_s25] ss:$0 sm:$0xff] }
 0x4d2   : > { %v927_v42 = vand.u32 %v922_v52, %v2179_v24 }
 0x4d3   : > { %v1037_v59 = vpack.c.bf16 %v1036_v57, %v1036_v57 }
 0x4d4   : > { %1817 = vmatpush3.bf16.msra.mxu0 %v927_v42 }
 0x4d5   : > { %1828 = vmatprep.subr.bf16.mxu0 %v1946_v17 }
 0x4d7   : > { %1819 = vmatmul.mubr.msk.bf16.vlgmr.msra.gmra.mrb[8].mxu0 %vm803_vm11, %v920_v54 }
 0x4d8   : > { %1829 = vmatpush3.bf16.msra.mxu0 %v1044_v56  ;;  %1830 = vmatprep.mubr.msk.bf16.mxu0 %vm1947_vm4, %v1946_v17  ;;  %v1921_v60 = vpop.eup %1920 }
 0x4d9   : > { %1840 = vmatprep.subr.bf16.mxu0 %v1946_v17  ;;  %v1150_v62 = vmul.f32 %v1921_v60, %v1913_v40 }
 0x4db   : > { %v1151_v63 = vpack.c.bf16 %v1150_v62, %v1150_v62 }
 0x4df   : > { %1831 = vmatmul.mubr.msk.bf16.vlgmr.msra.gmra.mrb[12].mxu0 %vm803_vm11, %v1037_v59  ;;  %v1740_v59 = vld [vmem:[%s594_s13] ss:$0 sm:$0xff] }
 0x4e0   : > { %1841 = vmatpush3.bf16.msra.mxu0 %v1158_v61  ;;  %1842 = vmatprep.mubr.msk.bf16.mxu0 %vm1947_vm4, %v1946_v17 }
 0x4e1   : > { %1854 = vmatprep.subr.bf16.mxu0 %v1946_v17 }
 0x4e7   : > { %1843 = vmatmul.mubr.msk.bf16.vlgmr.msra.gmra.mrb[16].mxu0 %vm803_vm11, %v1151_v63 }
 0x4e8   : > { %1858 = vmatprep.mubr.msk.bf16.mxu0 %vm1947_vm4, %v1946_v17  ;;  %1855 = vmatpush3.bf16.msra.mxu0 %v1896_v48 }
 0x4e9   : > { %1856 = vmatprep.subr.bf16.mxu0 %v1946_v17 }
 0x4ec   : > { %1857 = vmatpush3.bf16.msra.mxu0 %v1897_v49 }
 0x598   : > { %v848_v0 = vpop.f32.mrb[4].mxu0 }
 0x599   : > { %855 = vst.msk [vmem:[#allocation4] sm:$0x1f] %vm854_vm12, %v848_v0  ;;  %v1808_v1 = vpop.f32.mrb[5].mxu0  ;;  %v1898_v0 = vld [vmem:[%s2093_s19] sm:$0xff]  }
 0x59a   : > { %v851_v4 = vpop.f32.mrb[6].mxu0  ;;  %v1899_v1 = vld [vmem:[%s2093_s19 + $0x8] sm:$0xff]  }
 0x59b   : > { %v1809_v5 = vpop.f32.mrb[7].mxu0  ;;  %v1900_v4 = vld [vmem:[%s2093_s19 + $0x10] sm:$0xff]  }
 0x59c   : > { %v1901_v5 = vld [vmem:[%s2093_s19 + $0x18] sm:$0xff]  }
 0x5aa   : > { %v963_v6 = vpop.f32.mrb[8].mxu0 }
 0x5ab   : > { %970 = vrot.lane.b32.xlu1 %v963_v6, %s1954_s20  ;;  %v1820_v7 = vpop.f32.mrb[9].mxu0  ;;  %v1741_v6 = vld [vmem:[%s602_s3] ss:$0 sm:$0xff] }
 0x5ac   : > { %v966_v8 = vpop.f32.mrb[10].mxu0 }
 0x5ad   : > { %v1821_v9 = vpop.f32.mrb[11].mxu0 }
 0x5b2   : > { %v1080_v12 = vpop.f32.mrb[12].mxu0 }
 0x5b3   : > { %1086 = vst.msk [vmem:[#allocation4 + $0x5] sm:$0x1f] %vm854_vm12, %v1080_v12  ;;  %v1832_v13 = vpop.f32.mrb[13].mxu0 }
 0x5b4   : > { %v1083_v14 = vpop.f32.mrb[14].mxu0 }
 0x5b5   : > { %v1833_v15 = vpop.f32.mrb[15].mxu0 }
 0x5b6   : > { %v1955_v15 = vmov -1.0  }
 0x5ba   : > { %v1194_v16 = vpop.f32.mrb[16].mxu0 }
 0x5bb   : > { %1201 = vrot.lane.b32.xlu1 %v1194_v16, %s1954_s20  ;;  %v1844_v18 = vpop.f32.mrb[17].mxu0  ;;  %s2325_s20 = sld [smem:[#allocation10_spill]] (!%p1751_p5) }
 0x5bc   : > { %v1197_v19 = vpop.f32.mrb[18].mxu0 }
 0x5bd   : > { %v1845_v20 = vpop.f32.mrb[19].mxu0 }
 0x61d   : > { %v971_v21 = vpop.permute.xlu1 %970 }
 0x61e   : > { %974 = vst.msk [vmem:[#allocation4] sm:$0x1f] %vm973_vm13, %v971_v21 }
 0x62d   : > { %v1202_v22 = vpop.permute.xlu1 %1201 }
 0x62e   : > { %1204 = vst.msk [vmem:[#allocation4 + $0x5] sm:$0x1f] %vm973_vm13, %v1202_v22 }
 0x635   : > { %v1205_v23 = vld [vmem:[#allocation4] sm:$0xff]  ;;  %v1206_v24 = vld [vmem:[#allocation4 + $0x8] sm:$0x3] }
 0x636   : > { %v1207_v25 = vpack.c.bf16 %v1206_v24, %v1205_v23 }
 0x638   : > { %1851 = vmatmul.mubr.msk.bf16.vlgmr.msra.gmra.mrb[16].mxu1 %vm626_vm2, %v1207_v25 }
 0x639   : > { %1870 = vmatprep.mubr.msk.bf16.mxu1 %vm1947_vm4, %v1946_v17  ;;  %1863 = vmatpush3.bf16.msra.mxu1 %v1898_v0 }
 0x63a   : > { %1864 = vmatprep.subr.bf16.mxu1 %v1946_v17 }
 0x63d   : > { %1865 = vmatpush3.bf16.msra.mxu1 %v1899_v1  ;;  %v1745_v1 = vld [vmem:[%s610_s12] ss:$0 sm:$0xff] }
 0x63e   : > { %1866 = vmatprep.subr.bf16.mxu1 %v1946_v17 }
 0x641   : > { %1867 = vmatpush3.bf16.msra.mxu1 %v1900_v4 }
 0x642   : > { %1868 = vmatprep.subr.bf16.mxu1 %v1946_v17 }
 0x645   : > { %1869 = vmatpush3.bf16.msra.mxu1 %v1901_v5 }
 0x70b   : > { %v1268_v27 = vpop.f32.mrb[16].mxu1 }
 0x70c   : > { %v1269_v28 = vadd.f32 %v1735_v26, %v1268_v27  ;;  %v1852_v29 = vpop.f32.mrb[17].mxu1 }
 0x70d   : > { %v1271_v30 = vpop.f32.mrb[18].mxu1 }
 0x70e   : > { %v2224_v31 = vadd.f32 %v1269_v28, %v2102_v2  ;;  %v1272_v32 = vadd.f32 %v1735_v26, %v1271_v30  ;;  %v1853_v33 = vpop.f32.mrb[19].mxu1 }
 0x710   : > { %v2227_v34 = vadd.f32 %v1272_v32, %v2104_v3  ;;  %v1279_v35 = vsel %vm626_vm2, %v2224_v31, 0.0 }
 0x711   : > { %1280 = vadd.xlane.f32.xlu0 %v1279_v35 }
 0x712   : > { %v1282_v36 = vsel %vm630_vm3, %v2227_v34, 0.0 }
 0x713   : > { %1283 = vadd.xlane.f32.xlu1 %v1282_v36 }
 0x79e   : > { %v1281_v37 = vpop.xlane.xlu0 %1280 }
 0x79f   : > { %v1285_v38 = vmul.f32 0.03125, %v1281_v37 }
 0x7a0   : > { %v1284_v39 = vpop.xlane.xlu1 %1283 }
 0x7a1   : > { %v1287_v2 = vsub.f32 %v2224_v31, %v1285_v38  ;;  %v1286_v40 = vmul.f32 0.03125, %v1284_v39 }
 0x7a3   : > { %v1288_v41 = vsub.f32 %v2227_v34, %v1286_v40  ;;  %v1289_v3 = vmul.f32 %v1287_v2, %v1287_v2 }
 0x7a5   : > { %v1291_v43 = vsel %vm626_vm2, %v1289_v3, 0.0  ;;  %v1290_v44 = vmul.f32 %v1288_v41, %v1288_v41 }
 0x7a6   : > { %1292 = vadd.xlane.f32.xlu0 %v1291_v43 }
 0x7a7   : > { %v1294_v46 = vsel %vm630_vm3, %v1290_v44, 0.0 }
 0x7aa   : > { %1295 = vadd.xlane.f32.xlu0 %v1294_v46 }
 0x833   : > { %v1293_v50 = vpop.xlane.xlu0 %1292 }
 0x834   : > { %v1297_v47 = vmul.f32 0.03125, %v1293_v50 }
 0x836   : > { %v1299_v51 = vadd.f32 1e-05, %v1297_v47 }
 0x837   : > { %v1296_v45 = vpop.xlane.xlu0 %1295 }
 0x838   : > { %1922 = vrsqrt.f32 %v1299_v51  ;;  %v1298_v52 = vmul.f32 0.03125, %v1296_v45 }
 0x83a   : > { %v1300_v42 = vadd.f32 1e-05, %v1298_v52 }
 0x83c   : > { %1924 = vrsqrt.f32 %v1300_v42 }
 0x842   : > { %v1923_v53 = vpop.eup %1922 }
 0x843   : > { %v1303_v54 = vmul.f32 %v1923_v53, %v1287_v2 }
 0x845   : > { %v1311_v57 = vmul.f32 %v1739_v55, %v1303_v54 }
 0x846   : > { %v1925_v56 = vpop.eup %1924 }
 0x847   : > { %v1304_v58 = vmul.f32 %v1925_v56, %v1288_v41  ;;  %v1319_v61 = vadd.f32 %v1740_v59, %v1311_v57 }
 0x849   : > { %v1312_v60 = vmul.f32 %v1739_v55, %v1304_v58 }
 0x84b   : > { %v1320_v62 = vadd.f32 %v1740_v59, %v1312_v60 }
 0x84d   : > { %v1321_v63 = vpack.c.bf16 %v1320_v62, %v1319_v61 }
 0x84f   : > { %1859 = vmatmul.mubr.msk.bf16.vlgmr.msra.gmra.mrb[20].mxu0 %vm626_vm2, %v1321_v63 }
 0x922   : > { %v1382_v7 = vpop.f32.mrb[20].mxu0 }
 0x923   : > { %v1383_v8 = vadd.f32 %v1741_v6, %v1382_v7  ;;  %v1860_v9 = vpop.f32.mrb[21].mxu0 }
 0x924   : > { %v1385_v10 = vpop.f32.mrb[22].mxu0 }
 0x925   : > { %v1391_v11 = vmul.f32 0.70710677, %v1383_v8  ;;  %v1386_v12 = vadd.f32 %v1741_v6, %v1385_v10  ;;  %v1861_v13 = vpop.f32.mrb[23].mxu0  ;;  %v1389_v59 = vmul.f32 0.5, %v1383_v8 }
 0x927   : > { %vm1393_vm14 = vcmp.ge.f32.partialorder %v1391_v11, 0.0  ;;  %v1392_v14 = vmul.f32 0.70710677, %v1386_v12  ;;  %v1390_v60 = vmul.f32 0.5, %v1386_v12 }
 0x928   : > { %v1395_v16 = vsel %vm1393_vm14, 1.0, %v1955_v15 }
 0x929   : > { %v1397_v18 = vmul.f32 %v1395_v16, %v1391_v11  ;;  %vm1394_vm15 = vcmp.ge.f32.partialorder %v1392_v14, 0.0 }
 0x92a   : > { %v1396_v17 = vsel %vm1394_vm15, 1.0, %v1955_v15 }
 0x92b   : > { %v1399_v19 = vmul.f32 0.3275911, %v1397_v18  ;;  %v1398_v20 = vmul.f32 %v1396_v17, %v1392_v14  ;;  %v1425_v24 = vsub.f32 0.0, %v1397_v18 }
 0x92d   : > { %v1401_v21 = vadd.f32 1.0, %v1399_v19  ;;  %v1400_v22 = vmul.f32 0.3275911, %v1398_v20  ;;  %v1426_v25 = vsub.f32 0.0, %v1398_v20  ;;  %v1427_v27 = vmul.f32 %v1425_v24, %v1397_v18 }
 0x92f   : > { %1926 = vrcp.f32 %v1401_v21  ;;  %v1402_v23 = vadd.f32 1.0, %v1400_v22  ;;  %v1428_v32 = vmul.f32 %v1426_v25, %v1398_v20  ;;  %v1429_v33 = vmul.f32 1.442695, %v1427_v27 }
 0x931   : > { %1928 = vrcp.f32 %v1402_v23  ;;  %v1431_v39 = vmul.f32 1.442695, %v1428_v32  ;;  %v1753_v32 = vld [vmem:[%s2324_s18] ss:$0 sm:$0xff] (!%p1751_p5) }
 0x932   : > { %1930 = vpow2.f32 %v1429_v33 }
 0x933   : > { %1932 = vpow2.f32 %v1431_v39 }
 0x939   : > { %v1927_v26 = vpop.eup %1926 }
 0x93a   : > { %v1407_v28 = vmul.f32 1.0614054, %v1927_v26 }
 0x93b   : > { %v1929_v29 = vpop.eup %1928 }
 0x93c   : > { %v1409_v30 = vadd.f32 -1.4531521, %v1407_v28  ;;  %v1408_v35 = vmul.f32 1.0614054, %v1929_v29  ;;  %v1931_v47 = vpop.eup %1930 }
 0x93d   : > { %v1933_v42 = vpop.eup %1932 }
 0x93e   : > { %v1411_v36 = vmul.f32 %v1927_v26, %v1409_v30  ;;  %v1410_v37 = vadd.f32 -1.4531521, %v1408_v35 }
 0x940   : > { %v1413_v38 = vadd.f32 1.4214138, %v1411_v36  ;;  %v1412_v2 = vmul.f32 %v1929_v29, %v1410_v37 }
 0x942   : > { %v1415_v40 = vmul.f32 %v1927_v26, %v1413_v38  ;;  %v1414_v41 = vadd.f32 1.4214138, %v1412_v2 }
 0x944   : > { %v1417_v3 = vadd.f32 -0.28449672, %v1415_v40  ;;  %v1416_v43 = vmul.f32 %v1929_v29, %v1414_v41 }
 0x946   : > { %v1419_v44 = vmul.f32 %v1927_v26, %v1417_v3  ;;  %v1418_v46 = vadd.f32 -0.28449672, %v1416_v43 }
 0x948   : > { %v1421_v48 = vadd.f32 0.2548296, %v1419_v44  ;;  %v1420_v49 = vmul.f32 %v1929_v29, %v1418_v46 }
 0x94a   : > { %v1423_v50 = vmul.f32 %v1927_v26, %v1421_v48  ;;  %v1422_v51 = vadd.f32 0.2548296, %v1420_v49 }
 0x94c   : > { %v1433_v45 = vmul.f32 %v1931_v47, %v1423_v50  ;;  %v1424_v52 = vmul.f32 %v1929_v29, %v1422_v51  ;;  %v1752_v29 = vld [vmem:[%s2323_s15] ss:$0 sm:$0xff] (!%p1751_p5) }
 0x94e   : > { %v1435_v53 = vsub.f32 1.0, %v1433_v45  ;;  %v1434_v54 = vmul.f32 %v1933_v42, %v1424_v52 }
 0x950   : > { %v1437_v55 = vmul.f32 %v1435_v53, %v1395_v16  ;;  %v1436_v56 = vsub.f32 1.0, %v1434_v54 }
 0x952   : > { %v1439_v57 = vadd.f32 1.0, %v1437_v55  ;;  %v1438_v58 = vmul.f32 %v1436_v56, %v1396_v17 }
 0x954   : > { %v1440_v61 = vadd.f32 1.0, %v1438_v58  ;;  %v1441_v62 = vmul.f32 %v1439_v57, %v1389_v59 }
 0x956   : > { %v1442_v63 = vmul.f32 %v1440_v61, %v1390_v60 }
 0x958   : > { %v1443_v0 = vpack.c.bf16 %v1442_v63, %v1441_v62 }
 0x95a   : > { %1871 = vmatmul.mubr.msk.bf16.vlgmr.msra.gmra.mrb[20].mxu1 %vm1483_vm0, %v1443_v0 }
 0xa2d   : > { %v1521_v4 = vpop.f32.mrb[20].mxu1 }
 0xa2e   : > { %v1522_v5 = vadd.f32 %v1745_v1, %v1521_v4  ;;  %v1872_v6 = vpop.f32.mrb[21].mxu1  ;;  %1535 = sbr.rel (%p1751_p5) target bundleno = 2928 (0xb70), region = 84 }
 0xa2f   : > { %v1524_v7 = vpop.f32.mrb[22].mxu1 }
 0xa30   : > { %v1528_v9 = vadd.f32 %v1522_v5, %v2224_v31  ;;  %v1525_v10 = vadd.f32 %v1745_v1, %v1524_v7  ;;  %v1873_v8 = vpop.f32.mrb[23].mxu1 }
 0xa32   : > { %1530 = vst.msk [vmem:[#allocation2] sm:$0xff] %vm626_vm2, %v1528_v9  ;;  %v1529_v11 = vadd.f32 %v1525_v10, %v2227_v34  ;;  %v1538_v12 = vsel (!%p1751_p5), %vm626_vm2, %v1528_v9, 0.0 }
 0xa33   : > { %1539 = vadd.xlane.f32.xlu0 (!%p1751_p5), %v1538_v12 }
 0xa34   : > { %1531 = vst.msk [vmem:[#allocation2 + $0x8] sm:$0x3] %vm630_vm3, %v1529_v11  ;;  %v1541_v13 = vsel (!%p1751_p5), %vm630_vm3, %v1529_v11, 0.0 }
 0xa37   : > { %1542 = vadd.xlane.f32.xlu0 %v1541_v13 }
 0xac0   : > { %v1540_v14 = vpop.xlane.xlu0 %1539 }
 0xac1   : > { %v1544_v15 = vmul.f32 0.03125, %v1540_v14 }
 0xac3   : > { %v1546_v31 = vsub.f32 %v1528_v9, %v1544_v15 }
 0xac4   : > { %v1543_v16 = vpop.xlane.xlu0 %1542 }
 0xac5   : > { %v1545_v18 = vmul.f32 0.03125, %v1543_v16  ;;  %v1548_v17 = vmul.f32 %v1546_v31, %v1546_v31 }
 0xac7   : > { %v1547_v19 = vsub.f32 %v1529_v11, %v1545_v18  ;;  %v1550_v34 = vsel %vm626_vm2, %v1548_v17, 0.0 }
 0xac8   : > { %1551 = vadd.xlane.f32.xlu1 %v1550_v34 }
 0xac9   : > { %v1549_v20 = vmul.f32 %v1547_v19, %v1547_v19 }
 0xacb   : > { %v1553_v21 = vsel %vm630_vm3, %v1549_v20, 0.0 }
 0xacc   : > { %1554 = vadd.xlane.f32.xlu1 %v1553_v21 }
 0xb55   : > { %v1552_v22 = vpop.xlane.xlu1 %1551 }
 0xb56   : > { %v1556_v23 = vmul.f32 0.03125, %v1552_v22 }
 0xb58   : > { %v1558_v24 = vadd.f32 1e-05, %v1556_v23 }
 0xb59   : > { %v1555_v25 = vpop.xlane.xlu1 %1554 }
 0xb5a   : > { %1934 = vrsqrt.f32 %v1558_v24  ;;  %v1557_v26 = vmul.f32 0.03125, %v1555_v25 }
 0xb5c   : > { %v1559_v27 = vadd.f32 1e-05, %v1557_v26 }
 0xb5e   : > { %1936 = vrsqrt.f32 %v1559_v27 }
 0xb64   : > { %v1935_v28 = vpop.eup %1934 }
 0xb65   : > { %v1562_v30 = vmul.f32 %v1935_v28, %v1546_v31 }
 0xb67   : > { %v1570_v33 = vmul.f32 %v1752_v29, %v1562_v30 }
 0xb68   : > { %v1937_v35 = vpop.eup %1936 }
 0xb69   : > { %v1578_v36 = vadd.f32 %v1753_v32, %v1570_v33  ;;  %v1563_v37 = vmul.f32 %v1937_v35, %v1547_v19 }
 0xb6b   : > { %1580 = vst.msk [vmem:[%s2325_s20] sm:$0xff] %vm626_vm2, %v1578_v36  ;;  %v1571_v38 = vmul.f32 %v1752_v29, %v1563_v37 }
 0xb6d   : > { %v1579_v39 = vadd.f32 %v1753_v32, %v1571_v38 }
 0xb6f   : > { %1581 = vst.msk [vmem:[%s2325_s20 + $0x8] sm:$0x3] %vm630_vm3, %v1579_v39 }
 0xb70 PF: > { %s2326_s4 = sld [smem:[#allocation5_spill]] }
 0xb76   : > { %s24_s29 = sadd.s32 1, %s2326_s4  }
 0xb77   : > { %p21_p6 = scmp.ge.s32.totalorder %s24_s29, 4  }
 0xb79   :  { %23 = sbr.rel (!%p21_p6) target bundleno = 6 (0x6), region = 140 }

// kernel: _lambda_.2
= control target key start
LH: loop header
LB: loop body
LE: loop exit
PB: predicated region body
PF: predicated region fallthrough
CT: control target
= control target key end

     0   :  { %s4090_s29 = smov 0   ;;  %s4856_s0 = inlined_call_operand.vmem [shape: f32[40,32], index: 0, kind: input, shape index: {}]   ;;  %s4857_s1 = inlined_call_operand.vmem [shape: f32[2,1,32], index: 1, kind: input, shape index: {}]   ;;  %s4858_s2 = inlined_call_operand.vmem [shape: f32[2,1,32], index: 2, kind: input, shape index: {}]   ;;  %s4859_s3 = inlined_call_operand.vmem [shape: bf16[2,32,96], index: 3, kind: input, shape index: {}]   ;;  %s4860_s4 = inlined_call_operand.vmem [shape: bf16[2,32,32], index: 4, kind: input, shape index: {}]   ;;  %s4861_s5 = inlined_call_operand.vmem [shape: f32[2,1,32], index: 5, kind: input, shape index: {}]   ;;  %s4862_s6 = inlined_call_operand.vmem [shape: f32[2,1,32], index: 6, kind: input, shape index: {}]   ;;  %s4863_s7 = inlined_call_operand.vmem [shape: f32[2,1,32], index: 7, kind: input, shape index: {}]   ;;  %s4864_s8 = inlined_call_operand.vmem [shape: bf16[2,32,64], index: 8, kind: input, shape index: {}]   ;;  %s4865_s9 = inlined_call_operand.vmem [shape: f32[2,1,64], index: 9, kind: input, shape index: {}]   ;;  %s4866_s10 = inlined_call_operand.vmem [shape: bf16[2,64,32], index: 10, kind: input, shape index: {}]   ;;  %s4867_s11 = inlined_call_operand.vmem [shape: f32[2,1,32], index: 11, kind: input, shape index: {}]   ;;  %s4868_s12 = inlined_call_operand.vmem [shape: f32[1,32], index: 12, kind: input, shape index: {}]   ;;  %s4869_s13 = inlined_call_operand.vmem [shape: f32[1,32], index: 13, kind: input, shape index: {}]   ;;  %s4870_s14 = inlined_call_operand.vmem [shape: f32[40,32], index: 14, kind: output, shape index: {}]  }
   0x1   :  { %4873 = sst [smem:[#allocation6_spill]] %s4859_s3 }
   0x2   :  { %4874 = sst [smem:[#allocation7_spill]] %s4860_s4 }
   0x3   :  { %4875 = sst [smem:[#allocation8_spill]] %s4868_s12 }
   0x4   :  { %4876 = sst [smem:[#allocation9_spill]] %s4869_s13 }
   0x5   :  { %4877 = sst [smem:[#allocation10_spill]] %s4870_s14 }
   0x6 LB: > { %4878 = sst [smem:[#allocation5_spill]] %s4003_s29  ;;  %s4096_s30 = sadd.s32 4294967295, %s4003_s29   ;;  %s4003_s29 = sphi %s4090_s29, %s24_s29  }
   0x7   : > { %p3424_p0 = scmp.ge.s32.totalorder %s4003_s29, 1  ;;  %p493_p1 = scmp.lt.s32.totalorder %s4003_s29, 3 }
   0x9   : > { %p494_p2 = pnand %p3424_p0, %p493_p1 }
   0xa   : > { %p570_p3 = scmp.lt.s32.totalorder (!%p494_p2), %s4096_s30, 1  ;;  %s4879_s3 = sld [smem:[#allocation6_spill]] (!%p494_p2) }
   0xb   : > { %497 = sbr.rel (%p494_p2) target bundleno = 3610 (0xe1a), region = 76  ;;  %s4880_s4 = sld [smem:[#allocation7_spill]] (!%p494_p2) }
   0xc   : > { %p3433_p4 = scmp.ne.s32.totalorder (!%p494_p2), %s4096_s30, 0 }
  0x12   : > { %s4102_s15 = scalar_select %p570_p3, %s4096_s30, 1 }
  0x13   : > { %615 = sbr.rel (%p3433_p4) target bundleno = 26 (0x1a), region = 80  ;;  %v616_v0 = vld [vmem:[%s4856_s0] sm:$0xff] (!%p3433_p4)  ;;  %vm621_vm0 = vcmask (!%p3433_p4), 261120   ;;  %v617_v1 = vld [vmem:[%s4856_s0 + $0x8] sm:$0xff] (!%p3433_p4)  ;;  %v618_v2 = vld [vmem:[%s4856_s0 + $0x10] sm:$0xff] (!%p3433_p4) }
  0x14   : > { %s3500_s22 = sshll.u32 %s4102_s15, 4  ;;  %s594_s13 = scalar_lea.vmem %s4863_s7, %s4102_s15  ;;  %622 = vst.msk [vmem:[#allocation2] sm:$0xff] (!%p3433_p4), %vm621_vm0, %v616_v0  ;;  %623 = vst.msk [vmem:[#allocation2 + $0x8] sm:$0xff] (!%p3433_p4), %vm621_vm0, %v617_v1  ;;  %v619_v3 = vld [vmem:[%s4856_s0 + $0x18] sm:$0xff] (!%p3433_p4)  ;;  %v620_v4 = vld [vmem:[%s4856_s0 + $0x20] sm:$0xff] (!%p3433_p4) }
  0x15   : > { %s4120_s28 = scalar_lea.vmem %s4879_s3, %s3500_s22  ;;  %s4125_s29 = scalar_lea.vmem %s4880_s4, %s3500_s22  ;;  %624 = vst.msk [vmem:[#allocation2 + $0x10] sm:$0xff] (!%p3433_p4), %vm621_vm0, %v618_v2  ;;  %625 = vst.msk [vmem:[#allocation2 + $0x18] sm:$0xff] (!%p3433_p4), %vm621_vm0, %v619_v3 }
  0x16   : > { %s4138_s25 = scalar_lea.vmem %s4864_s8, %s3500_s22  ;;  %s602_s3 = scalar_lea.vmem %s4865_s9, %s4102_s15  ;;  %626 = vst.msk [vmem:[#allocation2 + $0x20] sm:$0xff] (!%p3433_p4), %vm621_vm0, %v620_v4 }
  0x17   : > { %s3503_s16 = sshll.u32 %s4102_s15, 5  ;;  %s610_s12 = scalar_lea.vmem %s4867_s11, %s4102_s15 }
  0x18   : > { %s4152_s19 = scalar_lea.vmem %s4866_s10, %s3503_s16 }
  0x1a PF: > { %vm634_vm1 = vcmask 261120   ;;  %v3868_v30 = vld [vmem:[%s4120_s28] sm:$0xff]   ;;  %v4005_v31 = vmov 0.0   ;;  %v3869_v32 = vld [vmem:[%s4120_s28 + $0x8] sm:$0xff]   ;;  %vm4006_vm2 = vmmov 0   ;;  %s4881_s18 = scalar_lea.vmem %s4857_s1, %s4102_s15  ;;  %s4882_s20 = scalar_lea.vmem %s4858_s2, %s4102_s15  ;;  %vm807_vm3 = vcmask 785408  }
  0x1b   : > { %v627_v5 = vld [vmem:[#allocation2] sm:$0xff]  ;;  %v628_v6 = vld [vmem:[#allocation2 + $0x8] sm:$0xff]  ;;  %3590 = vmatprep.subr.bf16.mxu0 %v4005_v31  ;;  %3612 = vmatprep.subr.bf16.mxu1 %v4005_v31  ;;  %s4007_s23 = smov 96   ;;  %s4008_s24 = smov 80   ;;  %vm818_vm4 = vcmask 130048   ;;  %vm865_vm5 = vcmask 36864  }
  0x1c   : > { %v635_v7 = vsel %vm634_vm1, %v627_v5, 0.0  ;;  %v638_v8 = vsel %vm634_vm1, %v628_v6, 0.0  ;;  %v629_v9 = vld [vmem:[#allocation2 + $0x10] sm:$0xff]  ;;  %v630_v22 = vld [vmem:[#allocation2 + $0x18] sm:$0xff]  ;;  %3591 = vmatpush3.bf16.msra.mxu0 %v3868_v30  ;;  %3594 = vmatprep.mubr.msk.bf16.mxu0 %vm4006_vm2, %v4005_v31  ;;  %v3434_v51 = vld [vmem:[%s4881_s18] ss:$0 sm:$0xff]  ;;  %s4883_s28 = scalar_lea.vmem %s4861_s5, %s4102_s15  ;;  %s4884_s18 = scalar_lea.vmem %s4862_s6, %s4102_s15 }
  0x1d   : > { %636 = vadd.xlane.f32.xlu0 %v635_v7  ;;  %v641_v10 = vsel %vm634_vm1, %v629_v9, 0.0  ;;  %v631_v11 = vld [vmem:[#allocation2 + $0x20] sm:$0xff]  ;;  %v644_v24 = vsel %vm634_vm1, %v630_v22, 0.0  ;;  %3592 = vmatprep.subr.bf16.mxu0 %v4005_v31  ;;  %s4009_s4 = smov 112   ;;  %s4010_s26 = smov 64   ;;  %vm884_vm6 = vcmask 1041408  }
  0x1e   : > { %v647_v12 = vsel %vm634_vm1, %v631_v11, 0.0  ;;  %3614 = vmatprep.mubr.msk.bf16.mxu1 %vm4006_vm2, %v4005_v31  ;;  %v3435_v55 = vld [vmem:[%s4882_s20] ss:$0 sm:$0xff]  ;;  %vm885_vm7 = vcmask 1042432   ;;  %vm880_vm8 = vcmask 39936   ;;  %vm931_vm9 = vcmask 126976  }
  0x1f   : > { %s4012_s27 = smov 48   ;;  %s4013_s16 = smov 16   ;;  %vm1050_vm10 = vcmask 258176   ;;  %vm3120_vm13 = vcmask 523264  }
  0x20   : > { %3593 = vmatpush3.bf16.msra.mxu0 %v3869_v32  ;;  %p3495_p5 = scmp.ne.s32.totalorder %s4096_s30, 1 }
  0x21   : > { %639 = vadd.xlane.f32.xlu0 %v638_v8  ;;  %3606 = vmatprep.subr.bf16.mxu0 %v4005_v31  ;;  %s4885_s15 = sld [smem:[#allocation8_spill]] (!%p3495_p5) }
  0x25   : > { %642 = vadd.xlane.f32.xlu0 %v641_v10 }
  0x29   : > { %648 = vadd.xlane.f32.xlu0 %v647_v12 }
  0xaa   : > { %v637_v13 = vpop.xlane.xlu0 %636 }
  0xab   : > { %v651_v14 = vmul.f32 0.03125, %v637_v13 }
  0xad   : > { %v656_v15 = vsub.f32 %v627_v5, %v651_v14 }
  0xae   : > { %v640_v16 = vpop.xlane.xlu0 %639 }
  0xaf   : > { %v652_v17 = vmul.f32 0.03125, %v640_v16  ;;  %v661_v18 = vmul.f32 %v656_v15, %v656_v15 }
  0xb1   : > { %v657_v19 = vsub.f32 %v628_v6, %v652_v17  ;;  %v666_v20 = vsel %vm634_vm1, %v661_v18, 0.0 }
  0xb2   : > { %667 = vadd.xlane.f32.xlu1 %v666_v20  ;;  %v643_v25 = vpop.xlane.xlu0 %642 }
  0xb3   : > { %v662_v21 = vmul.f32 %v657_v19, %v657_v19  ;;  %v653_v26 = vmul.f32 0.03125, %v643_v25 }
  0xb5   : > { %v669_v23 = vsel %vm634_vm1, %v662_v21, 0.0  ;;  %v658_v27 = vsub.f32 %v629_v9, %v653_v26 }
  0xb6   : > { %670 = vadd.xlane.f32.xlu1 %v669_v23  ;;  %v649_v33 = vpop.xlane.xlu0 %648 }
  0xb7   : > { %v663_v28 = vmul.f32 %v658_v27, %v658_v27  ;;  %v655_v34 = vmul.f32 0.03125, %v649_v33 }
  0xb9   : > { %v672_v29 = vsel %vm634_vm1, %v663_v28, 0.0  ;;  %v660_v35 = vsub.f32 %v631_v11, %v655_v34 }
  0xba   : > { %645 = vadd.xlane.f32.xlu1 %v644_v24 }
  0xbb   : > { %v665_v36 = vmul.f32 %v660_v35, %v660_v35 }
  0xbd   : > { %v678_v37 = vsel %vm634_vm1, %v665_v36, 0.0 }
  0xbe   : > { %673 = vadd.xlane.f32.xlu1 %v672_v29 }
  0xc2   : > { %679 = vadd.xlane.f32.xlu1 %v678_v37 }
 0x13f   : > { %v668_v38 = vpop.xlane.xlu1 %667 }
 0x140   : > { %v681_v39 = vmul.f32 0.03125, %v668_v38 }
 0x142   : > { %v686_v40 = vadd.f32 1e-05, %v681_v39 }
 0x143   : > { %v671_v41 = vpop.xlane.xlu1 %670 }
 0x144   : > { %3878 = vrsqrt.f32 %v686_v40  ;;  %v682_v42 = vmul.f32 0.03125, %v671_v41 }
 0x146   : > { %v687_v43 = vadd.f32 1e-05, %v682_v42 }
 0x147   : > { %v646_v44 = vpop.xlane.xlu1 %645 }
 0x148   : > { %3880 = vrsqrt.f32 %v687_v43  ;;  %v654_v45 = vmul.f32 0.03125, %v646_v44 }
 0x14a   : > { %v659_v46 = vsub.f32 %v630_v22, %v654_v45 }
 0x14b   : > { %v674_v60 = vpop.xlane.xlu1 %673 }
 0x14c   : > { %v664_v47 = vmul.f32 %v659_v46, %v659_v46  ;;  %v683_v61 = vmul.f32 0.03125, %v674_v60 }
 0x14e   : > { %v3879_v48 = vpop.eup %3878  ;;  %v675_v49 = vsel %vm634_vm1, %v664_v47, 0.0  ;;  %v688_v63 = vadd.f32 1e-05, %v683_v61 }
 0x14f   : > { %676 = vadd.xlane.f32.xlu0 %v675_v49  ;;  %v696_v50 = vmul.f32 %v3879_v48, %v656_v15  ;;  %v680_v62 = vpop.xlane.xlu1 %679 }
 0x150   : > { %v685_v0 = vmul.f32 0.03125, %v680_v62  ;;  %3882 = vrsqrt.f32 %v688_v63 }
 0x151   : > { %v707_v54 = vmul.f32 %v3434_v51, %v696_v50 }
 0x152   : > { %v3881_v52 = vpop.eup %3880  ;;  %v690_v1 = vadd.f32 1e-05, %v685_v0 }
 0x153   : > { %v697_v53 = vmul.f32 %v3881_v52, %v657_v19  ;;  %v718_v57 = vadd.f32 %v3435_v55, %v707_v54 }
 0x154   : > { %3884 = vrsqrt.f32 %v690_v1 }
 0x155   : > { %v708_v56 = vmul.f32 %v3434_v51, %v697_v53 }
 0x157   : > { %v719_v58 = vadd.f32 %v3435_v55, %v708_v56 }
 0x159   : > { %v723_v59 = vpack.c.bf16 %v719_v58, %v718_v57 }
 0x15a   : > { %v3883_v5 = vpop.eup %3882 }
 0x15b   : > { %3595 = vmatmul.mubr.msk.bf16.vlgmr.msra.gmra.mrb[0].mxu0 %vm634_vm1, %v723_v59  ;;  %v698_v6 = vmul.f32 %v3883_v5, %v658_v27 }
 0x15c   : > { %3598 = vmatprep.mubr.msk.bf16.mxu0 %vm4006_vm2, %v4005_v31 }
 0x15d   : > { %v709_v8 = vmul.f32 %v3434_v51, %v698_v6 }
 0x15e   : > { %v3885_v7 = vpop.eup %3884 }
 0x15f   : > { %v700_v11 = vmul.f32 %v3885_v7, %v660_v35  ;;  %v720_v13 = vadd.f32 %v3435_v55, %v709_v8 }
 0x161   : > { %v711_v15 = vmul.f32 %v3434_v51, %v700_v11 }
 0x163   : > { %v722_v17 = vadd.f32 %v3435_v55, %v711_v15 }
 0x165   : > { %v725_v18 = vpack.c.bf16 %v722_v17, %v722_v17 }
 0x1dc   : > { %v677_v2 = vpop.xlane.xlu0 %676 }
 0x1dd   : > { %v684_v3 = vmul.f32 0.03125, %v677_v2 }
 0x1df   : > { %v689_v4 = vadd.f32 1e-05, %v684_v3 }
 0x1e1   : > { %3886 = vrsqrt.f32 %v689_v4 }
 0x1eb   : > { %v3887_v9 = vpop.eup %3886 }
 0x1ec   : > { %v699_v10 = vmul.f32 %v3887_v9, %v659_v46 }
 0x1ee   : > { %v710_v12 = vmul.f32 %v3434_v51, %v699_v10 }
 0x1f0   : > { %v721_v14 = vadd.f32 %v3435_v55, %v710_v12  ;;  %v4011_v12 = vmov 65535  }
 0x1f2   : > { %v724_v16 = vpack.c.bf16 %v721_v14, %v720_v13  ;;  %v886_v13 = vsel %vm884_vm6, 4294967295, %v4011_v12 }
 0x1f3   : > { %v4304_v15 = vsel %vm885_vm7, %v886_v13, 0 }
 0x1f4   : > { %3599 = vmatmul.mubr.msk.bf16.gmra.mrb[4].mxu0 %vm634_vm1, %v724_v16 }
 0x1f5   : > { %3602 = vmatprep.mubr.msk.bf16.mxu0 %vm4006_vm2, %v4005_v31 }
 0x1fc   : > { %3603 = vmatmul.mubr.msk.bf16.gmra.mrb[8].mxu0 %vm634_vm1, %v725_v18 }
 0x1fd   : > { %3608 = vmatprep.mubr.msk.bf16.mxu0 %vm4006_vm2, %v4005_v31 }
 0x22e   : > { %v785_v19 = vpop.f32.mrb[0].mxu0 }
 0x22f   : > { %808 = vst.msk [vmem:[#allocation3] sm:$0xff] %vm807_vm3, %v785_v19  ;;  %v3596_v20 = vpop.f32.mrb[1].mxu0 }
 0x230   : > { %v788_v21 = vpop.f32.mrb[2].mxu0 }
 0x231   : > { %809 = vst.msk [vmem:[#allocation3 + $0x8] sm:$0xff] %vm807_vm3, %v788_v21  ;;  %v3597_v22 = vpop.f32.mrb[3].mxu0 }
 0x236   : > { %v813_v23 = vld [vmem:[#allocation3] sm:$0x1f] }
 0x237   : > { %v4211_v24 = vpack.c.bf16 %v813_v23, %v813_v23  ;;  %v933_v25 = vld [vmem:[#allocation3] sm:$0x1f] }
 0x238   : > { %v4215_v26 = vpack.c.bf16 %v933_v25, %v933_v25  ;;  %v1052_v27 = vld [vmem:[#allocation3 + $0x5] sm:$0x1f]  ;;  %v1394_v32 = vld [vmem:[#allocation3 + $0xa] sm:$0x1f] }
 0x239   : > { %816 = vrot.lane.b32.xlu0 %v4211_v24, %s4007_s23  ;;  %v4219_v28 = vpack.c.bf16 %v1052_v27, %v1052_v27  ;;  %v1164_v29 = vld [vmem:[#allocation3 + $0x5] sm:$0x1f]  ;;  %v4227_v33 = vpack.c.bf16 %v1394_v32, %v1394_v32  ;;  %v1282_v6 = vld [vmem:[#allocation3 + $0xa] sm:$0x1f] }
 0x23a   : > { %v4223_v30 = vpack.c.bf16 %v1164_v29, %v1164_v29  ;;  %v4280_v7 = vpack.c.bf16 %v1282_v6, %v1282_v6 }
 0x23d   : > { %938 = vrot.lane.b32.xlu0 %v4215_v26, %s4008_s24 }
 0x241   : > { %1055 = vrot.lane.b32.xlu0 %v4219_v28, %s4007_s23 }
 0x245   : > { %1167 = vrot.lane.b32.xlu0 %v4223_v30, %s4009_s4 }
 0x249   : > { %1399 = vrot.lane.b32.xlu0 %v4227_v33, %s4008_s24 }
 0x2ab   : > { %v817_v34 = vpop.permute.xlu0 %816 }
 0x2ac   : > { %v823_v35 = vsel %vm818_vm4, %v817_v34, 0 }
 0x2ad   : > { %3607 = vmatpush3.bf16.xpose.msra.mxu0 %v823_v35 }
 0x2ae   : > { %3624 = vmatprep.subr.bf16.mxu0 %v4005_v31 }
 0x2af   : > { %v939_v20 = vpop.permute.xlu0 %938 }
 0x2b0   : > { %v944_v22 = vsel %vm818_vm4, %v939_v20, 0 }
 0x2b3   : > { %v1056_v23 = vpop.permute.xlu0 %1055 }
 0x2b4   : > { %3609 = vmatmul.mubr.msk.bf16.vlgmr.msra.gmra.mrb[12].mxu0 %vm818_vm4, %v4211_v24  ;;  %v1061_v25 = vsel %vm818_vm4, %v1056_v23, 0 }
 0x2b5   : > { %3626 = vmatprep.mubr.msk.bf16.mxu0 %vm4006_vm2, %v4005_v31 }
 0x2b7   : > { %v1168_v34 = vpop.permute.xlu0 %1167 }
 0x2c7   : > { %v793_v36 = vpop.f32.mrb[4].mxu0 }
 0x2c8   : > { %810 = vst.msk [vmem:[#allocation3 + $0x10] sm:$0xff] %vm807_vm3, %v793_v36  ;;  %v3600_v37 = vpop.f32.mrb[5].mxu0  ;;  %v1400_v36 = vpop.permute.xlu0 %1399 }
 0x2c9   : > { %v796_v38 = vpop.f32.mrb[6].mxu0  ;;  %v1405_v37 = vsel %vm818_vm4, %v1400_v36, 0 }
 0x2ca   : > { %811 = vst.msk [vmem:[#allocation3 + $0x18] sm:$0xff] %vm807_vm3, %v796_v38  ;;  %v3601_v39 = vpop.f32.mrb[7].mxu0 }
 0x2cf   : > { %v1512_v40 = vld [vmem:[#allocation3 + $0xf] sm:$0x1f]  ;;  %v801_v41 = vpop.f32.mrb[8].mxu0 }
 0x2d0   : > { %v4239_v42 = vpack.c.bf16 %v1512_v40, %v1512_v40  ;;  %812 = vst.msk [vmem:[#allocation3 + $0x20] sm:$0xff] %vm807_vm3, %v801_v41  ;;  %v3604_v43 = vpop.f32.mrb[9].mxu0  ;;  %v1624_v44 = vld [vmem:[#allocation3 + $0xf] sm:$0x1f] }
 0x2d1   : > { %v804_v45 = vpop.f32.mrb[10].mxu0  ;;  %v1854_v46 = vld [vmem:[#allocation3 + $0x14] sm:$0x1f]  ;;  %v4244_v48 = vpack.c.bf16 %v1624_v44, %v1624_v44  ;;  %v1972_v50 = vld [vmem:[#allocation3 + $0x19] sm:$0x1f] }
 0x2d2   : > { %1515 = vrot.lane.b32.xlu0 %v4239_v42, %s4007_s23  ;;  %v3605_v47 = vpop.f32.mrb[11].mxu0  ;;  %v4248_v49 = vpack.c.bf16 %v1854_v46, %v1854_v46  ;;  %v4252_v51 = vpack.c.bf16 %v1972_v50, %v1972_v50  ;;  %v2084_v52 = vld [vmem:[#allocation3 + $0x19] sm:$0x1f]  ;;  %v1742_v8 = vld [vmem:[#allocation3 + $0x14] sm:$0x1f] }
 0x2d3   : > { %v4256_v53 = vpack.c.bf16 %v2084_v52, %v2084_v52  ;;  %v4288_v9 = vpack.c.bf16 %v1742_v8, %v1742_v8 }
 0x2d6   : > { %1627 = vrot.lane.b32.xlu0 %v4244_v48, %s4009_s4 }
 0x2d7   : > { %v2314_v54 = vld [vmem:[#allocation3 + $0x1e] sm:$0x1f]  ;;  %v2432_v55 = vld [vmem:[#allocation3 + $0x23] sm:$0x1f] }
 0x2d8   : > { %v4260_v56 = vpack.c.bf16 %v2314_v54, %v2314_v54  ;;  %v4264_v57 = vpack.c.bf16 %v2432_v55, %v2432_v55  ;;  %v2544_v58 = vld [vmem:[#allocation3 + $0x23] sm:$0x1f]  ;;  %v2202_v10 = vld [vmem:[#allocation3 + $0x1e] sm:$0x1f] }
 0x2d9   : > { %v4268_v59 = vpack.c.bf16 %v2544_v58, %v2544_v58  ;;  %v4296_v11 = vpack.c.bf16 %v2202_v10, %v2202_v10 }
 0x2da   : > { %1859 = vrot.lane.b32.xlu0 %v4248_v49, %s4008_s24 }
 0x2de   : > { %1975 = vrot.lane.b32.xlu0 %v4252_v51, %s4007_s23 }
 0x2e2   : > { %2087 = vrot.lane.b32.xlu0 %v4256_v53, %s4009_s4 }
 0x2e6   : > { %2319 = vrot.lane.b32.xlu0 %v4260_v56, %s4008_s24 }
 0x2ea   : > { %2435 = vrot.lane.b32.xlu0 %v4264_v57, %s4007_s23 }
 0x2ee   : > { %2547 = vrot.lane.b32.xlu0 %v4268_v59, %s4009_s4 }
 0x344   : > { %v1516_v38 = vpop.permute.xlu0 %1515 }
 0x345   : > { %v1521_v40 = vsel %vm818_vm4, %v1516_v38, 0 }
 0x348   : > { %v1628_v45 = vpop.permute.xlu0 %1627 }
 0x34c   : > { %v1860_v47 = vpop.permute.xlu0 %1859 }
 0x34d   : > { %v1865_v50 = vsel %vm818_vm4, %v1860_v47, 0 }
 0x350   : > { %v1976_v52 = vpop.permute.xlu0 %1975 }
 0x351   : > { %v1981_v55 = vsel %vm818_vm4, %v1976_v52, 0 }
 0x387   : > { %v859_v60 = vpop.f32.mrb[12].mxu0 }
 0x388   : > { %v3610_v61 = vpop.f32.mrb[13].mxu0  ;;  %v866_v62 = vsel %vm865_vm5, %v859_v60, -inf }
 0x389   : > { %867 = vmax.xlane.f32.xlu1 %v866_v62  ;;  %v862_v63 = vpop.f32.mrb[14].mxu0  ;;  %v2088_v62 = vpop.permute.xlu0 %2087 }
 0x38a   : > { %v3611_v0 = vpop.f32.mrb[15].mxu0 }
 0x38d   : > { %v2320_v0 = vpop.permute.xlu0 %2319 }
 0x416   : > { %v868_v1 = vpop.xlane.xlu1 %867 }
 0x417   : > { %v869_v2 = vsub.f32 %v859_v60, %v868_v1  ;;  %v2325_v1 = vsel %vm818_vm4, %v2320_v0, 0 }
 0x419   : > { %v870_v3 = vmul.f32 1.442695, %v869_v2  ;;  %v2436_v2 = vpop.permute.xlu0 %2435 }
 0x41b   : > { %3888 = vpow2.f32 %v870_v3 }
 0x41d   : > { %v2548_v8 = vpop.permute.xlu0 %2547 }
 0x425   : > { %v3889_v4 = vpop.eup %3888 }
 0x426   : > { %v872_v5 = vsel %vm865_vm5, %v3889_v4, 0.0 }
 0x427   : > { %873 = vadd.xlane.f32.xlu1 %v872_v5 }
 0x438   : > { %878 = vrot.lane.b32.xlu1 %v4211_v24, %s4010_s26 }
 0x43c   : > { %936 = vrot.lane.b32.xlu1 %v4215_v26, %s4009_s4 }
 0x440   : > { %1169 = vrot.lane.b32.xlu1 %v4223_v30, %s4008_s24 }
 0x444   : > { %1285 = vrot.lane.b32.xlu1 %v4280_v7, %s4007_s23 }
 0x448   : > { %1397 = vrot.lane.b32.xlu1 %v4227_v33, %s4009_s4 }
 0x44c   : > { %1629 = vrot.lane.b32.xlu1 %v4244_v48, %s4008_s24 }
 0x450   : > { %1745 = vrot.lane.b32.xlu1 %v4288_v9, %s4007_s23 }
 0x454   : > { %1857 = vrot.lane.b32.xlu1 %v4248_v49, %s4009_s4 }
 0x458   : > { %2089 = vrot.lane.b32.xlu1 %v4256_v53, %s4008_s24 }
 0x45c   : > { %2205 = vrot.lane.b32.xlu1 %v4296_v11, %s4007_s23 }
 0x460   : > { %2317 = vrot.lane.b32.xlu1 %v4260_v56, %s4009_s4  ;;  %s4886_s4 = sld [smem:[#allocation9_spill]] (!%p3495_p5) }
 0x464   : > { %2549 = vrot.lane.b32.xlu1 %v4268_v59, %s4008_s24 }
 0x4b4   : > { %v874_v14 = vpop.xlane.xlu1 %873 }
 0x4b5   : > { %3890 = vrcp.f32 %v874_v14 }
 0x4b8   : > { %v879_v16 = vpop.permute.xlu1 %878 }
 0x4b9   : > { %v889_v17 = vand.u32 %v4304_v15, %v879_v16 }
 0x4bb   : > { %3613 = vmatpush3.bf16.msra.mxu1 %v889_v17 }
 0x4bc   : > { %3618 = vmatprep.subr.bf16.mxu1 %v4005_v31  ;;  %v937_v24 = vpop.permute.xlu1 %936 }
 0x4bf   : > { %v3891_v18 = vpop.eup %3890 }
 0x4c0   : > { %v876_v19 = vmul.f32 %v3891_v18, %v3889_v4  ;;  %v1170_v27 = vpop.permute.xlu1 %1169  ;;  %v2441_v4 = vsel %vm818_vm4, %v2436_v2, 0 }
 0x4c1   : > { %v1175_v29 = vsel %vm818_vm4, %v1170_v27, 0 }
 0x4c2   : > { %v877_v21 = vpack.c.bf16 %v876_v19, %v876_v19 }
 0x4c4   : > { %3615 = vmatmul.mubr.msk.bf16.vlgmr.msra.gmra.mrb[0].mxu1 %vm880_vm8, %v877_v21  ;;  %v1286_v32 = vpop.permute.xlu1 %1285 }
 0x4c5   : > { %3619 = vmatpush3.bf16.xpose.msra.mxu1 %v944_v22  ;;  %3620 = vmatprep.mubr.msk.bf16.mxu1 %vm4006_vm2, %v4005_v31  ;;  %v1291_v35 = vsel %vm818_vm4, %v1286_v32, 0 }
 0x4c6   : > { %3630 = vmatprep.subr.bf16.mxu1 %v4005_v31 }
 0x4c8   : > { %v1398_v39 = vpop.permute.xlu1 %1397 }
 0x4cc   : > { %3621 = vmatmul.mubr.msk.bf16.vlgmr.msra.gmra.mrb[4].mxu1 %vm818_vm4, %v937_v24  ;;  %v1630_v41 = vpop.permute.xlu1 %1629 }
 0x4cd   : > { %3631 = vmatpush3.bf16.xpose.msra.mxu1 %v1061_v25  ;;  %3632 = vmatprep.mubr.msk.bf16.mxu1 %vm4006_vm2, %v4005_v31  ;;  %v1635_v43 = vsel %vm818_vm4, %v1630_v41, 0 }
 0x4ce   : > { %3642 = vmatprep.subr.bf16.mxu1 %v4005_v31 }
 0x4d0   : > { %v1746_v44 = vpop.permute.xlu1 %1745 }
 0x4d1   : > { %v1751_v46 = vsel %vm818_vm4, %v1746_v44, 0 }
 0x4d4   : > { %3633 = vmatmul.mubr.msk.bf16.vlgmr.msra.gmra.mrb[8].mxu1 %vm818_vm4, %v4219_v28  ;;  %v1858_v54 = vpop.permute.xlu1 %1857 }
 0x4d5   : > { %3643 = vmatpush3.bf16.xpose.msra.mxu1 %v1175_v29  ;;  %3644 = vmatprep.mubr.msk.bf16.mxu1 %vm4006_vm2, %v4005_v31 }
 0x4d6   : > { %3654 = vmatprep.subr.bf16.mxu1 %v4005_v31 }
 0x4d8   : > { %v2090_v58 = vpop.permute.xlu1 %2089 }
 0x4d9   : > { %v2095_v60 = vsel %vm818_vm4, %v2090_v58, 0 }
 0x4dc   : > { %3645 = vmatmul.mubr.msk.bf16.vlgmr.msra.gmra.mrb[12].mxu1 %vm818_vm4, %v1168_v34  ;;  %v2206_v61 = vpop.permute.xlu1 %2205 }
 0x4dd   : > { %3655 = vmatpush3.bf16.xpose.msra.mxu1 %v1291_v35  ;;  %3656 = vmatprep.mubr.msk.bf16.mxu1 %vm4006_vm2, %v4005_v31  ;;  %v2211_v63 = vsel %vm818_vm4, %v2206_v61, 0 }
 0x4de   : > { %3666 = vmatprep.subr.bf16.mxu1 %v4005_v31 }
 0x4e0   : > { %v2318_v3 = vpop.permute.xlu1 %2317 }
 0x4e4   : > { %3657 = vmatmul.mubr.msk.bf16.vlgmr.msra.gmra.mrb[16].mxu1 %vm818_vm4, %v4280_v7  ;;  %v2550_v5 = vpop.permute.xlu1 %2549 }
 0x4e5   : > { %3667 = vmatpush3.bf16.xpose.msra.mxu1 %v1405_v37  ;;  %3668 = vmatprep.mubr.msk.bf16.mxu1 %vm4006_vm2, %v4005_v31  ;;  %v2555_v6 = vsel %vm818_vm4, %v2550_v5, 0 }
 0x4e6   : > { %3678 = vmatprep.subr.bf16.mxu1 %v4005_v31 }
 0x4ec   : > { %3669 = vmatmul.mubr.msk.bf16.vlgmr.msra.gmra.mrb[20].mxu1 %vm818_vm4, %v1398_v39 }
 0x4ed   : > { %3679 = vmatpush3.bf16.xpose.msra.mxu1 %v1521_v40  ;;  %3680 = vmatprep.mubr.msk.bf16.mxu1 %vm4006_vm2, %v4005_v31 }
 0x4ee   : > { %3690 = vmatprep.subr.bf16.mxu1 %v4005_v31 }
 0x4f4   : > { %3681 = vmatmul.mubr.msk.bf16.vlgmr.msra.gmra.mrb[24].mxu1 %vm818_vm4, %v4239_v42 }
 0x4f5   : > { %3691 = vmatpush3.bf16.xpose.msra.mxu1 %v1635_v43  ;;  %3692 = vmatprep.mubr.msk.bf16.mxu1 %vm4006_vm2, %v4005_v31 }
 0x4f6   : > { %3702 = vmatprep.subr.bf16.mxu1 %v4005_v31 }
 0x4fc   : > { %3693 = vmatmul.mubr.msk.bf16.vlgmr.msra.gmra.mrb[28].mxu1 %vm818_vm4, %v1628_v45 }
 0x4fd   : > { %3703 = vmatpush3.bf16.xpose.msra.mxu1 %v1751_v46  ;;  %3704 = vmatprep.mubr.msk.bf16.mxu1 %vm4006_vm2, %v4005_v31 }
 0x4fe   : > { %3714 = vmatprep.subr.bf16.mxu1 %v4005_v31 }
 0x504   : > { %3705 = vmatmul.mubr.msk.bf16.vlgmr.msra.gmra.mrb[32].mxu1 %vm818_vm4, %v4288_v9 }
 0x505   : > { %3715 = vmatpush3.bf16.xpose.msra.mxu1 %v1865_v50  ;;  %3716 = vmatprep.mubr.msk.bf16.mxu1 %vm4006_vm2, %v4005_v31 }
 0x506   : > { %3726 = vmatprep.subr.bf16.mxu1 %v4005_v31 }
 0x50c   : > { %3717 = vmatmul.mubr.msk.bf16.vlgmr.msra.gmra.mrb[36].mxu1 %vm818_vm4, %v1858_v54 }
 0x50d   : > { %3727 = vmatpush3.bf16.xpose.msra.mxu1 %v1981_v55  ;;  %3728 = vmatprep.mubr.msk.bf16.mxu1 %vm4006_vm2, %v4005_v31 }
 0x50e   : > { %3738 = vmatprep.subr.bf16.mxu1 %v4005_v31 }
 0x514   : > { %3729 = vmatmul.mubr.msk.bf16.vlgmr.msra.gmra.mrb[40].mxu1 %vm818_vm4, %v4252_v51 }
 0x515   : > { %3739 = vmatpush3.bf16.xpose.msra.mxu1 %v2095_v60  ;;  %3740 = vmatprep.mubr.msk.bf16.mxu1 %vm4006_vm2, %v4005_v31 }
 0x516   : > { %3750 = vmatprep.subr.bf16.mxu1 %v4005_v31 }
 0x51c   : > { %3741 = vmatmul.mubr.msk.bf16.vlgmr.msra.gmra.mrb[44].mxu1 %vm818_vm4, %v2088_v62 }
 0x51d   : > { %3751 = vmatpush3.bf16.xpose.msra.mxu1 %v2211_v63  ;;  %3752 = vmatprep.mubr.msk.bf16.mxu1 %vm4006_vm2, %v4005_v31 }
 0x51e   : > { %3762 = vmatprep.subr.bf16.mxu1 %v4005_v31 }
 0x524   : > { %3753 = vmatmul.mubr.msk.bf16.vlgmr.msra.gmra.mrb[48].mxu1 %vm818_vm4, %v4296_v11 }
 0x525   : > { %3763 = vmatpush3.bf16.xpose.msra.mxu1 %v2325_v1  ;;  %3764 = vmatprep.mubr.msk.bf16.mxu1 %vm4006_vm2, %v4005_v31 }
 0x526   : > { %3774 = vmatprep.subr.bf16.mxu1 %v4005_v31 }
 0x52c   : > { %3765 = vmatmul.mubr.msk.bf16.vlgmr.msra.gmra.mrb[52].mxu1 %vm818_vm4, %v2318_v3 }
 0x52d   : > { %3775 = vmatpush3.bf16.xpose.msra.mxu1 %v2441_v4  ;;  %3776 = vmatprep.mubr.msk.bf16.mxu1 %vm4006_vm2, %v4005_v31 }
 0x52e   : > { %3786 = vmatprep.subr.bf16.mxu1 %v4005_v31 }
 0x534   : > { %3777 = vmatmul.mubr.msk.bf16.vlgmr.msra.gmra.mrb[56].mxu1 %vm818_vm4, %v4264_v57 }
 0x535   : > { %3787 = vmatpush3.bf16.xpose.msra.mxu1 %v2555_v6  ;;  %3788 = vmatprep.mubr.msk.bf16.mxu1 %vm4006_vm2, %v4005_v31 }
 0x536   : > { %3798 = vmatprep.subr.bf16.mxu1 %v4005_v31 }
 0x53c   : > { %3789 = vmatmul.mubr.msk.bf16.vlgmr.msra.gmra.mrb[60].mxu1 %vm818_vm4, %v2548_v8 }
 0x53d   : > { %3802 = vmatprep.mubr.msk.bf16.mxu1 %vm4006_vm2, %v4005_v31 }
 0x597   : > { %v925_v10 = vpop.f32.mrb[0].mxu1 }
 0x598   : > { %932 = vst.msk [vmem:[#allocation4] sm:$0x1f] %vm931_vm9, %v925_v10  ;;  %v3616_v12 = vpop.f32.mrb[1].mxu1 }
 0x599   : > { %v928_v13 = vpop.f32.mrb[2].mxu1 }
 0x59a   : > { %v3617_v14 = vpop.f32.mrb[3].mxu1 }
 0x59f   : > { %v4394_v16 = vpop.f32.mrb[4].mxu1 }
 0x5a0   : > { %v3622_v17 = vpop.f32.mrb[5].mxu1  ;;  %v986_v18 = vsel %vm865_vm5, %v4394_v16, -inf }
 0x5a1   : > { %987 = vmax.xlane.f32.xlu1 %v986_v18  ;;  %v983_v19 = vpop.f32.mrb[6].mxu1 }
 0x5a2   : > { %v3623_v20 = vpop.f32.mrb[7].mxu1 }
 0x5a7   : > { %v4398_v21 = vpop.f32.mrb[8].mxu1 }
 0x5a8   : > { %v3634_v22 = vpop.f32.mrb[9].mxu1  ;;  %v1103_v23 = vsel %vm865_vm5, %v4398_v21, -inf }
 0x5a9   : > { %1104 = vmax.xlane.f32.xlu0 %v1103_v23  ;;  %v1100_v24 = vpop.f32.mrb[10].mxu1 }
 0x5aa   : > { %v3635_v25 = vpop.f32.mrb[11].mxu1 }
 0x5af   : > { %v4402_v27 = vpop.f32.mrb[12].mxu1 }
 0x5b0   : > { %v3646_v29 = vpop.f32.mrb[13].mxu1  ;;  %v1217_v32 = vsel %vm865_vm5, %v4402_v27, -inf }
 0x5b1   : > { %1218 = vmax.xlane.f32.xlu0 %v1217_v32  ;;  %v1214_v34 = vpop.f32.mrb[14].mxu1 }
 0x5b2   : > { %v3647_v35 = vpop.f32.mrb[15].mxu1 }
 0x5b7   : > { %v4406_v36 = vpop.f32.mrb[16].mxu1 }
 0x5b8   : > { %v3658_v37 = vpop.f32.mrb[17].mxu1  ;;  %v1333_v38 = vsel %vm865_vm5, %v4406_v36, -inf }
 0x5b9   : > { %1334 = vmax.xlane.f32.xlu0 %v1333_v38  ;;  %v1330_v39 = vpop.f32.mrb[18].mxu1 }
 0x5ba   : > { %v3659_v40 = vpop.f32.mrb[19].mxu1 }
 0x5bf   : > { %v4410_v41 = vpop.f32.mrb[20].mxu1 }
 0x5c0   : > { %v3670_v43 = vpop.f32.mrb[21].mxu1  ;;  %v1447_v44 = vsel %vm865_vm5, %v4410_v41, -inf }
 0x5c1   : > { %1448 = vmax.xlane.f32.xlu1 %v1447_v44  ;;  %v1444_v45 = vpop.f32.mrb[22].mxu1 }
 0x5c2   : > { %v3671_v46 = vpop.f32.mrb[23].mxu1 }
 0x5c7   : > { %v4414_v47 = vpop.f32.mrb[24].mxu1 }
 0x5c8   : > { %v3682_v50 = vpop.f32.mrb[25].mxu1  ;;  %v1563_v52 = vsel %vm865_vm5, %v4414_v47, -inf }
 0x5c9   : > { %1564 = vmax.xlane.f32.xlu0 %v1563_v52  ;;  %v1560_v54 = vpop.f32.mrb[26].mxu1 }
 0x5ca   : > { %v3683_v55 = vpop.f32.mrb[27].mxu1 }
 0x5cf   : > { %v4418_v58 = vpop.f32.mrb[28].mxu1 }
 0x5d0   : > { %v3694_v60 = vpop.f32.mrb[29].mxu1 }
 0x5d1   : > { %v1674_v61 = vpop.f32.mrb[30].mxu1 }
 0x5d2   : > { %1115 = vrot.lane.b32.xlu1 %v4219_v28, %s4010_s26  ;;  %v3695_v62 = vpop.f32.mrb[31].mxu1 }
 0x5d6   : > { %1229 = vrot.lane.b32.xlu1 %v4223_v30, %s4012_s27 }
 0x5d7   : > { %v4424_v63 = vpop.f32.mrb[32].mxu1 }
 0x5d8   : > { %v3706_v0 = vpop.f32.mrb[33].mxu1  ;;  %v1793_v23 = vsel %vm865_vm5, %v4424_v63, -inf }
 0x5d9   : > { %v1790_v1 = vpop.f32.mrb[34].mxu1 }
 0x5da   : > { %v3707_v2 = vpop.f32.mrb[35].mxu1 }
 0x5df   : > { %998 = vrot.lane.b32.xlu0 %v4215_v26, %s4012_s27  ;;  %v4428_v3 = vpop.f32.mrb[36].mxu1  ;;  %v1677_v26 = vsel %vm865_vm5, %v4418_v58, -inf }
 0x5e0   : > { %v3718_v4 = vpop.f32.mrb[37].mxu1  ;;  %v1907_v24 = vsel %vm865_vm5, %v4428_v3, -inf }
 0x5e1   : > { %v1904_v5 = vpop.f32.mrb[38].mxu1 }
 0x5e2   : > { %v3719_v6 = vpop.f32.mrb[39].mxu1 }
 0x5e7   : > { %v4430_v8 = vpop.f32.mrb[40].mxu1 }
 0x5e8   : > { %v3730_v28 = vpop.f32.mrb[41].mxu1  ;;  %v2023_v34 = vsel %vm865_vm5, %v4430_v8, -inf }
 0x5e9   : > { %v2020_v10 = vpop.f32.mrb[42].mxu1 }
 0x5ea   : > { %v3731_v12 = vpop.f32.mrb[43].mxu1 }
 0x5ef   : > { %v4432_v13 = vpop.f32.mrb[44].mxu1 }
 0x5f0   : > { %v3742_v30 = vpop.f32.mrb[45].mxu1  ;;  %v2137_v35 = vsel %vm865_vm5, %v4432_v13, -inf }
 0x5f1   : > { %v2134_v14 = vpop.f32.mrb[46].mxu1 }
 0x5f2   : > { %v3743_v17 = vpop.f32.mrb[47].mxu1 }
 0x5f7   : > { %v4434_v18 = vpop.f32.mrb[48].mxu1 }
 0x5f8   : > { %v3754_v19 = vpop.f32.mrb[49].mxu1  ;;  %v2253_v38 = vsel %vm865_vm5, %v4434_v18, -inf }
 0x5f9   : > { %v2250_v20 = vpop.f32.mrb[50].mxu1 }
 0x5fa   : > { %1678 = vmax.xlane.f32.xlu1 %v1677_v26  ;;  %v3755_v22 = vpop.f32.mrb[51].mxu1 }
 0x5fe   : > { %1794 = vmax.xlane.f32.xlu0 %v1793_v23  ;;  %1908 = vmax.xlane.f32.xlu1 %v1907_v24 }
 0x5ff   : > { %v4442_v25 = vpop.f32.mrb[52].mxu1 }
 0x600   : > { %v3766_v29 = vpop.f32.mrb[53].mxu1  ;;  %v2367_v44 = vsel %vm865_vm5, %v4442_v25, -inf }
 0x601   : > { %v2364_v32 = vpop.f32.mrb[54].mxu1 }
 0x602   : > { %2024 = vmax.xlane.f32.xlu0 %v2023_v34  ;;  %2138 = vmax.xlane.f32.xlu1 %v2137_v35  ;;  %v3767_v37 = vpop.f32.mrb[55].mxu1 }
 0x606   : > { %2254 = vmax.xlane.f32.xlu1 %v2253_v38 }
 0x607   : > { %v4450_v39 = vpop.f32.mrb[56].mxu1 }
 0x608   : > { %v3778_v40 = vpop.f32.mrb[57].mxu1  ;;  %v2483_v46 = vsel %vm865_vm5, %v4450_v39, -inf }
 0x609   : > { %v2480_v43 = vpop.f32.mrb[58].mxu1 }
 0x60a   : > { %2368 = vmax.xlane.f32.xlu1 %v2367_v44  ;;  %v3779_v45 = vpop.f32.mrb[59].mxu1 }
 0x60e   : > { %2484 = vmax.xlane.f32.xlu1 %v2483_v46 }
 0x60f   : > { %v4456_v50 = vpop.f32.mrb[60].mxu1 }
 0x610   : > { %v3790_v52 = vpop.f32.mrb[61].mxu1  ;;  %v2597_v54 = vsel %vm865_vm5, %v4456_v50, -inf }
 0x611   : > { %v2594_v55 = vpop.f32.mrb[62].mxu1 }
 0x612   : > { %2598 = vmax.xlane.f32.xlu1 %v2597_v54  ;;  %v3791_v60 = vpop.f32.mrb[63].mxu1 }
 0x62e   : > { %v988_v61 = vpop.xlane.xlu1 %987 }
 0x62f   : > { %v989_v62 = vsub.f32 %v4394_v16, %v988_v61 }
 0x631   : > { %v990_v0 = vmul.f32 1.442695, %v989_v62 }
 0x633   : > { %3892 = vpow2.f32 %v990_v0 }
 0x636   : > { %v1105_v1 = vpop.xlane.xlu0 %1104 }
 0x637   : > { %v1106_v2 = vsub.f32 %v4398_v21, %v1105_v1 }
 0x639   : > { %v1107_v4 = vmul.f32 1.442695, %v1106_v2 }
 0x63b   : > { %3894 = vpow2.f32 %v1107_v4 }
 0x63d   : > { %v4462_v5 = vpop.eup %3892 }
 0x63e   : > { %v1219_v6 = vpop.xlane.xlu0 %1218  ;;  %v992_v28 = vsel %vm865_vm5, %v4462_v5, 0.0 }
 0x63f   : > { %v1220_v10 = vsub.f32 %v4402_v27, %v1219_v6  ;;  %993 = vadd.xlane.f32.xlu0 %v992_v28 }
 0x641   : > { %v1221_v12 = vmul.f32 1.442695, %v1220_v10 }
 0x643   : > { %3896 = vpow2.f32 %v1221_v12 }
 0x645   : > { %v4467_v30 = vpop.eup %3894 }
 0x646   : > { %v1335_v16 = vpop.xlane.xlu0 %1334  ;;  %v1109_v14 = vsel %vm865_vm5, %v4467_v30, 0.0 }
 0x647   : > { %v1336_v21 = vsub.f32 %v4406_v36, %v1335_v16  ;;  %1110 = vadd.xlane.f32.xlu0 %v1109_v14 }
 0x649   : > { %v1337_v17 = vmul.f32 1.442695, %v1336_v21 }
 0x64b   : > { %3898 = vpow2.f32 %v1337_v17 }
 0x64d   : > { %v4472_v19 = vpop.eup %3896 }
 0x64e   : > { %v1449_v20 = vpop.xlane.xlu1 %1448  ;;  %v1223_v27 = vsel %vm865_vm5, %v4472_v19, 0.0 }
 0x64f   : > { %v1450_v26 = vsub.f32 %v4410_v41, %v1449_v20  ;;  %1224 = vadd.xlane.f32.xlu0 %v1223_v27 }
 0x651   : > { %v1451_v22 = vmul.f32 1.442695, %v1450_v26 }
 0x652   : > { %v4492_v38 = vpop.permute.xlu1 %1115 }
 0x653   : > { %3900 = vpow2.f32 %v1451_v22 }
 0x655   : > { %v4477_v23 = vpop.eup %3898 }
 0x656   : > { %v1565_v24 = vpop.xlane.xlu0 %1564  ;;  %v1339_v36 = vsel %vm865_vm5, %v4477_v23, 0.0  ;;  %v4494_v40 = vpop.permute.xlu1 %1229 }
 0x657   : > { %1340 = vadd.xlane.f32.xlu1 %v1339_v36  ;;  %v1566_v41 = vsub.f32 %v4414_v47, %v1565_v24  ;;  %v1121_v24 = vand.u32 %v4492_v38, %v4304_v15 }
 0x659   : > { %v1567_v37 = vmul.f32 1.442695, %v1566_v41 }
 0x65a   : > { %v999_v29 = vpop.permute.xlu0 %998 }
 0x65b   : > { %v1004_v32 = vand.u32 %v999_v29, %v4304_v15  ;;  %3902 = vpow2.f32 %v1567_v37 }
 0x65d   : > { %v4482_v34 = vpop.eup %3900  ;;  %3625 = vmatpush3.bf16.msra.mxu0 %v1004_v32 }
 0x65e   : > { %v1453_v35 = vsel %vm865_vm5, %v4482_v34, 0.0  ;;  %3636 = vmatprep.subr.bf16.mxu0 %v4005_v31 }
 0x65f   : > { %1454 = vadd.xlane.f32.xlu0 %v1453_v35 }
 0x665   : > { %v4496_v44 = vpop.eup %3902 }
 0x668   : > { %1459 = vrot.lane.b32.xlu1 %v4227_v33, %s4012_s27  ;;  %v1569_v33 = vsel %vm865_vm5, %v4496_v44, 0.0 }
 0x675   : > { %1345 = vrot.lane.b32.xlu0 %v4280_v7, %s4010_s26 }
 0x687   : > { %v1679_v43 = vpop.xlane.xlu1 %1678 }
 0x688   : > { %v1680_v45 = vsub.f32 %v4418_v58, %v1679_v43  ;;  %v1235_v43 = vand.u32 %v4494_v40, %v4304_v15 }
 0x68a   : > { %v1681_v46 = vmul.f32 1.442695, %v1680_v45 }
 0x68b   : > { %v1795_v52 = vpop.xlane.xlu0 %1794  ;;  %v1909_v61 = vpop.xlane.xlu1 %1908 }
 0x68c   : > { %3904 = vpow2.f32 %v1681_v46  ;;  %v1796_v7 = vsub.f32 %v4424_v63, %v1795_v52  ;;  %1570 = vadd.xlane.f32.xlu1 %v1569_v33  ;;  %v1910_v62 = vsub.f32 %v4428_v3, %v1909_v61 }
 0x68e   : > { %v1797_v47 = vmul.f32 1.442695, %v1796_v7  ;;  %v1911_v2 = vmul.f32 1.442695, %v1910_v62 }
 0x68f   : > { %v2139_v63 = vpop.xlane.xlu1 %2138  ;;  %v2025_v0 = vpop.xlane.xlu0 %2024 }
 0x690   : > { %3906 = vpow2.f32 %v1797_v47  ;;  %v2026_v4 = vsub.f32 %v4430_v8, %v2025_v0 }
 0x691   : > { %3908 = vpow2.f32 %v1911_v2 }
 0x692   : > { %v2027_v6 = vmul.f32 1.442695, %v2026_v4 }
 0x693   : > { %v2255_v1 = vpop.xlane.xlu1 %2254 }
 0x694   : > { %3910 = vpow2.f32 %v2027_v6 }
 0x696   : > { %v4502_v54 = vpop.eup %3904 }
 0x697   : > { %v1683_v55 = vsel %vm865_vm5, %v4502_v54, 0.0 }
 0x698   : > { %1684 = vadd.xlane.f32.xlu1 %v1683_v55 }
 0x69a   : > { %v4506_v60 = vpop.eup %3906 }
 0x69b   : > { %v1799_v58 = vsel %vm865_vm5, %v4506_v60, 0.0 }
 0x69c   : > { %1800 = vadd.xlane.f32.xlu0 %v1799_v58 }
 0x6a9   : > { %1575 = vrot.lane.b32.xlu1 %v4239_v42, %s4010_s26  ;;  %v2140_v42 = vsub.f32 %v4432_v13, %v2139_v63  ;;  %v4529_v13 = vpop.eup %3908 }
 0x6aa   : > { %v4536_v16 = vpop.eup %3910 }
 0x6ab   : > { %v2141_v3 = vmul.f32 1.442695, %v2140_v42 }
 0x6ad   : > { %3912 = vpow2.f32 %v2141_v3 }
 0x6b2   : > { %1689 = vrot.lane.b32.xlu0 %v4244_v48, %s4012_s27  ;;  %v2369_v48 = vpop.xlane.xlu1 %2368 }
 0x6b6   : > { %1805 = vrot.lane.b32.xlu0 %v4288_v9, %s4010_s26  ;;  %v2256_v9 = vsub.f32 %v4434_v18, %v2255_v1  ;;  %v2485_v28 = vpop.xlane.xlu1 %2484 }
 0x6b7   : > { %v2486_v10 = vsub.f32 %v4450_v39, %v2485_v28  ;;  %v2029_v39 = vsel %vm865_vm5, %v4536_v16, 0.0 }
 0x6b8   : > { %v2257_v8 = vmul.f32 1.442695, %v2256_v9 }
 0x6ba   : > { %1919 = vrot.lane.b32.xlu0 %v4248_v49, %s4012_s27  ;;  %v2370_v49 = vsub.f32 %v4442_v25, %v2369_v48  ;;  %3914 = vpow2.f32 %v2257_v8  ;;  %v2599_v18 = vpop.xlane.xlu1 %2598 }
 0x6bb   : > { %v2600_v25 = vsub.f32 %v4456_v50, %v2599_v18 }
 0x6bd   : > { %v2601_v14 = vmul.f32 1.442695, %v2600_v25 }
 0x6be   : > { %2035 = vrot.lane.b32.xlu0 %v4252_v51, %s4010_s26  ;;  %v2371_v51 = vmul.f32 1.442695, %v2370_v49 }
 0x6c2   : > { %2149 = vrot.lane.b32.xlu0 %v4256_v53, %s4012_s27  ;;  %v1913_v53 = vsel %vm865_vm5, %v4529_v13, 0.0 }
 0x6c6   : > { %2265 = vrot.lane.b32.xlu0 %v4296_v11, %s4010_s26  ;;  %v2487_v11 = vmul.f32 1.442695, %v2486_v10 }
 0x6ca   : > { %2379 = vrot.lane.b32.xlu0 %v4260_v56, %s4012_s27  ;;  %v4543_v56 = vpop.eup %3912 }
 0x6cb   : > { %v2143_v17 = vsel %vm865_vm5, %v4543_v56, 0.0  ;;  %v4547_v20 = vpop.eup %3914 }
 0x6cc   : > { %v994_v12 = vpop.xlane.xlu0 %993  ;;  %v2259_v27 = vsel %vm865_vm5, %v4547_v20, 0.0 }
 0x6cd   : > { %3916 = vrcp.f32 %v994_v12  ;;  %1914 = vadd.xlane.f32.xlu1 %v1913_v53 }
 0x6ce   : > { %3918 = vpow2.f32 %v2371_v51  ;;  %2609 = vrot.lane.b32.xlu0 %v4268_v59, %s4012_s27 }
 0x6cf   : > { %3920 = vpow2.f32 %v2487_v11 }
 0x6d1   : > { %2030 = vadd.xlane.f32.xlu1 %v2029_v39 }
 0x6d4   : > { %v1111_v21 = vpop.xlane.xlu0 %1110 }
 0x6d5   : > { %3922 = vrcp.f32 %v1111_v21  ;;  %2144 = vadd.xlane.f32.xlu1 %v2143_v17 }
 0x6d6   : > { %3924 = vpow2.f32 %v2601_v14 }
 0x6d7   : > { %v3917_v50 = vpop.eup %3916 }
 0x6d8   : > { %v996_v59 = vmul.f32 %v3917_v50, %v4462_v5  ;;  %v4552_v26 = vpop.eup %3918 }
 0x6d9   : > { %2260 = vadd.xlane.f32.xlu1 %v2259_v27  ;;  %v2373_v29 = vsel %vm865_vm5, %v4552_v26, 0.0  ;;  %v4559_v32 = vpop.eup %3920 }
 0x6da   : > { %v997_v22 = vpack.c.bf16 %v996_v59, %v996_v59  ;;  %v2489_v41 = vsel %vm865_vm5, %v4559_v32, 0.0 }
 0x6dc   : > { %3627 = vmatmul.mubr.msk.bf16.vlgmr.msra.gmra.mrb[16].mxu0 %vm880_vm8, %v997_v22  ;;  %v1225_v36 = vpop.xlane.xlu0 %1224 }
 0x6dd   : > { %3637 = vmatpush3.bf16.msra.mxu0 %v1121_v24  ;;  %3926 = vrcp.f32 %v1225_v36  ;;  %2374 = vadd.xlane.f32.xlu1 %v2373_v29 }
 0x6de   : > { %3638 = vmatprep.mubr.msk.bf16.mxu0 %vm4006_vm2, %v4005_v31  ;;  %3648 = vmatprep.subr.bf16.mxu0 %v4005_v31 }
 0x6df   : > { %v3923_v5 = vpop.eup %3922 }
 0x6e0   : > { %v1113_v35 = vmul.f32 %v3923_v5, %v4467_v30  ;;  %v4567_v37 = vpop.eup %3924 }
 0x6e1   : > { %2490 = vadd.xlane.f32.xlu1 %v2489_v41  ;;  %v2603_v46 = vsel %vm865_vm5, %v4567_v37, 0.0 }
 0x6e2   : > { %v1114_v38 = vpack.c.bf16 %v1113_v35, %v1113_v35 }
 0x6e4   : > { %v1341_v45 = vpop.xlane.xlu1 %1340  ;;  %3639 = vmatmul.mubr.msk.bf16.vlgmr.msra.gmra.mrb[20].mxu0 %vm880_vm8, %v1114_v38 }
 0x6e5   : > { %3928 = vrcp.f32 %v1341_v45  ;;  %3649 = vmatpush3.bf16.msra.mxu0 %v1235_v43  ;;  %2604 = vadd.xlane.f32.xlu1 %v2603_v46 }
 0x6e6   : > { %3650 = vmatprep.mubr.msk.bf16.mxu0 %vm4006_vm2, %v4005_v31  ;;  %3660 = vmatprep.subr.bf16.mxu0 %v4005_v31 }
 0x6e7   : > { %v3927_v30 = vpop.eup %3926 }
 0x6e8   : > { %v1227_v52 = vmul.f32 %v3927_v30, %v4472_v19  ;;  %v1460_v61 = vpop.permute.xlu1 %1459 }
 0x6e9   : > { %v1465_v19 = vand.u32 %v1460_v61, %v4304_v15 }
 0x6ea   : > { %v1228_v33 = vpack.c.bf16 %v1227_v52, %v1227_v52 }
 0x6ec   : > { %3651 = vmatmul.mubr.msk.bf16.vlgmr.msra.gmra.mrb[24].mxu0 %vm880_vm8, %v1228_v33  ;;  %v1455_v40 = vpop.xlane.xlu0 %1454 }
 0x6ed   : > { %3930 = vrcp.f32 %v1455_v40  ;;  %3662 = vmatprep.mubr.msk.bf16.mxu0 %vm4006_vm2, %v4005_v31 }
 0x6ef   : > { %v3929_v7 = vpop.eup %3928 }
 0x6f0   : > { %v1343_v47 = vmul.f32 %v3929_v7, %v4477_v23  ;;  %v1346_v55 = vpop.permute.xlu0 %1345 }
 0x6f1   : > { %v1351_v58 = vand.u32 %v1346_v55, %v4304_v15 }
 0x6f2   : > { %v1344_v63 = vpack.c.bf16 %v1343_v47, %v1343_v47 }
 0x6f3   : > { %3661 = vmatpush3.bf16.msra.mxu0 %v1351_v58 }
 0x6f4   : > { %3672 = vmatprep.subr.bf16.mxu0 %v4005_v31 }
 0x6f6   : > { %2495 = vrot.lane.b32.xlu1 %v4264_v57, %s4010_s26  ;;  %3663 = vmatmul.mubr.msk.bf16.vlgmr.msra.gmra.mrb[28].mxu0 %vm880_vm8, %v1344_v63 }
 0x6f7   : > { %v3931_v62 = vpop.eup %3930  ;;  %3673 = vmatpush3.bf16.msra.mxu0 %v1465_v19  ;;  %3674 = vmatprep.mubr.msk.bf16.mxu0 %vm4006_vm2, %v4005_v31 }
 0x6f8   : > { %v1457_v23 = vmul.f32 %v3931_v62, %v4482_v34  ;;  %3684 = vmatprep.subr.bf16.mxu0 %v4005_v31 }
 0x6fa   : > { %v1458_v0 = vpack.c.bf16 %v1457_v23, %v1457_v23 }
 0x6fe   : > { %3675 = vmatmul.mubr.msk.bf16.vlgmr.msra.gmra.mrb[32].mxu0 %vm880_vm8, %v1458_v0 }
 0x6ff   : > { %3686 = vmatprep.mubr.msk.bf16.mxu0 %vm4006_vm2, %v4005_v31 }
 0x719   : > { %v1571_v1 = vpop.xlane.xlu1 %1570 }
 0x71a   : > { %3932 = vrcp.f32 %v1571_v1 }
 0x724   : > { %v3933_v2 = vpop.eup %3932 }
 0x725   : > { %v1685_v57 = vpop.xlane.xlu1 %1684  ;;  %v1573_v4 = vmul.f32 %v3933_v2, %v4496_v44 }
 0x726   : > { %3934 = vrcp.f32 %v1685_v57 }
 0x727   : > { %v1574_v34 = vpack.c.bf16 %v1573_v4, %v1573_v4 }
 0x729   : > { %v1576_v42 = vpop.permute.xlu1 %1575  ;;  %v1801_v48 = vpop.xlane.xlu0 %1800 }
 0x72a   : > { %v1581_v6 = vand.u32 %v1576_v42, %v4304_v15  ;;  %3936 = vrcp.f32 %v1801_v48 }
 0x72c   : > { %3685 = vmatpush3.bf16.msra.mxu0 %v1581_v6 }
 0x72d   : > { %3696 = vmatprep.subr.bf16.mxu0 %v4005_v31  ;;  %v1690_v3 = vpop.permute.xlu0 %1689 }
 0x72e   : > { %v1695_v9 = vand.u32 %v1690_v3, %v4304_v15 }
 0x72f   : > { %3687 = vmatmul.mubr.msk.bf16.vlgmr.msra.gmra.mrb[36].mxu0 %vm880_vm8, %v1574_v34 }
 0x730   : > { %v3935_v28 = vpop.eup %3934  ;;  %3698 = vmatprep.mubr.msk.bf16.mxu0 %vm4006_vm2, %v4005_v31  ;;  %3697 = vmatpush3.bf16.msra.mxu0 %v1695_v9 }
 0x731   : > { %v1687_v44 = vmul.f32 %v3935_v28, %v4502_v54  ;;  %3708 = vmatprep.subr.bf16.mxu0 %v4005_v31  ;;  %v1806_v8 = vpop.permute.xlu0 %1805 }
 0x732   : > { %v1811_v10 = vand.u32 %v1806_v8, %v4304_v15 }
 0x733   : > { %v1688_v49 = vpack.c.bf16 %v1687_v44, %v1687_v44 }
 0x734   : > { %v3937_v51 = vpop.eup %3936 }
 0x735   : > { %v1803_v18 = vmul.f32 %v3937_v51, %v4506_v60  ;;  %v1920_v12 = vpop.permute.xlu0 %1919 }
 0x736   : > { %v1925_v53 = vand.u32 %v1920_v12, %v4304_v15  ;;  %v3870_v12 = vld [vmem:[%s4125_s29] sm:$0xff]  }
 0x737   : > { %3699 = vmatmul.mubr.msk.bf16.vlgmr.msra.gmra.mrb[40].mxu0 %vm880_vm8, %v1688_v49  ;;  %v1804_v54 = vpack.c.bf16 %v1803_v18, %v1803_v18  ;;  %3799 = vmatpush3.bf16.msra.mxu1 %v3870_v12  ;;  %v3982_v12 = vld [vmem:[#allocation2] sm:$0xff] }
 0x738   : > { %3709 = vmatpush3.bf16.msra.mxu0 %v1811_v10  ;;  %3710 = vmatprep.mubr.msk.bf16.mxu0 %vm4006_vm2, %v4005_v31 }
 0x739   : > { %3720 = vmatprep.subr.bf16.mxu0 %v4005_v31  ;;  %v2036_v14 = vpop.permute.xlu0 %2035  ;;  %3800 = vmatprep.subr.bf16.mxu1 %v4005_v31 }
 0x73a   : > { %v2041_v59 = vand.u32 %v2036_v14, %v4304_v15 }
 0x73d   : > { %v2150_v24 = vpop.permute.xlu0 %2149 }
 0x73e   : > { %v2155_v29 = vand.u32 %v2150_v24, %v4304_v15 }
 0x73f   : > { %3711 = vmatmul.mubr.msk.bf16.vlgmr.msra.gmra.mrb[44].mxu0 %vm880_vm8, %v1804_v54  ;;  %v3871_v54 = vld [vmem:[%s4125_s29 + $0x8] sm:$0xff]  }
 0x740   : > { %3721 = vmatpush3.bf16.msra.mxu0 %v1925_v53  ;;  %3722 = vmatprep.mubr.msk.bf16.mxu0 %vm4006_vm2, %v4005_v31 }
 0x741   : > { %3732 = vmatprep.subr.bf16.mxu0 %v4005_v31  ;;  %3801 = vmatpush3.bf16.msra.mxu1 %v3871_v54 }
 0x742   : > { %3830 = vmatprep.subr.bf16.mxu1 %v4005_v31 }
 0x75a   : > { %v1915_v11 = vpop.xlane.xlu1 %1914 }
 0x75b   : > { %3938 = vrcp.f32 %v1915_v11 }
 0x75e   : > { %v2031_v25 = vpop.xlane.xlu1 %2030 }
 0x75f   : > { %3940 = vrcp.f32 %v2031_v25 }
 0x762   : > { %v2145_v39 = vpop.xlane.xlu1 %2144 }
 0x763   : > { %3942 = vrcp.f32 %v2145_v39 }
 0x765   : > { %v3939_v60 = vpop.eup %3938 }
 0x766   : > { %v1917_v21 = vmul.f32 %v3939_v60, %v4529_v13  ;;  %v2261_v22 = vpop.xlane.xlu1 %2260 }
 0x767   : > { %3944 = vrcp.f32 %v2261_v22 }
 0x768   : > { %v1918_v17 = vpack.c.bf16 %v1917_v21, %v1917_v21 }
 0x769   : > { %v3941_v50 = vpop.eup %3940 }
 0x76a   : > { %3723 = vmatmul.mubr.msk.bf16.vlgmr.msra.gmra.mrb[48].mxu0 %vm880_vm8, %v1918_v17  ;;  %v2033_v27 = vmul.f32 %v3941_v50, %v4536_v16  ;;  %v2375_v35 = vpop.xlane.xlu1 %2374  ;;  %v2266_v16 = vpop.permute.xlu0 %2265 }
 0x76b   : > { %3733 = vmatpush3.bf16.msra.mxu0 %v2041_v59  ;;  %3734 = vmatprep.mubr.msk.bf16.mxu0 %vm4006_vm2, %v4005_v31  ;;  %3946 = vrcp.f32 %v2375_v35  ;;  %v2271_v43 = vand.u32 %v2266_v16, %v4304_v15 }
 0x76c   : > { %3744 = vmatprep.subr.bf16.mxu0 %v4005_v31  ;;  %v2034_v36 = vpack.c.bf16 %v2033_v27, %v2033_v27 }
 0x76d   : > { %v3943_v13 = vpop.eup %3942 }
 0x76e   : > { %v2147_v5 = vmul.f32 %v3943_v13, %v4543_v56  ;;  %v2491_v45 = vpop.xlane.xlu1 %2490  ;;  %v2380_v56 = vpop.permute.xlu0 %2379 }
 0x76f   : > { %3948 = vrcp.f32 %v2491_v45  ;;  %v2385_v40 = vand.u32 %v2380_v56, %v4304_v15 }
 0x770   : > { %v2148_v41 = vpack.c.bf16 %v2147_v5, %v2147_v5 }
 0x771   : > { %v3945_v38 = vpop.eup %3944 }
 0x772   : > { %3735 = vmatmul.mubr.msk.bf16.vlgmr.msra.gmra.mrb[52].mxu0 %vm880_vm8, %v2034_v36  ;;  %v2263_v46 = vmul.f32 %v3945_v38, %v4547_v20  ;;  %v2605_v30 = vpop.xlane.xlu1 %2604  ;;  %v2610_v63 = vpop.permute.xlu0 %2609 }
 0x773   : > { %3745 = vmatpush3.bf16.msra.mxu0 %v2155_v29  ;;  %3746 = vmatprep.mubr.msk.bf16.mxu0 %vm4006_vm2, %v4005_v31  ;;  %3950 = vrcp.f32 %v2605_v30  ;;  %v2615_v62 = vand.u32 %v2610_v63, %v4304_v15 }
 0x774   : > { %3756 = vmatprep.subr.bf16.mxu0 %v4005_v31  ;;  %v2264_v52 = vpack.c.bf16 %v2263_v46, %v2263_v46 }
 0x775   : > { %v3947_v33 = vpop.eup %3946 }
 0x776   : > { %v2377_v7 = vmul.f32 %v3947_v33, %v4552_v26  ;;  %v2496_v20 = vpop.permute.xlu1 %2495 }
 0x777   : > { %v2501_v58 = vand.u32 %v2496_v20, %v4304_v15 }
 0x778   : > { %v2378_v47 = vpack.c.bf16 %v2377_v7, %v2377_v7 }
 0x779   : > { %v3949_v55 = vpop.eup %3948 }
 0x77a   : > { %3747 = vmatmul.mubr.msk.bf16.vlgmr.msra.gmra.mrb[56].mxu0 %vm880_vm8, %v2148_v41  ;;  %v2493_v61 = vmul.f32 %v3949_v55, %v4559_v32 }
 0x77b   : > { %3757 = vmatpush3.bf16.msra.mxu0 %v2271_v43  ;;  %3758 = vmatprep.mubr.msk.bf16.mxu0 %vm4006_vm2, %v4005_v31 }
 0x77c   : > { %3768 = vmatprep.subr.bf16.mxu0 %v4005_v31  ;;  %v2494_v26 = vpack.c.bf16 %v2493_v61, %v2493_v61 }
 0x77d   : > { %v3951_v19 = vpop.eup %3950 }
 0x77e   : > { %v2607_v23 = vmul.f32 %v3951_v19, %v4567_v37 }
 0x780   : > { %v2608_v0 = vpack.c.bf16 %v2607_v23, %v2607_v23 }
 0x782   : > { %3759 = vmatmul.mubr.msk.bf16.vlgmr.msra.gmra.mrb[60].mxu0 %vm880_vm8, %v2264_v52 }
 0x783   : > { %3769 = vmatpush3.bf16.msra.mxu0 %v2385_v40  ;;  %3770 = vmatprep.mubr.msk.bf16.mxu0 %vm4006_vm2, %v4005_v31 }
 0x784   : > { %3780 = vmatprep.subr.bf16.mxu0 %v4005_v31 }
 0x78a   : > { %3771 = vmatmul.mubr.msk.bf16.vlgmr.msra.gmra.mrb[64].mxu0 %vm880_vm8, %v2378_v47 }
 0x78b   : > { %3781 = vmatpush3.bf16.msra.mxu0 %v2501_v58  ;;  %3782 = vmatprep.mubr.msk.bf16.mxu0 %vm4006_vm2, %v4005_v31 }
 0x78c   : > { %3792 = vmatprep.subr.bf16.mxu0 %v4005_v31 }
 0x792   : > { %3783 = vmatmul.mubr.msk.bf16.vlgmr.msra.gmra.mrb[68].mxu0 %vm880_vm8, %v2494_v26 }
 0x793   : > { %3793 = vmatpush3.bf16.msra.mxu0 %v2615_v62  ;;  %3794 = vmatprep.mubr.msk.bf16.mxu0 %vm4006_vm2, %v4005_v31 }
 0x794   : > { %3814 = vmatprep.subr.bf16.mxu0 %v4005_v31 }
 0x79a   : > { %3795 = vmatmul.mubr.msk.bf16.vlgmr.msra.gmra.mrb[72].mxu0 %vm880_vm8, %v2608_v0 }
 0x79b   : > { %3818 = vmatprep.mubr.msk.bf16.mxu0 %vm4006_vm2, %v4005_v31 }
 0x7af   : > { %v1040_v32 = vpop.f32.mrb[16].mxu0 }
 0x7b0   : > { %1047 = vrot.lane.b32.xlu0 %v1040_v32, %s4013_s16  ;;  %v3628_v15 = vpop.f32.mrb[17].mxu0 }
 0x7b1   : > { %v1043_v1 = vpop.f32.mrb[18].mxu0 }
 0x7b2   : > { %v3629_v57 = vpop.f32.mrb[19].mxu0 }
 0x7b7   : > { %v1157_v2 = vpop.f32.mrb[20].mxu0 }
 0x7b8   : > { %1163 = vst.msk [vmem:[#allocation4 + $0x5] sm:$0x1f] %vm931_vm9, %v1157_v2  ;;  %v3640_v4 = vpop.f32.mrb[21].mxu0 }
 0x7b9   : > { %v1160_v37 = vpop.f32.mrb[22].mxu0 }
 0x7ba   : > { %v3641_v42 = vpop.f32.mrb[23].mxu0 }
 0x7bf   : > { %v1271_v6 = vpop.f32.mrb[24].mxu0 }
 0x7c0   : > { %1278 = vrot.lane.b32.xlu0 %v1271_v6, %s4013_s16  ;;  %v3652_v48 = vpop.f32.mrb[25].mxu0 }
 0x7c1   : > { %v1274_v34 = vpop.f32.mrb[26].mxu0 }
 0x7c2   : > { %v3653_v3 = vpop.f32.mrb[27].mxu0 }
 0x7c9   : > { %v1387_v9 = vpop.f32.mrb[28].mxu0 }
 0x7ca   : > { %1393 = vst.msk [vmem:[#allocation4 + $0xa] sm:$0x1f] %vm931_vm9, %v1387_v9  ;;  %v3664_v28 = vpop.f32.mrb[29].mxu0 }
 0x7cb   : > { %v1390_v44 = vpop.f32.mrb[30].mxu0 }
 0x7cc   : > { %v3665_v8 = vpop.f32.mrb[31].mxu0 }
 0x7cd   : > { %v3473_v8 = vld [vmem:[%s4883_s28] ss:$0 sm:$0xff] }
 0x7d1   : > { %v1501_v49 = vpop.f32.mrb[32].mxu0 }
 0x7d2   : > { %1508 = vrot.lane.b32.xlu0 %v1501_v49, %s4013_s16  ;;  %v3676_v51 = vpop.f32.mrb[33].mxu0 }
 0x7d3   : > { %v1504_v10 = vpop.f32.mrb[34].mxu0 }
 0x7d4   : > { %v3677_v18 = vpop.f32.mrb[35].mxu0 }
 0x802   : > { %v1617_v53 = vpop.f32.mrb[36].mxu0 }
 0x803   : > { %1623 = vst.msk [vmem:[#allocation4 + $0xf] sm:$0x1f] %vm931_vm9, %v1617_v53  ;;  %v3688_v11 = vpop.f32.mrb[37].mxu0 }
 0x804   : > { %v1620_v25 = vpop.f32.mrb[38].mxu0 }
 0x805   : > { %v3689_v39 = vpop.f32.mrb[39].mxu0  ;;  %v3983_v25 = vld [vmem:[#allocation2 + $0x8] sm:$0xff] }
 0x80a   : > { %v1731_v60 = vpop.f32.mrb[40].mxu0 }
 0x80b   : > { %1738 = vrot.lane.b32.xlu1 %v1731_v60, %s4013_s16  ;;  %v3700_v14 = vpop.f32.mrb[41].mxu0 }
 0x80c   : > { %v1734_v21 = vpop.f32.mrb[42].mxu0 }
 0x80d   : > { %v3701_v17 = vpop.f32.mrb[43].mxu0 }
 0x812   : > { %v1847_v50 = vpop.f32.mrb[44].mxu0 }
 0x813   : > { %1853 = vst.msk [vmem:[#allocation4 + $0x14] sm:$0x1f] %vm931_vm9, %v1847_v50  ;;  %v3712_v59 = vpop.f32.mrb[45].mxu0 }
 0x814   : > { %v1850_v27 = vpop.f32.mrb[46].mxu0 }
 0x815   : > { %v3713_v22 = vpop.f32.mrb[47].mxu0  ;;  %v3984_v27 = vld [vmem:[#allocation2 + $0x10] sm:$0xff] }
 0x822   : > { %v1048_v24 = vpop.permute.xlu0 %1047 }
 0x823   : > { %1051 = vst.msk [vmem:[#allocation4] sm:$0x1f] %vm1050_vm10, %v1048_v24 }
 0x832   : > { %v1279_v36 = vpop.permute.xlu0 %1278 }
 0x833   : > { %1281 = vst.msk [vmem:[#allocation4 + $0x5] sm:$0x1f] %vm1050_vm10, %v1279_v36 }
 0x83a   : > { %v2662_v57 = vld [vmem:[#allocation4] sm:$0xff] }
 0x83d   : > { %v1961_v13 = vpop.f32.mrb[48].mxu0 }
 0x83e   : > { %1968 = vrot.lane.b32.xlu0 %v1961_v13, %s4013_s16  ;;  %v3724_v29 = vpop.f32.mrb[49].mxu0  ;;  %v3985_v13 = vld [vmem:[#allocation2 + $0x18] sm:$0xff] }
 0x83f   : > { %v1964_v5 = vpop.f32.mrb[50].mxu0 }
 0x840   : > { %v3725_v35 = vpop.f32.mrb[51].mxu0 }
 0x844   : > { %v1509_v16 = vpop.permute.xlu0 %1508 }
 0x845   : > { %1511 = vst.msk [vmem:[#allocation4 + $0xa] sm:$0x1f] %vm1050_vm10, %v1509_v16  ;;  %v2077_v41 = vpop.f32.mrb[52].mxu0 }
 0x846   : > { %2083 = vst.msk [vmem:[#allocation4 + $0x19] sm:$0x1f] %vm931_vm9, %v2077_v41  ;;  %v3736_v38 = vpop.f32.mrb[53].mxu0 }
 0x847   : > { %v2080_v43 = vpop.f32.mrb[54].mxu0 }
 0x848   : > { %v3737_v45 = vpop.f32.mrb[55].mxu0 }
 0x849   : > { %v3986_v45 = vld [vmem:[#allocation2 + $0x20] sm:$0xff] }
 0x84d   : > { %v2191_v46 = vpop.f32.mrb[56].mxu0 }
 0x84e   : > { %2198 = vrot.lane.b32.xlu1 %v2191_v46, %s4013_s16  ;;  %v3748_v56 = vpop.f32.mrb[57].mxu0 }
 0x84f   : > { %v2194_v30 = vpop.f32.mrb[58].mxu0 }
 0x850   : > { %v3749_v52 = vpop.f32.mrb[59].mxu0 }
 0x855   : > { %v2307_v33 = vpop.f32.mrb[60].mxu0 }
 0x856   : > { %2313 = vst.msk [vmem:[#allocation4 + $0x1e] sm:$0x1f] %vm931_vm9, %v2307_v33  ;;  %v3760_v40 = vpop.f32.mrb[61].mxu0 }
 0x857   : > { %v2310_v7 = vpop.f32.mrb[62].mxu0 }
 0x858   : > { %v3761_v20 = vpop.f32.mrb[63].mxu0 }
 0x85d   : > { %v2421_v47 = vpop.f32.mrb[64].mxu0 }
 0x85e   : > { %2428 = vrot.lane.b32.xlu0 %v2421_v47, %s4013_s16  ;;  %v3772_v55 = vpop.f32.mrb[65].mxu0 }
 0x85f   : > { %v2424_v58 = vpop.f32.mrb[66].mxu0 }
 0x860   : > { %v3773_v61 = vpop.f32.mrb[67].mxu0 }
 0x865   : > { %v2537_v63 = vpop.f32.mrb[68].mxu0 }
 0x866   : > { %2543 = vst.msk [vmem:[#allocation4 + $0x23] sm:$0x1f] %vm931_vm9, %v2537_v63  ;;  %v3784_v26 = vpop.f32.mrb[69].mxu0 }
 0x867   : > { %v2540_v19 = vpop.f32.mrb[70].mxu0  ;;  %v3872_v26 = vld [vmem:[%s4138_s25] sm:$0xff]  }
 0x868   : > { %v3785_v62 = vpop.f32.mrb[71].mxu0  ;;  %3815 = vmatpush3.bf16.msra.mxu0 %v3872_v26  ;;  %v3873_v19 = vld [vmem:[%s4138_s25 + $0x8] sm:$0xff]  }
 0x869   : > { %3816 = vmatprep.subr.bf16.mxu0 %v4005_v31  ;;  %v3875_v26 = vld [vmem:[%s4152_s19 + $0x8] sm:$0xff]  }
 0x86c   : > { %3817 = vmatpush3.bf16.msra.mxu0 %v3873_v19  ;;  %v3876_v19 = vld [vmem:[%s4152_s19 + $0x10] sm:$0xff]  }
 0x86d   : > { %v2651_v23 = vpop.f32.mrb[72].mxu0 }
 0x86e   : > { %2658 = vrot.lane.b32.xlu1 %v2651_v23, %s4013_s16  ;;  %v3796_v0 = vpop.f32.mrb[73].mxu0  ;;  %s4887_s16 = sld [smem:[#allocation10_spill]] (!%p3495_p5) }
 0x86f   : > { %v2654_v32 = vpop.f32.mrb[74].mxu0 }
 0x870   : > { %v3797_v15 = vpop.f32.mrb[75].mxu0 }
 0x87d   : > { %v1739_v1 = vpop.permute.xlu1 %1738 }
 0x87e   : > { %1741 = vst.msk [vmem:[#allocation4 + $0xf] sm:$0x1f] %vm1050_vm10, %v1739_v1 }
 0x885   : > { %v2663_v2 = vld [vmem:[#allocation4 + $0x8] sm:$0xff] }
 0x886   : > { %v2667_v4 = vpack.c.bf16 %v2663_v2, %v2662_v57 }
 0x888   : > { %3803 = vmatmul.mubr.msk.bf16.vlgmr.msra.gmra.mrb[64].mxu1 %vm634_vm1, %v2667_v4 }
 0x889   : > { %3806 = vmatprep.mubr.msk.bf16.mxu1 %vm4006_vm2, %v4005_v31 }
 0x8b0   : > { %v1969_v37 = vpop.permute.xlu0 %1968 }
 0x8b1   : > { %1971 = vst.msk [vmem:[#allocation4 + $0x14] sm:$0x1f] %vm1050_vm10, %v1969_v37 }
 0x8b8   : > { %v2664_v48 = vld [vmem:[#allocation4 + $0x10] sm:$0xff] }
 0x8c0   : > { %v2199_v42 = vpop.permute.xlu1 %2198 }
 0x8c1   : > { %2201 = vst.msk [vmem:[#allocation4 + $0x19] sm:$0x1f] %vm1050_vm10, %v2199_v42 }
 0x8d0   : > { %v2429_v6 = vpop.permute.xlu0 %2428 }
 0x8d1   : > { %2431 = vst.msk [vmem:[#allocation4 + $0x1e] sm:$0x1f] %vm1050_vm10, %v2429_v6 }
 0x8d8   : > { %v2665_v34 = vld [vmem:[#allocation4 + $0x18] sm:$0xff] }
 0x8d9   : > { %v2668_v3 = vpack.c.bf16 %v2665_v34, %v2664_v48 }
 0x8db   : > { %3807 = vmatmul.mubr.msk.bf16.gmra.mrb[68].mxu1 %vm634_vm1, %v2668_v3 }
 0x8dc   : > { %3810 = vmatprep.mubr.msk.bf16.mxu1 %vm4006_vm2, %v4005_v31 }
 0x8e0   : > { %v2659_v9 = vpop.permute.xlu1 %2658 }
 0x8e1   : > { %2661 = vst.msk [vmem:[#allocation4 + $0x23] sm:$0x1f] %vm1050_vm10, %v2659_v9 }
 0x8e8   : > { %v2666_v28 = vld [vmem:[#allocation4 + $0x20] sm:$0xff] }
 0x8e9   : > { %v2669_v44 = vpack.c.bf16 %v2666_v28, %v2666_v28 }
 0x8eb   : > { %3811 = vmatmul.mubr.msk.bf16.gmra.mrb[72].mxu1 %vm634_vm1, %v2669_v44 }
 0x8ec   : > { %3838 = vmatprep.mubr.msk.bf16.mxu1 %vm4006_vm2, %v4005_v31 }
 0x95b   : > { %v2736_v49 = vpop.f32.mrb[64].mxu1 }
 0x95c   : > { %v2737_v51 = vadd.f32 %v3473_v8, %v2736_v49  ;;  %v3804_v10 = vpop.f32.mrb[65].mxu1 }
 0x95d   : > { %v2739_v18 = vpop.f32.mrb[66].mxu1 }
 0x95e   : > { %v4696_v54 = vadd.f32 %v3982_v12, %v2737_v51  ;;  %v2740_v53 = vadd.f32 %v3473_v8, %v2739_v18  ;;  %v3805_v11 = vpop.f32.mrb[67].mxu1  ;;  %v3479_v18 = vld [vmem:[%s4884_s18] ss:$0 sm:$0xff] }
 0x960   : > { %v4698_v39 = vadd.f32 %v3983_v25, %v2740_v53  ;;  %v2765_v60 = vsel %vm634_vm1, %v4696_v54, 0.0 }
 0x961   : > { %2766 = vadd.xlane.f32.xlu0 %v2765_v60  ;;  %v3480_v60 = vld [vmem:[%s594_s13] ss:$0 sm:$0xff] }
 0x962   : > { %v2768_v14 = vsel %vm634_vm1, %v4698_v39, 0.0 }
 0x963   : > { %2769 = vadd.xlane.f32.xlu1 %v2768_v14 }
 0x9ae   : > { %v2744_v21 = vpop.f32.mrb[68].mxu1 }
 0x9af   : > { %v2745_v17 = vadd.f32 %v3473_v8, %v2744_v21  ;;  %v3808_v50 = vpop.f32.mrb[69].mxu1 }
 0x9b0   : > { %v2747_v59 = vpop.f32.mrb[70].mxu1 }
 0x9b1   : > { %v4704_v22 = vadd.f32 %v3984_v27, %v2745_v17  ;;  %v2748_v24 = vadd.f32 %v3473_v8, %v2747_v59  ;;  %v3809_v36 = vpop.f32.mrb[71].mxu1 }
 0x9b3   : > { %v4706_v29 = vadd.f32 %v3985_v13, %v2748_v24  ;;  %v2771_v5 = vsel %vm634_vm1, %v4704_v22, 0.0 }
 0x9b4   : > { %2772 = vadd.xlane.f32.xlu0 %v2771_v5 }
 0x9b5   : > { %v2774_v35 = vsel %vm634_vm1, %v4706_v29, 0.0 }
 0x9b8   : > { %2775 = vadd.xlane.f32.xlu0 %v2774_v35 }
 0x9be   : > { %v2752_v16 = vpop.f32.mrb[72].mxu1 }
 0x9bf   : > { %v2753_v41 = vadd.f32 %v3473_v8, %v2752_v16  ;;  %v3812_v38 = vpop.f32.mrb[73].mxu1 }
 0x9c0   : > { %v2755_v43 = vpop.f32.mrb[74].mxu1 }
 0x9c1   : > { %v4712_v46 = vadd.f32 %v3986_v45, %v2753_v41  ;;  %v3813_v56 = vpop.f32.mrb[75].mxu1 }
 0x9c3   : > { %v2777_v30 = vsel %vm634_vm1, %v4712_v46, 0.0 }
 0x9c4   : > { %2778 = vadd.xlane.f32.xlu0 %v2777_v30 }
 0x9ee   : > { %v2767_v52 = vpop.xlane.xlu0 %2766 }
 0x9ef   : > { %v2780_v33 = vmul.f32 0.03125, %v2767_v52 }
 0x9f0   : > { %v2770_v40 = vpop.xlane.xlu1 %2769 }
 0x9f1   : > { %v2785_v7 = vsub.f32 %v4696_v54, %v2780_v33  ;;  %v2781_v20 = vmul.f32 0.03125, %v2770_v40 }
 0x9f3   : > { %v2786_v47 = vsub.f32 %v4698_v39, %v2781_v20  ;;  %v2790_v55 = vmul.f32 %v2785_v7, %v2785_v7 }
 0x9f5   : > { %v2795_v58 = vsel %vm634_vm1, %v2790_v55, 0.0  ;;  %v2791_v61 = vmul.f32 %v2786_v47, %v2786_v47 }
 0x9f6   : > { %2796 = vadd.xlane.f32.xlu1 %v2795_v58 }
 0x9f7   : > { %v2798_v63 = vsel %vm634_vm1, %v2791_v61, 0.0 }
 0x9f8   : > { %2799 = vadd.xlane.f32.xlu0 %v2798_v63  ;;  %v3874_v63 = vld [vmem:[%s4152_s19] sm:$0xff]  }
 0x9f9   : > { %3831 = vmatpush3.bf16.msra.mxu1 %v3874_v63 }
 0x9fa   : > { %3832 = vmatprep.subr.bf16.mxu1 %v4005_v31 }
 0x9fd   : > { %3833 = vmatpush3.bf16.msra.mxu1 %v3875_v26 }
 0x9fe   : > { %3834 = vmatprep.subr.bf16.mxu1 %v4005_v31 }
 0xa01   : > { %3835 = vmatpush3.bf16.msra.mxu1 %v3876_v19 }
 0xa02   : > { %3836 = vmatprep.subr.bf16.mxu1 %v4005_v31 }
 0xa41   : > { %v2773_v62 = vpop.xlane.xlu0 %2772 }
 0xa42   : > { %v2782_v23 = vmul.f32 0.03125, %v2773_v62  ;;  %v3877_v62 = vld [vmem:[%s4152_s19 + $0x18] sm:$0xff]  }
 0xa43   : > { %3837 = vmatpush3.bf16.msra.mxu1 %v3877_v62 }
 0xa44   : > { %v2787_v0 = vsub.f32 %v4704_v22, %v2782_v23  ;;  %v4758_v23 = vld [vmem:[%s602_s3] ss:$0 sm:$0xff] }
 0xa45   : > { %v2776_v32 = vpop.xlane.xlu0 %2775 }
 0xa46   : > { %v2783_v15 = vmul.f32 0.03125, %v2776_v32  ;;  %v2792_v1 = vmul.f32 %v2787_v0, %v2787_v0 }
 0xa48   : > { %v2788_v57 = vsub.f32 %v4706_v29, %v2783_v15  ;;  %v2801_v2 = vsel %vm634_vm1, %v2792_v1, 0.0 }
 0xa49   : > { %2802 = vadd.xlane.f32.xlu1 %v2801_v2 }
 0xa4a   : > { %v2793_v4 = vmul.f32 %v2788_v57, %v2788_v57 }
 0xa4c   : > { %v2804_v37 = vsel %vm634_vm1, %v2793_v4, 0.0 }
 0xa4d   : > { %2805 = vadd.xlane.f32.xlu0 %v2804_v37 }
 0xa51   : > { %v2779_v42 = vpop.xlane.xlu0 %2778 }
 0xa52   : > { %v2784_v6 = vmul.f32 0.03125, %v2779_v42  ;;  %v4014_v42 = vmov -1.0  }
 0xa54   : > { %v2789_v48 = vsub.f32 %v4712_v46, %v2784_v6 }
 0xa56   : > { %v2794_v34 = vmul.f32 %v2789_v48, %v2789_v48 }
 0xa58   : > { %v2807_v3 = vsel %vm634_vm1, %v2794_v34, 0.0 }
 0xa59   : > { %2808 = vadd.xlane.f32.xlu1 %v2807_v3 }
 0xa83   : > { %v2797_v9 = vpop.xlane.xlu1 %2796 }
 0xa84   : > { %v2810_v28 = vmul.f32 0.03125, %v2797_v9 }
 0xa85   : > { %v2800_v44 = vpop.xlane.xlu0 %2799 }
 0xa86   : > { %v2815_v8 = vadd.f32 1e-05, %v2810_v28  ;;  %v2811_v49 = vmul.f32 0.03125, %v2800_v44 }
 0xa88   : > { %3952 = vrsqrt.f32 %v2815_v8  ;;  %v2816_v51 = vadd.f32 1e-05, %v2811_v49 }
 0xa8a   : > { %3954 = vrsqrt.f32 %v2816_v51 }
 0xa92   : > { %v3953_v10 = vpop.eup %3952 }
 0xa93   : > { %v2825_v12 = vmul.f32 %v3953_v10, %v2785_v7 }
 0xa94   : > { %v3955_v53 = vpop.eup %3954 }
 0xa95   : > { %v2836_v11 = vmul.f32 %v3479_v18, %v2825_v12  ;;  %v2826_v25 = vmul.f32 %v3955_v53, %v2786_v47 }
 0xa97   : > { %v2837_v14 = vmul.f32 %v3479_v18, %v2826_v25  ;;  %v2847_v21 = vadd.f32 %v3480_v60, %v2836_v11 }
 0xa99   : > { %v2848_v17 = vadd.f32 %v3480_v60, %v2837_v14 }
 0xa9b   : > { %v2852_v50 = vpack.c.bf16 %v2848_v17, %v2847_v21 }
 0xa9d   : > { %3819 = vmatmul.mubr.msk.bf16.vlgmr.msra.gmra.mrb[76].mxu0 %vm634_vm1, %v2852_v50 }
 0xa9e   : > { %3822 = vmatprep.mubr.msk.bf16.mxu0 %vm4006_vm2, %v4005_v31 }
 0xad6   : > { %v2803_v59 = vpop.xlane.xlu1 %2802 }
 0xad7   : > { %v2812_v27 = vmul.f32 0.03125, %v2803_v59 }
 0xad9   : > { %v2817_v24 = vadd.f32 1e-05, %v2812_v27 }
 0xada   : > { %v2806_v36 = vpop.xlane.xlu0 %2805 }
 0xadb   : > { %3956 = vrsqrt.f32 %v2817_v24  ;;  %v2813_v13 = vmul.f32 0.03125, %v2806_v36 }
 0xadd   : > { %v2818_v5 = vadd.f32 1e-05, %v2813_v13 }
 0xadf   : > { %3958 = vrsqrt.f32 %v2818_v5 }
 0xae5   : > { %v3957_v35 = vpop.eup %3956 }
 0xae6   : > { %v2827_v16 = vmul.f32 %v3957_v35, %v2787_v0  ;;  %v2809_v41 = vpop.xlane.xlu1 %2808 }
 0xae7   : > { %v2814_v38 = vmul.f32 0.03125, %v2809_v41 }
 0xae8   : > { %v2838_v30 = vmul.f32 %v3479_v18, %v2827_v16 }
 0xae9   : > { %v3959_v43 = vpop.eup %3958  ;;  %v2819_v45 = vadd.f32 1e-05, %v2814_v38 }
 0xaea   : > { %v2828_v56 = vmul.f32 %v3959_v43, %v2788_v57  ;;  %v2849_v33 = vadd.f32 %v3480_v60, %v2838_v30 }
 0xaeb   : > { %3960 = vrsqrt.f32 %v2819_v45 }
 0xaec   : > { %v2839_v52 = vmul.f32 %v3479_v18, %v2828_v56 }
 0xaee   : > { %v2850_v40 = vadd.f32 %v3480_v60, %v2839_v52 }
 0xaf0   : > { %v2853_v7 = vpack.c.bf16 %v2850_v40, %v2849_v33 }
 0xaf2   : > { %3823 = vmatmul.mubr.msk.bf16.gmra.mrb[80].mxu0 %vm634_vm1, %v2853_v7 }
 0xaf3   : > { %3826 = vmatprep.mubr.msk.bf16.mxu0 %vm4006_vm2, %v4005_v31 }
 0xaf5   : > { %v3961_v20 = vpop.eup %3960 }
 0xaf6   : > { %v2829_v47 = vmul.f32 %v3961_v20, %v2789_v48 }
 0xaf8   : > { %v2840_v55 = vmul.f32 %v3479_v18, %v2829_v47 }
 0xafa   : > { %v2851_v58 = vadd.f32 %v3480_v60, %v2840_v55 }
 0xafc   : > { %v2854_v61 = vpack.c.bf16 %v2851_v58, %v2851_v58 }
 0xafe   : > { %3827 = vmatmul.mubr.msk.bf16.gmra.mrb[84].mxu0 %vm634_vm1, %v2854_v61 }
 0xb70   : > { %v2921_v0 = vpop.f32.mrb[76].mxu0 }
 0xb71   : > { %v2922_v32 = vadd.f32 %v4758_v23, %v2921_v0  ;;  %v3820_v15 = vpop.f32.mrb[77].mxu0 }
 0xb72   : > { %v2924_v1 = vpop.f32.mrb[78].mxu0 }
 0xb73   : > { %v2948_v57 = vmul.f32 0.70710677, %v2922_v32  ;;  %v2925_v2 = vadd.f32 %v4758_v23, %v2924_v1  ;;  %v3821_v4 = vpop.f32.mrb[79].mxu0  ;;  %v2943_v61 = vmul.f32 0.5, %v2922_v32 }
 0xb75   : > { %vm2953_vm11 = vcmp.ge.f32.partialorder %v2948_v57, 0.0  ;;  %v2949_v37 = vmul.f32 0.70710677, %v2925_v2  ;;  %v2944_v63 = vmul.f32 0.5, %v2925_v2 }
 0xb76   : > { %v2958_v6 = vsel %vm2953_vm11, 1.0, %v4014_v42 }
 0xb77   : > { %v2963_v48 = vmul.f32 %v2958_v6, %v2948_v57  ;;  %vm2954_vm12 = vcmp.ge.f32.partialorder %v2949_v37, 0.0 }
 0xb78   : > { %v2959_v34 = vsel %vm2954_vm12, 1.0, %v4014_v42 }
 0xb79   : > { %v2968_v3 = vmul.f32 0.3275911, %v2963_v48  ;;  %v2964_v9 = vmul.f32 %v2959_v34, %v2949_v37  ;;  %v3033_v49 = vsub.f32 0.0, %v2963_v48 }
 0xb7b   : > { %v2973_v28 = vadd.f32 1.0, %v2968_v3  ;;  %v2969_v44 = vmul.f32 0.3275911, %v2964_v9  ;;  %v3034_v51 = vsub.f32 0.0, %v2964_v9  ;;  %v3038_v18 = vmul.f32 %v3033_v49, %v2963_v48 }
 0xb7d   : > { %3962 = vrcp.f32 %v2973_v28  ;;  %v2974_v8 = vadd.f32 1.0, %v2969_v44  ;;  %v3039_v25 = vmul.f32 %v3034_v51, %v2964_v9  ;;  %v3043_v60 = vmul.f32 1.442695, %v3038_v18 }
 0xb7f   : > { %3964 = vrcp.f32 %v2974_v8  ;;  %v3045_v59 = vmul.f32 1.442695, %v3039_v25 }
 0xb80   : > { %3966 = vpow2.f32 %v3043_v60 }
 0xb81   : > { %3968 = vpow2.f32 %v3045_v59 }
 0xb87   : > { %v3963_v10 = vpop.eup %3962 }
 0xb88   : > { %v2988_v12 = vmul.f32 1.0614054, %v3963_v10 }
 0xb89   : > { %v3965_v53 = vpop.eup %3964 }
 0xb8a   : > { %v2993_v11 = vadd.f32 -1.4531521, %v2988_v12  ;;  %v2989_v14 = vmul.f32 1.0614054, %v3965_v53  ;;  %v3967_v45 = vpop.eup %3966 }
 0xb8b   : > { %v3969_v33 = vpop.eup %3968 }
 0xb8c   : > { %v2998_v21 = vmul.f32 %v3963_v10, %v2993_v11  ;;  %v2994_v17 = vadd.f32 -1.4531521, %v2989_v14 }
 0xb8e   : > { %v3003_v50 = vadd.f32 1.4214138, %v2998_v21  ;;  %v2999_v27 = vmul.f32 %v3965_v53, %v2994_v17 }
 0xb90   : > { %v3008_v24 = vmul.f32 %v3963_v10, %v3003_v50  ;;  %v3004_v36 = vadd.f32 1.4214138, %v2999_v27 }
 0xb92   : > { %v3013_v13 = vadd.f32 -0.28449672, %v3008_v24  ;;  %v3009_v5 = vmul.f32 %v3965_v53, %v3004_v36 }
 0xb94   : > { %v3018_v35 = vmul.f32 %v3963_v10, %v3013_v13  ;;  %v3014_v16 = vadd.f32 -0.28449672, %v3009_v5 }
 0xb96   : > { %v3023_v41 = vadd.f32 0.2548296, %v3018_v35  ;;  %v3019_v38 = vmul.f32 %v3965_v53, %v3014_v16 }
 0xb98   : > { %v3028_v43 = vmul.f32 %v3963_v10, %v3023_v41  ;;  %v3024_v56 = vadd.f32 0.2548296, %v3019_v38 }
 0xb9a   : > { %v3053_v30 = vmul.f32 %v3967_v45, %v3028_v43  ;;  %v3029_v52 = vmul.f32 %v3965_v53, %v3024_v56 }
 0xb9c   : > { %v3058_v40 = vsub.f32 1.0, %v3053_v30  ;;  %v3054_v7 = vmul.f32 %v3969_v33, %v3029_v52 }
 0xb9e   : > { %v3063_v20 = vmul.f32 %v3058_v40, %v2958_v6  ;;  %v3059_v47 = vsub.f32 1.0, %v3054_v7 }
 0xba0   : > { %v3068_v55 = vadd.f32 1.0, %v3063_v20  ;;  %v3064_v58 = vmul.f32 %v3059_v47, %v2959_v34 }
 0xba2   : > { %v3069_v26 = vadd.f32 1.0, %v3064_v58  ;;  %v3073_v19 = vmul.f32 %v3068_v55, %v2943_v61 }
 0xba4   : > { %v3074_v62 = vmul.f32 %v3069_v26, %v2944_v63 }
 0xba6   : > { %v3078_v0 = vpack.c.bf16 %v3074_v62, %v3073_v19 }
 0xba8   : > { %3839 = vmatmul.mubr.msk.bf16.vlgmr.msra.gmra.mrb[76].mxu1 %vm3120_vm13, %v3078_v0 }
 0xba9   : > { %3842 = vmatprep.mubr.msk.bf16.mxu1 %vm4006_vm2, %v4005_v31 }
 0xbc5   : > { %v2929_v15 = vpop.f32.mrb[80].mxu0 }
 0xbc6   : > { %v4768_v1 = vadd.f32 %v4758_v23, %v2929_v15  ;;  %v3824_v57 = vpop.f32.mrb[81].mxu0 }
 0xbc7   : > { %v2932_v4 = vpop.f32.mrb[82].mxu0 }
 0xbc8   : > { %v2950_v37 = vmul.f32 0.70710677, %v4768_v1  ;;  %v4772_v32 = vadd.f32 %v4758_v23, %v2932_v4  ;;  %v3825_v2 = vpop.f32.mrb[83].mxu0 }
 0xbca   : > { %vm2955_vm14 = vcmp.ge.f32.partialorder %v2950_v37, 0.0  ;;  %v2951_v6 = vmul.f32 0.70710677, %v4772_v32 }
 0xbcb   : > { %v4776_v48 = vsel %vm2955_vm14, 1.0, %v4014_v42 }
 0xbcc   : > { %v2965_v34 = vmul.f32 %v4776_v48, %v2950_v37  ;;  %vm2956_vm15 = vcmp.ge.f32.partialorder %v2951_v6, 0.0 }
 0xbcd   : > { %v4780_v3 = vsel %vm2956_vm15, 1.0, %v4014_v42 }
 0xbce   : > { %v2970_v9 = vmul.f32 0.3275911, %v2965_v34  ;;  %v2966_v28 = vmul.f32 %v4780_v3, %v2951_v6  ;;  %v3035_v25 = vsub.f32 0.0, %v2965_v34 }
 0xbd0   : > { %v2975_v44 = vadd.f32 1.0, %v2970_v9  ;;  %v2971_v8 = vmul.f32 0.3275911, %v2966_v28  ;;  %v3036_v21 = vsub.f32 0.0, %v2966_v28  ;;  %v3040_v59 = vmul.f32 %v3035_v25, %v2965_v34 }
 0xbd1   : > { %v2937_v49 = vpop.f32.mrb[84].mxu0 }
 0xbd2   : > { %3970 = vrcp.f32 %v2975_v44  ;;  %v2976_v51 = vadd.f32 1.0, %v2971_v8  ;;  %v3828_v10 = vpop.f32.mrb[85].mxu0  ;;  %v4784_v18 = vadd.f32 %v4758_v23, %v2937_v49  ;;  %v3041_v13 = vmul.f32 %v3036_v21, %v2966_v28 }
 0xbd3   : > { %v2940_v12 = vpop.f32.mrb[86].mxu0  ;;  %v3047_v5 = vmul.f32 1.442695, %v3040_v59 }
 0xbd4   : > { %v3829_v53 = vpop.f32.mrb[87].mxu0  ;;  %3972 = vrcp.f32 %v2976_v51  ;;  %v2952_v11 = vmul.f32 0.70710677, %v4784_v18  ;;  %v3049_v43 = vmul.f32 1.442695, %v3041_v13  ;;  %v2945_v12 = vmul.f32 0.5, %v4768_v1 }
 0xbd5   : > { %v2946_v53 = vmul.f32 0.5, %v4772_v32  ;;  %v2947_v1 = vmul.f32 0.5, %v4784_v18 }
 0xbd6   : > { %vm2957_vm0 = vcmp.ge.f32.partialorder %v2952_v11, 0.0 }
 0xbd7   : > { %v4788_v60 = vsel %vm2957_vm0, 1.0, %v4014_v42 }
 0xbd8   : > { %v2967_v14 = vmul.f32 %v4788_v60, %v2952_v11 }
 0xbda   : > { %v2972_v17 = vmul.f32 0.3275911, %v2967_v14  ;;  %v3037_v56 = vsub.f32 0.0, %v2967_v14 }
 0xbdc   : > { %v3971_v50 = vpop.eup %3970  ;;  %v2977_v24 = vadd.f32 1.0, %v2972_v17  ;;  %v3042_v20 = vmul.f32 %v3037_v56, %v2967_v14 }
 0xbdd   : > { %v2990_v27 = vmul.f32 1.0614054, %v3971_v50 }
 0xbde   : > { %v3973_v23 = vpop.eup %3972  ;;  %3974 = vrcp.f32 %v2977_v24  ;;  %v3051_v19 = vmul.f32 1.442695, %v3042_v20 }
 0xbdf   : > { %v2995_v36 = vadd.f32 -1.4531521, %v2990_v27  ;;  %v2991_v35 = vmul.f32 1.0614054, %v3973_v23  ;;  %3976 = vpow2.f32 %v3047_v5 }
 0xbe0   : > { %3978 = vpow2.f32 %v3049_v43 }
 0xbe1   : > { %v3000_v16 = vmul.f32 %v3971_v50, %v2995_v36  ;;  %v2996_v41 = vadd.f32 -1.4531521, %v2991_v35  ;;  %3980 = vpow2.f32 %v3051_v19  ;;  %v3487_v36 = vld [vmem:[%s610_s12] ss:$0 sm:$0xff] }
 0xbe3   : > { %v3005_v38 = vadd.f32 1.4214138, %v3000_v16  ;;  %v3001_v42 = vmul.f32 %v3973_v23, %v2996_v41 }
 0xbe5   : > { %v3010_v45 = vmul.f32 %v3971_v50, %v3005_v38  ;;  %v3006_v30 = vadd.f32 1.4214138, %v3001_v42 }
 0xbe7   : > { %v3015_v52 = vadd.f32 -0.28449672, %v3010_v45  ;;  %v3011_v33 = vmul.f32 %v3973_v23, %v3006_v30 }
 0xbe8   : > { %v3975_v40 = vpop.eup %3974 }
 0xbe9   : > { %v3020_v7 = vmul.f32 %v3971_v50, %v3015_v52  ;;  %v3016_v47 = vadd.f32 -0.28449672, %v3011_v33  ;;  %v2992_v55 = vmul.f32 1.0614054, %v3975_v40  ;;  %v3977_v62 = vpop.eup %3976 }
 0xbea   : > { %v3979_v2 = vpop.eup %3978 }
 0xbeb   : > { %v3025_v58 = vadd.f32 0.2548296, %v3020_v7  ;;  %v3021_v61 = vmul.f32 %v3973_v23, %v3016_v47  ;;  %v2997_v63 = vadd.f32 -1.4531521, %v2992_v55 }
 0xbed   : > { %v3030_v26 = vmul.f32 %v3971_v50, %v3025_v58  ;;  %v3026_v0 = vadd.f32 0.2548296, %v3021_v61  ;;  %v3002_v15 = vmul.f32 %v3975_v40, %v2997_v63  ;;  %v3981_v50 = vpop.eup %3980 }
 0xbef   : > { %v3055_v57 = vmul.f32 %v3977_v62, %v3030_v26  ;;  %v3031_v4 = vmul.f32 %v3973_v23, %v3026_v0  ;;  %v3007_v37 = vadd.f32 1.4214138, %v3002_v15 }
 0xbf1   : > { %v3060_v6 = vsub.f32 1.0, %v3055_v57  ;;  %v3056_v34 = vmul.f32 %v3979_v2, %v3031_v4  ;;  %v3012_v9 = vmul.f32 %v3975_v40, %v3007_v37 }
 0xbf3   : > { %v3065_v28 = vmul.f32 %v3060_v6, %v4776_v48  ;;  %v3061_v44 = vsub.f32 1.0, %v3056_v34  ;;  %v3017_v8 = vadd.f32 -0.28449672, %v3012_v9 }
 0xbf5   : > { %v3070_v49 = vadd.f32 1.0, %v3065_v28  ;;  %v3066_v51 = vmul.f32 %v3061_v44, %v4780_v3  ;;  %v3022_v10 = vmul.f32 %v3975_v40, %v3017_v8 }
 0xbf7   : > { %v3071_v11 = vadd.f32 1.0, %v3066_v51  ;;  %v3027_v25 = vadd.f32 0.2548296, %v3022_v10  ;;  %v3075_v14 = vmul.f32 %v3070_v49, %v2945_v12 }
 0xbf9   : > { %v3076_v21 = vmul.f32 %v3071_v11, %v2946_v53  ;;  %v3032_v17 = vmul.f32 %v3975_v40, %v3027_v25 }
 0xbfb   : > { %v3079_v59 = vpack.c.bf16 %v3076_v21, %v3075_v14  ;;  %v3057_v27 = vmul.f32 %v3981_v50, %v3032_v17 }
 0xbfd   : > { %v3062_v48 = vsub.f32 1.0, %v3057_v27  ;;  %3843 = vmatmul.mubr.msk.bf16.gmra.mrb[80].mxu1 %vm3120_vm13, %v3079_v59 }
 0xbfe   : > { %3846 = vmatprep.mubr.msk.bf16.mxu1 %vm4006_vm2, %v4005_v31 }
 0xbff   : > { %v3067_v3 = vmul.f32 %v3062_v48, %v4788_v60 }
 0xc01   : > { %v3072_v32 = vadd.f32 1.0, %v3067_v3 }
 0xc03   : > { %v3077_v24 = vmul.f32 %v3072_v32, %v2947_v1 }
 0xc05   : > { %v3080_v23 = vpack.c.bf16 %v3077_v24, %v3077_v24 }
 0xc07   : > { %3847 = vmatmul.mubr.msk.bf16.gmra.mrb[84].mxu1 %vm3120_vm13, %v3080_v23 }
 0xc7b   : > { %v3164_v13 = vpop.f32.mrb[76].mxu1 }
 0xc7c   : > { %v3165_v5 = vadd.f32 %v3487_v36, %v3164_v13  ;;  %v3840_v35 = vpop.f32.mrb[77].mxu1 }
 0xc7d   : > { %v3167_v16 = vpop.f32.mrb[78].mxu1 }
 0xc7e   : > { %v3186_v31 = vadd.f32 %v3165_v5, %v4696_v54  ;;  %v3168_v41 = vadd.f32 %v3487_v36, %v3167_v16  ;;  %v3841_v60 = vpop.f32.mrb[79].mxu1 }
 0xc7f   : > { %v3497_v60 = vld [vmem:[%s4886_s4] ss:$0 sm:$0xff] (!%p3495_p5) }
 0xc80   : > { %3191 = vst.msk [vmem:[#allocation2] sm:$0xff] %vm634_vm1, %v3186_v31  ;;  %v3187_v18 = vadd.f32 %v3168_v41, %v4698_v39 }
 0xc82   : > { %3192 = vst.msk [vmem:[#allocation2 + $0x8] sm:$0xff] %vm634_vm1, %v3187_v18 }
 0xcd0   : > { %v3172_v38 = vpop.f32.mrb[80].mxu1 }
 0xcd1   : > { %v3173_v43 = vadd.f32 %v3487_v36, %v3172_v38  ;;  %v3844_v42 = vpop.f32.mrb[81].mxu1 }
 0xcd2   : > { %v3175_v45 = vpop.f32.mrb[82].mxu1 }
 0xcd3   : > { %v3188_v56 = vadd.f32 %v3173_v43, %v4704_v22  ;;  %v3176_v30 = vadd.f32 %v3487_v36, %v3175_v45  ;;  %v3845_v52 = vpop.f32.mrb[83].mxu1  ;;  %v3202_v22 = vsel (!%p3495_p5), %vm634_vm1, %v3186_v31, 0.0 }
 0xcd4   : > { %3203 = vadd.xlane.f32.xlu0 (!%p3495_p5), %v3202_v22 }
 0xcd5   : > { %3193 = vst.msk [vmem:[#allocation2 + $0x10] sm:$0xff] %vm634_vm1, %v3188_v56  ;;  %v3189_v54 = vadd.f32 %v3176_v30, %v4706_v29  ;;  %v3208_v55 = vsel (!%p3495_p5), %vm634_vm1, %v3188_v56, 0.0  ;;  %v3205_v29 = vsel (!%p3495_p5), %vm634_vm1, %v3187_v18, 0.0 }
 0xcd6   : > { %3209 = vadd.xlane.f32.xlu1 (!%p3495_p5), %v3208_v55 }
 0xcd7   : > { %3194 = vst.msk [vmem:[#allocation2 + $0x18] sm:$0xff] %vm634_vm1, %v3189_v54  ;;  %v3211_v58 = vsel (!%p3495_p5), %vm634_vm1, %v3189_v54, 0.0 }
 0xcd8   : > { %3206 = vadd.xlane.f32.xlu0 (!%p3495_p5), %v3205_v29 }
 0xcd9   : > { %3199 = sbr.rel (%p3495_p5) target bundleno = 3610 (0xe1a), region = 84 }
 0xcda   : > { %v3180_v33 = vpop.f32.mrb[84].mxu1  ;;  %3212 = vadd.xlane.f32.xlu1 (!%p3495_p5), %v3211_v58 }
 0xcdb   : > { %v3181_v40 = vadd.f32 %v3487_v36, %v3180_v33  ;;  %v3848_v7 = vpop.f32.mrb[85].mxu1 }
 0xcdc   : > { %v3183_v39 = vpop.f32.mrb[86].mxu1 }
 0xcdd   : > { %v3190_v20 = vadd.f32 %v3181_v40, %v4712_v46  ;;  %v3849_v47 = vpop.f32.mrb[87].mxu1 }
 0xcdf   : > { %3195 = vst.msk [vmem:[#allocation2 + $0x20] sm:$0xff] %vm634_vm1, %v3190_v20  ;;  %v3214_v46 = vsel (!%p3495_p5), %vm634_vm1, %v3190_v20, 0.0 }
 0xce0   : > { %3215 = vadd.xlane.f32.xlu0 %v3214_v46 }
 0xd61   : > { %v3204_v61 = vpop.xlane.xlu0 %3203 }
 0xd62   : > { %v3217_v26 = vmul.f32 0.03125, %v3204_v61 }
 0xd63   : > { %v3210_v63 = vpop.xlane.xlu1 %3209 }
 0xd64   : > { %v3219_v19 = vmul.f32 0.03125, %v3210_v63  ;;  %v3222_v62 = vsub.f32 %v3186_v31, %v3217_v26  ;;  %v3496_v31 = vld [vmem:[%s4885_s15] ss:$0 sm:$0xff] }
 0xd65   : > { %v3207_v15 = vpop.xlane.xlu0 %3206 }
 0xd66   : > { %v3224_v0 = vsub.f32 %v3188_v56, %v3219_v19  ;;  %v3218_v4 = vmul.f32 0.03125, %v3207_v15  ;;  %v3227_v2 = vmul.f32 %v3222_v62, %v3222_v62 }
 0xd67   : > { %v3213_v57 = vpop.xlane.xlu1 %3212 }
 0xd68   : > { %v3220_v37 = vmul.f32 0.03125, %v3213_v57  ;;  %v3229_v6 = vmul.f32 %v3224_v0, %v3224_v0  ;;  %v3223_v34 = vsub.f32 %v3187_v18, %v3218_v4  ;;  %v3232_v28 = vsel %vm634_vm1, %v3227_v2, 0.0 }
 0xd69   : > { %3233 = vadd.xlane.f32.xlu1 %v3232_v28 }
 0xd6a   : > { %v3225_v9 = vsub.f32 %v3189_v54, %v3220_v37  ;;  %v3238_v49 = vsel %vm634_vm1, %v3229_v6, 0.0  ;;  %v3228_v51 = vmul.f32 %v3223_v34, %v3223_v34 }
 0xd6c   : > { %v3230_v10 = vmul.f32 %v3225_v9, %v3225_v9  ;;  %v3235_v53 = vsel %vm634_vm1, %v3228_v51, 0.0 }
 0xd6d   : > { %v3216_v44 = vpop.xlane.xlu0 %3215  ;;  %3239 = vadd.xlane.f32.xlu1 %v3238_v49  ;;  %3236 = vadd.xlane.f32.xlu0 %v3235_v53 }
 0xd6e   : > { %v3221_v8 = vmul.f32 0.03125, %v3216_v44  ;;  %v3241_v11 = vsel %vm634_vm1, %v3230_v10, 0.0 }
 0xd70   : > { %v3226_v12 = vsub.f32 %v3190_v20, %v3221_v8 }
 0xd71   : > { %3242 = vadd.xlane.f32.xlu0 %v3241_v11 }
 0xd72   : > { %v3231_v25 = vmul.f32 %v3226_v12, %v3226_v12 }
 0xd74   : > { %v3244_v14 = vsel %vm634_vm1, %v3231_v25, 0.0 }
 0xd75   : > { %3245 = vadd.xlane.f32.xlu1 %v3244_v14 }
 0xdf6   : > { %v3234_v21 = vpop.xlane.xlu1 %3233 }
 0xdf7   : > { %v3247_v17 = vmul.f32 0.03125, %v3234_v21 }
 0xdf9   : > { %v3252_v50 = vadd.f32 1e-05, %v3247_v17 }
 0xdfa   : > { %v3240_v59 = vpop.xlane.xlu1 %3239  ;;  %v3237_v27 = vpop.xlane.xlu0 %3236 }
 0xdfb   : > { %3987 = vrsqrt.f32 %v3252_v50  ;;  %v3249_v48 = vmul.f32 0.03125, %v3240_v59  ;;  %v3248_v3 = vmul.f32 0.03125, %v3237_v27 }
 0xdfd   : > { %v3254_v1 = vadd.f32 1e-05, %v3249_v48  ;;  %v3253_v32 = vadd.f32 1e-05, %v3248_v3 }
 0xdfe   : > { %v3243_v23 = vpop.xlane.xlu0 %3242 }
 0xdff   : > { %3989 = vrsqrt.f32 %v3254_v1  ;;  %v3250_v13 = vmul.f32 0.03125, %v3243_v23 }
 0xe00   : > { %3991 = vrsqrt.f32 %v3253_v32 }
 0xe01   : > { %v3255_v35 = vadd.f32 1e-05, %v3250_v13 }
 0xe02   : > { %v3246_v24 = vpop.xlane.xlu1 %3245 }
 0xe03   : > { %v3251_v36 = vmul.f32 0.03125, %v3246_v24 }
 0xe05   : > { %v3256_v5 = vadd.f32 1e-05, %v3251_v36  ;;  %v3988_v16 = vpop.eup %3987 }
 0xe06   : > { %v3262_v41 = vmul.f32 %v3988_v16, %v3222_v62 }
 0xe07   : > { %3993 = vrsqrt.f32 %v3256_v5 }
 0xe08   : > { %3995 = vrsqrt.f32 %v3255_v35  ;;  %v3273_v18 = vmul.f32 %v3496_v31, %v3262_v41 }
 0xe09   : > { %v3990_v38 = vpop.eup %3989 }
 0xe0a   : > { %v3992_v43 = vpop.eup %3991  ;;  %v3284_v42 = vadd.f32 %v3497_v60, %v3273_v18  ;;  %v3264_v45 = vmul.f32 %v3990_v38, %v3224_v0 }
 0xe0b   : > { %v3263_v56 = vmul.f32 %v3992_v43, %v3223_v34 }
 0xe0c   : > { %3289 = vst.msk [vmem:[%s4887_s16] sm:$0xff] %vm634_vm1, %v3284_v42  ;;  %v3275_v30 = vmul.f32 %v3496_v31, %v3264_v45 }
 0xe0d   : > { %v3274_v54 = vmul.f32 %v3496_v31, %v3263_v56 }
 0xe0e   : > { %v3286_v40 = vadd.f32 %v3497_v60, %v3275_v30 }
 0xe0f   : > { %v3285_v39 = vadd.f32 %v3497_v60, %v3274_v54 }
 0xe10   : > { %3291 = vst.msk [vmem:[%s4887_s16 + $0x10] sm:$0xff] %vm634_vm1, %v3286_v40 }
 0xe11   : > { %v3994_v52 = vpop.eup %3993  ;;  %3290 = vst.msk [vmem:[%s4887_s16 + $0x8] sm:$0xff] %vm634_vm1, %v3285_v39 }
 0xe12   : > { %v3996_v33 = vpop.eup %3995  ;;  %v3266_v7 = vmul.f32 %v3994_v52, %v3226_v12 }
 0xe13   : > { %v3265_v20 = vmul.f32 %v3996_v33, %v3225_v9 }
 0xe14   : > { %v3277_v47 = vmul.f32 %v3496_v31, %v3266_v7 }
 0xe15   : > { %v3276_v22 = vmul.f32 %v3496_v31, %v3265_v20 }
 0xe16   : > { %v3288_v55 = vadd.f32 %v3497_v60, %v3277_v47 }
 0xe17   : > { %v3287_v29 = vadd.f32 %v3497_v60, %v3276_v22 }
 0xe18   : > { %3293 = vst.msk [vmem:[%s4887_s16 + $0x20] sm:$0xff] %vm634_vm1, %v3288_v55 }
 0xe19   : > { %3292 = vst.msk [vmem:[%s4887_s16 + $0x18] sm:$0xff] %vm634_vm1, %v3287_v29 }
 0xe1a PF: > { %s4888_s13 = sld [smem:[#allocation5_spill]] }
 0xe20   : > { %s24_s29 = sadd.s32 1, %s4888_s13  }
 0xe21   : > { %p21_p6 = scmp.ge.s32.totalorder %s24_s29, 4  }
 0xe23   :  { %23 = sbr.rel (!%p21_p6) target bundleno = 6 (0x6), region = 140 }

</bundles_post_ra>
